<compile_context>
chip_gen: v5e
topology: v5e:2x2
jax: 0.10.0
libtpu: 0.0.40
codegen_flags: <defaults>
</compile_context>

<pallas_src>
import functools

import jax
import jax.numpy as jnp
from jax.experimental import pallas as pl
from jax.experimental.pallas import tpu as pltpu


def _round_up(v, m):
    return (v + m - 1) // m * m


# ----------------------------------------------------------------------------
# Fused kernel: (grouped conv -> BN -> ReLU) -> (conv -> BN -> ReLU), NCHW out.
# ----------------------------------------------------------------------------
def _input_cv_kernel(x1_ref, x2_ref, w1_ref, b1_ref, cmask_ref, w2_ref, b2_ref,
                     o_ref, mid_ref, *, tile_h, chunk_rows, n_h, H, W, cin,
                     cmid_pad, cout_m, out_ch, lead):
    """One (batch, row-tile) grid step.

    x1_ref : (1, cin, tile_h, W+2) bf16   padded input rows [i*t, (i+1)*t)
    x2_ref : (1, cin, 8, W+2)      bf16   next 8 padded rows (4 of them are the halo)
    w1_ref : (cmid_pad, 9*cin)     bf16   BN1-folded block-diagonal grouped conv weight
    b1_ref : (cmid_pad, 1)         f32
    cmask  : (1, P)                f32    0 on the left/right halo columns of the mid grid
    w2_ref : (cout_m, 9*cmid_pad)  bf16   BN2-folded conv2 weight
    b2_ref : (cout_m, 1)           f32
    o_ref  : (1, out_ch, tile_h, W) f32   NCHW output tile
    mid_ref: (cmid_pad, lead + P + 128) bf16 scratch (conv1 output, flat haloed grid)
    """
    Wm = W + 2
    th2 = tile_h + 2
    P = th2 * Wm                       # conv1 output positions (incl. conv2's 1-halo)
    i = pl.program_id(1)

    # ---- haloed input tile, channel-major, row-major flattened (+1 guard col each end)
    xa = x1_ref[0].reshape(cin, tile_h * Wm)
    xb = x2_ref[0][:, :4, :].reshape(cin, 4 * Wm)
    zc = jnp.zeros((cin, 1), xa.dtype)
    xf = jnp.concatenate([zc, xa, xb, zc], axis=1)       # (cin, (tile_h+4)*Wm + 2)

    # ---- conv1 (grouped, BN1-folded) + ReLU: one channels-stationary MXU matmul.
    taps = [xf[:, dy * Wm + dx: dy * Wm + dx + P]
            for dy in range(3) for dx in range(3)]
    patches = jnp.concatenate(taps, axis=0)              # (9*cin, P)
    mid = jnp.dot(w1_ref[...], patches, preferred_element_type=jnp.float32)
    mid = jnp.maximum(mid + b1_ref[...], 0.0) * cmask_ref[...]   # zero l/r halo columns
    mid_ref[:, pl.ds(lead, P)] = mid.astype(mid_ref.dtype)

    # Guard pads of the scratch (only ever read for discarded halo columns) -> finite.
    mid_ref[:, pl.ds(0, lead)] = jnp.zeros((cmid_pad, lead), mid_ref.dtype)
    tail = mid_ref.shape[1] - (lead + P)
    mid_ref[:, pl.ds(lead + P, tail)] = jnp.zeros((cmid_pad, tail), mid_ref.dtype)

    # conv2 zero padding above the first / below the last real image row.
    @pl.when(i == 0)
    def _():
        mid_ref[:, pl.ds(lead, Wm)] = jnp.zeros((cmid_pad, Wm), mid_ref.dtype)

    a0 = H - (n_h - 1) * tile_h + 1    # first mid-grid row that lies outside the image

    @pl.when(i == n_h - 1)
    def _():
        mid_ref[:, pl.ds(lead + a0 * Wm, (th2 - a0) * Wm)] = jnp.zeros(
            (cmid_pad, (th2 - a0) * Wm), mid_ref.dtype)

    # ---- conv2 (BN2-folded) + ReLU: fused K = 9*cmid_pad, spatial on the MXU N axis,
    #      each chunk written straight into the NCHW output block.
    w2 = w2_ref[...]
    b2 = b2_ref[...]
    Nc = chunk_rows * Wm
    for c in range(tile_h // chunk_rows):
        base = lead + c * chunk_rows * Wm
        slabs = [mid_ref[:, pl.ds(base + dy * Wm + dx - 1, Nc)]
                 for dy in range(3) for dx in range(3)]
        rhs = jnp.concatenate(slabs, axis=0)             # (9*cmid_pad, Nc) bf16
        acc = jnp.dot(w2, rhs, preferred_element_type=jnp.float32)  # (cout_m, Nc)
        acc = jnp.maximum(acc + b2, 0.0)
        acc = acc.reshape(cout_m, chunk_rows, Wm)[:out_ch, :, 1:W + 1]
        o_ref[0, :, pl.ds(c * chunk_rows, chunk_rows), :] = acc.astype(o_ref.dtype)


# ----------------------------------------------------------------------------
# Wrapper-side helpers
# ----------------------------------------------------------------------------
def _grouped_to_dense(w_g, groups):
    """PyTorch grouped conv weight (G*ocg, icg, 3, 3) -> dense block-diagonal OIHW."""
    oc, icg, kh, kw = w_g.shape
    ocg = oc // groups
    dense = jnp.zeros((oc, groups * icg, kh, kw), w_g.dtype)
    for g in range(groups):
        dense = dense.at[g * ocg:(g + 1) * ocg, g * icg:(g + 1) * icg].set(
            w_g[g * ocg:(g + 1) * ocg])
    return dense


def _vmem_budget():
    """Per-generation (working-set target, vmem_limit_bytes)."""
    cap = 128 * 1024 * 1024
    try:
        cap = int(pltpu.get_tpu_info().vmem_capacity_bytes)
    except Exception:
        pass
    if cap <= 64 * 1024 * 1024:        # v7x-class parts: 64 MiB physical, stay conservative
        return 18 * 1024 * 1024, 44 * 1024 * 1024
    return 28 * 1024 * 1024, 64 * 1024 * 1024


def _estimate_vmem(t, cr, W, cin, cmid_pad, cout_m, out_ch):
    Wm = W + 2
    P = (t + 2) * Wm
    Nc = cr * Wm
    b = 2 * cin * t * Wm * 2 + 2 * cin * 8 * Wm * 2       # input blocks (bf16, 2 buffers)
    b += 2 * out_ch * t * W * 4                           # output block (f32, 2 buffers)
    b += cmid_pad * (P + 256) * 2                         # mid scratch (bf16)
    conv1_tmp = 9 * cin * P * 2 + cmid_pad * P * 4 + 3 * cin * (t + 4) * Wm * 2
    conv2_tmp = 2 * 9 * cmid_pad * Nc * 2 + 2 * cout_m * Nc * 4
    b += max(conv1_tmp, conv2_tmp)
    return b + 2 * 1024 * 1024                            # weights + compiler slack


def _choose_tiles(N, H, W, cin, cmid_pad, cout_m, out_ch, ws_target,
                  tile_h=None, chunk_rows=None):
    if tile_h is not None:
        t = max(8, _round_up(tile_h, 8))
        h_eff = _round_up(H, t)
        cr = chunk_rows if (chunk_rows is not None and t % chunk_rows == 0) else t
        return t, cr, h_eff

    h_eff = _round_up(H, 8)
    cands = [c for c in (128, 96, 80, 64, 48, 40, 32, 24, 16, 8)
             if c <= h_eff and h_eff % c == 0]
    if N % 2 == 1:   # v7x: prefer an even total grid so both TensorCores stay busy
        cands.sort(key=lambda c: ((N * (h_eff // c)) % 2, -c))
    for t in cands:
        for cr in (t, t // 2, t // 4, t // 8, 4, 2, 1):
            if cr < 1 or t % cr != 0 or t // cr > 16:
                continue
            if _estimate_vmem(t, cr, W, cin, cmid_pad, cout_m, out_ch) <= ws_target:
                return t, cr, h_eff
    return 8, 1, h_eff


def input_cv_block(params, x, *, num_in_frames, eps=1e-5, tile_h=None,
                   chunk_rows=None):
    """InputCvBlock forward.  x: (N, num_in_frames*4, H, W) f32 -> (N, out_ch, H, W)."""
    N, cin, H, W = x.shape
    assert cin == num_in_frames * 4, (cin, num_in_frames)
    cmid = params['w1'].shape[0]                 # num_in_frames * 30
    out_ch = params['w2'].shape[0]
    cmid_pad = _round_up(cmid, 16)               # bf16 sublane tile
    cout_m = _round_up(out_ch, 16)
    Wm = W + 2

    ws_target, vmem_limit = _vmem_budget()
    t, cr, h_eff = _choose_tiles(N, H, W, cin, cmid_pad, cout_m, out_ch,
                                 ws_target, tile_h, chunk_rows)
    n_h = h_eff // t
    P = (t + 2) * Wm
    lead = 128
    p_alloc = lead + P + 128

    # ---- fold eval-mode BatchNorm into the (bias-free) convs
    bn1, bn2 = params['bn1'], params['bn2']
    s1 = bn1['gamma'] * jax.lax.rsqrt(bn1['var'] + eps)
    s2 = bn2['gamma'] * jax.lax.rsqrt(bn2['var'] + eps)
    b1 = bn1['beta'] - bn1['mean'] * s1
    b2 = bn2['beta'] - bn2['mean'] * s2

    w1d = _grouped_to_dense(params['w1'], num_in_frames) * s1[:, None, None, None]
    w1k = jnp.transpose(w1d, (0, 2, 3, 1)).reshape(cmid, 9 * cin)
    w1k = jnp.pad(w1k, ((0, cmid_pad - cmid), (0, 0))).astype(jnp.bfloat16)
    b1v = jnp.pad(b1, (0, cmid_pad - cmid)).reshape(cmid_pad, 1).astype(jnp.float32)

    w2d = params['w2'] * s2[:, None, None, None]              # (out_ch, cmid, 3, 3)
    w2k = jnp.transpose(w2d, (0, 2, 3, 1))                    # (out_ch, 3, 3, cmid)
    w2k = jnp.pad(w2k, ((0, cout_m - out_ch), (0, 0), (0, 0), (0, cmid_pad - cmid)))
    w2k = w2k.reshape(cout_m, 9 * cmid_pad).astype(jnp.bfloat16)
    b2v = jnp.pad(b2, (0, cout_m - out_ch)).reshape(cout_m, 1).astype(jnp.float32)

    # conv2 zero-padding mask for the left/right halo columns of the mid grid
    col = jnp.arange(P, dtype=jnp.int32) % Wm
    cmask = ((col > 0) & (col < Wm - 1)).astype(jnp.float32).reshape(1, P)

    # ---- padded channel-major bf16 input: 1 zero column each side, 2 zero rows on top,
    #      bottom padded so every tile-row / 8-row halo block window stays in bounds.
    h_rows = (n_h + 1) * t
    xp = jnp.pad(x.astype(jnp.bfloat16),
                 ((0, 0), (0, 0), (2, h_rows - H - 2), (1, 1)))

    kernel = functools.partial(
        _input_cv_kernel, tile_h=t, chunk_rows=cr, n_h=n_h, H=H, W=W, cin=cin,
        cmid_pad=cmid_pad, cout_m=cout_m, out_ch=out_ch, lead=lead)

    t8 = t // 8
    out = pl.pallas_call(
        kernel,
        out_shape=jax.ShapeDtypeStruct((N, out_ch, h_eff, W), jnp.float32),
        grid=(N, n_h),
        in_specs=[
            pl.BlockSpec((1, cin, t, Wm), lambda n, i: (n, 0, i, 0)),
            pl.BlockSpec((1, cin, 8, Wm), lambda n, i: (n, 0, (i + 1) * t8, 0)),
            pl.BlockSpec((cmid_pad, 9 * cin), lambda n, i: (0, 0)),
            pl.BlockSpec((cmid_pad, 1), lambda n, i: (0, 0)),
            pl.BlockSpec((1, P), lambda n, i: (0, 0)),
            pl.BlockSpec((cout_m, 9 * cmid_pad), lambda n, i: (0, 0)),
            pl.BlockSpec((cout_m, 1), lambda n, i: (0, 0)),
        ],
        out_specs=pl.BlockSpec((1, out_ch, t, W), lambda n, i: (n, 0, i, 0)),
        scratch_shapes=[pltpu.VMEM((cmid_pad, p_alloc), jnp.bfloat16)],
        compiler_params=pltpu.CompilerParams(
            dimension_semantics=("parallel", "parallel"),
            vmem_limit_bytes=vmem_limit),
    )(xp, xp, w1k, b1v, cmask, w2k, b2v)

    if h_eff != H:
        out = out[:, :, :H, :]   # only when no 8-aligned tile divides H
    return out


# ----------------------------------------------------------------------------
# Pure-JAX f32 reference (eval-mode BatchNorm), for correctness checking.
# ----------------------------------------------------------------------------
def _reference(params, x, num_in_frames, eps=1e-5):
    def bn(y, p):
        s = p['gamma'] * jax.lax.rsqrt(p['var'] + eps)
        b = p['beta'] - p['mean'] * s
        return y * s[None, :, None, None] + b[None, :, None, None]

    dn = ('NCHW', 'OIHW', 'NCHW')
    y = jax.lax.conv_general_dilated(x, params['w1'], (1, 1), 'SAME',
                                     dimension_numbers=dn,
                                     feature_group_count=num_in_frames)
    y = jax.nn.relu(bn(y, params['bn1']))
    y = jax.lax.conv_general_dilated(y, params['w2'], (1, 1), 'SAME',
                                     dimension_numbers=dn)
    return jax.nn.relu(bn(y, params['bn2']))


if __name__ == "__main__":
    key = jax.random.PRNGKey(0)
    num_in_frames, out_ch = 3, 32
    N, H, W = 2, 16, 16
    cin, cmid = num_in_frames * 4, num_in_frames * 30

    ks = list(jax.random.split(key, 8))

    def kaiming(k, shape, fan_in):
        return (2.0 / fan_in) ** 0.5 * jax.random.normal(k, shape, jnp.float32)

    def bn_params(k, c):
        k1, k2, k3, k4 = jax.random.split(k, 4)
        return {'gamma': jax.random.uniform(k1, (c,), jnp.float32, 0.5, 1.5),
                'beta': 0.1 * jax.random.normal(k2, (c,), jnp.float32),
                'mean': 0.1 * jax.random.normal(k3, (c,), jnp.float32),
                'var': jax.random.uniform(k4, (c,), jnp.float32, 0.5, 1.5)}

    params = {
        'w1': kaiming(ks[0], (cmid, 4, 3, 3), 4 * 9),        # grouped conv weight
        'bn1': bn_params(ks[1], cmid),
        'w2': kaiming(ks[2], (out_ch, cmid, 3, 3), cmid * 9),
        'bn2': bn_params(ks[3], out_ch),
    }
    x = jax.random.uniform(ks[4], (N, cin, H, W), jnp.float32)

    ref = _reference(params, x, num_in_frames)
    tol = 5e-2 + 5e-2 * float(jnp.max(jnp.abs(ref)))     # bf16-operand tolerance

    # Config 1: auto tile selection (single row-tile for this small shape).
    fwd = jax.jit(functools.partial(input_cv_block, num_in_frames=num_in_frames))
    out = jax.block_until_ready(fwd(params, x))
    assert out.shape == (N, out_ch, H, W), out.shape
    assert bool(jnp.all(jnp.isfinite(out)))
    err = float(jnp.max(jnp.abs(out - ref)))
    assert err <= tol, (err, tol)

    # Config 2: forced multi-tile + chunked conv2 (exercises halos / chunk loop).
    fwd2 = jax.jit(functools.partial(input_cv_block, num_in_frames=num_in_frames,
                                     tile_h=8, chunk_rows=4))
    out2 = jax.block_until_ready(fwd2(params, x))
    err2 = float(jnp.max(jnp.abs(out2 - ref)))
    assert err2 <= tol, (err2, tol)

    print("KERNEL_OK")
</pallas_src>

<mosaic_0001>
module attributes {stable_mosaic.version = 11 : i64} {
  func.func @_input_cv_kernel(%arg0: i32, %arg1: i32, %arg2: memref<1x12x16x18xbf16, #tpu.memory_space<vmem>>, %arg3: memref<1x12x8x18xbf16, #tpu.memory_space<vmem>>, %arg4: memref<96x108xbf16, #tpu.memory_space<vmem>>, %arg5: memref<96x1xf32, #tpu.memory_space<vmem>>, %arg6: memref<1x324xf32, #tpu.memory_space<vmem>>, %arg7: memref<32x864xbf16, #tpu.memory_space<vmem>>, %arg8: memref<32x1xf32, #tpu.memory_space<vmem>>, %arg9: memref<1x32x16x16xf32, #tpu.memory_space<vmem>>, %arg10: memref<96x580xbf16, #tpu.memory_space<vmem>>) attributes {dimension_semantics = [#tpu.dimension_semantics<parallel>, #tpu.dimension_semantics<parallel>], iteration_bounds = array<i64: 2, 1>, scalar_prefetch = 0 : i64, scratch_operands = 1 : i64, tpu.core_type = #tpu.core_type<tc>, window_params = [{transform_indices = @transform_0, window_bounds = array<i64: 1, 12, 16, 18>}, {transform_indices = @transform_1, window_bounds = array<i64: 1, 12, 8, 18>}, {pipeline_mode = #tpu.pipeline_mode<synchronous>, transform_indices = @transform_2, window_bounds = array<i64: 96, 108>}, {pipeline_mode = #tpu.pipeline_mode<synchronous>, transform_indices = @transform_3, window_bounds = array<i64: 96, 1>}, {pipeline_mode = #tpu.pipeline_mode<synchronous>, transform_indices = @transform_4, window_bounds = array<i64: 1, 324>}, {pipeline_mode = #tpu.pipeline_mode<synchronous>, transform_indices = @transform_5, window_bounds = array<i64: 32, 864>}, {pipeline_mode = #tpu.pipeline_mode<synchronous>, transform_indices = @transform_6, window_bounds = array<i64: 32, 1>}, {transform_indices = @transform_7, window_bounds = array<i64: 1, 32, 16, 16>}]} {
    %c0 = arith.constant 0 : index
    %c0_0 = arith.constant 0 : index
    %c0_1 = arith.constant 0 : index
    %c0_2 = arith.constant 0 : index
    %0 = vector.load %arg2[%c0, %c0_0, %c0_1, %c0_2] : memref<1x12x16x18xbf16, #tpu.memory_space<vmem>>, vector<1x12x16x18xbf16>
    %1 = vector.shape_cast %0 : vector<1x12x16x18xbf16> to vector<12x16x18xbf16>
    %2 = vector.shape_cast %1 : vector<12x16x18xbf16> to vector<12x288xbf16>
    %c0_3 = arith.constant 0 : index
    %c0_4 = arith.constant 0 : index
    %c0_5 = arith.constant 0 : index
    %c0_6 = arith.constant 0 : index
    %3 = vector.load %arg3[%c0_3, %c0_4, %c0_5, %c0_6] : memref<1x12x8x18xbf16, #tpu.memory_space<vmem>>, vector<1x12x8x18xbf16>
    %4 = vector.shape_cast %3 : vector<1x12x8x18xbf16> to vector<12x8x18xbf16>
    %5 = vector.extract_strided_slice %4 {offsets = [0, 0, 0], sizes = [12, 4, 18], strides = [1, 1, 1]} : vector<12x8x18xbf16> to vector<12x4x18xbf16>
    %6 = vector.shape_cast %5 : vector<12x4x18xbf16> to vector<12x72xbf16>
    %cst = arith.constant 0.000000e+00 : bf16
    %7 = vector.broadcast %cst : bf16 to vector<12x1xbf16>
    %8 = tpu.concatenate %7, %2, %6, %7 in 1 : vector<12x1xbf16>, vector<12x288xbf16>, vector<12x72xbf16>, vector<12x1xbf16> -> vector<12x362xbf16>
    %9 = vector.extract_strided_slice %8 {offsets = [0, 0], sizes = [12, 324], strides = [1, 1]} : vector<12x362xbf16> to vector<12x324xbf16>
    %10 = vector.extract_strided_slice %8 {offsets = [0, 1], sizes = [12, 324], strides = [1, 1]} : vector<12x362xbf16> to vector<12x324xbf16>
    %11 = vector.extract_strided_slice %8 {offsets = [0, 2], sizes = [12, 324], strides = [1, 1]} : vector<12x362xbf16> to vector<12x324xbf16>
    %12 = vector.extract_strided_slice %8 {offsets = [0, 18], sizes = [12, 324], strides = [1, 1]} : vector<12x362xbf16> to vector<12x324xbf16>
    %13 = vector.extract_strided_slice %8 {offsets = [0, 19], sizes = [12, 324], strides = [1, 1]} : vector<12x362xbf16> to vector<12x324xbf16>
    %14 = vector.extract_strided_slice %8 {offsets = [0, 20], sizes = [12, 324], strides = [1, 1]} : vector<12x362xbf16> to vector<12x324xbf16>
    %15 = vector.extract_strided_slice %8 {offsets = [0, 36], sizes = [12, 324], strides = [1, 1]} : vector<12x362xbf16> to vector<12x324xbf16>
    %16 = vector.extract_strided_slice %8 {offsets = [0, 37], sizes = [12, 324], strides = [1, 1]} : vector<12x362xbf16> to vector<12x324xbf16>
    %17 = vector.extract_strided_slice %8 {offsets = [0, 38], sizes = [12, 324], strides = [1, 1]} : vector<12x362xbf16> to vector<12x324xbf16>
    %18 = tpu.concatenate %9, %10, %11, %12, %13, %14, %15, %16, %17 in 0 : vector<12x324xbf16>, vector<12x324xbf16>, vector<12x324xbf16>, vector<12x324xbf16>, vector<12x324xbf16>, vector<12x324xbf16>, vector<12x324xbf16>, vector<12x324xbf16>, vector<12x324xbf16> -> vector<108x324xbf16>
    %c0_7 = arith.constant 0 : index
    %c0_8 = arith.constant 0 : index
    %19 = vector.load %arg4[%c0_7, %c0_8] : memref<96x108xbf16, #tpu.memory_space<vmem>>, vector<96x108xbf16>
    %cst_9 = arith.constant dense<0.000000e+00> : vector<96x324xf32>
    %20 = tpu.matmul %19, %18, %cst_9 {dimension_numbers = #tpu.dot_dimension_numbers<[1], [0], [0], [1], [0, 0, 1, 1], [], []>} : vector<96x108xbf16>, vector<108x324xbf16>, vector<96x324xf32> -> vector<96x324xf32>
    %c0_10 = arith.constant 0 : index
    %c0_11 = arith.constant 0 : index
    %21 = vector.load %arg5[%c0_10, %c0_11] : memref<96x1xf32, #tpu.memory_space<vmem>>, vector<96x1xf32>
    %22 = vector.broadcast %21 : vector<96x1xf32> to vector<96x324xf32>
    %23 = arith.addf %20, %22 : vector<96x324xf32>
    %cst_12 = arith.constant 0.000000e+00 : f32
    %24 = vector.broadcast %cst_12 : f32 to vector<96x324xf32>
    %25 = arith.maximumf %23, %24 : vector<96x324xf32>
    %c0_13 = arith.constant 0 : index
    %c0_14 = arith.constant 0 : index
    %26 = vector.load %arg6[%c0_13, %c0_14] : memref<1x324xf32, #tpu.memory_space<vmem>>, vector<1x324xf32>
    %27 = vector.broadcast %26 : vector<1x324xf32> to vector<96x324xf32>
    %28 = arith.mulf %25, %27 : vector<96x324xf32>
    %29 = arith.truncf %28 : vector<96x324xf32> to vector<96x324xbf16>
    %c0_15 = arith.constant 0 : index
    %c128 = arith.constant 128 : index
    %30 = vector.load %arg10[%c0_15, %c128] : memref<96x580xbf16, #tpu.memory_space<vmem>>, vector<96x324xbf16>
    tpu.vector_store %arg10[%c0_15, %c128], %29 {strides = array<i32>} : memref<96x580xbf16, #tpu.memory_space<vmem>>, vector<96x324xbf16>,
    %cst_16 = arith.constant 0.000000e+00 : bf16
    %31 = vector.broadcast %cst_16 : bf16 to vector<96x128xbf16>
    %c0_17 = arith.constant 0 : index
    %c0_18 = arith.constant 0 : index
    %32 = vector.load %arg10[%c0_17, %c0_18] : memref<96x580xbf16, #tpu.memory_space<vmem>>, vector<96x128xbf16>
    tpu.vector_store %arg10[%c0_17, %c0_18], %31 {strides = array<i32>} : memref<96x580xbf16, #tpu.memory_space<vmem>>, vector<96x128xbf16>,
    %cst_19 = arith.constant 0.000000e+00 : bf16
    %33 = vector.broadcast %cst_19 : bf16 to vector<96x128xbf16>
    %c0_20 = arith.constant 0 : index
    %c452 = arith.constant 452 : index
    %34 = vector.load %arg10[%c0_20, %c452] : memref<96x580xbf16, #tpu.memory_space<vmem>>, vector<96x128xbf16>
    tpu.vector_store %arg10[%c0_20, %c452], %33 {strides = array<i32>} : memref<96x580xbf16, #tpu.memory_space<vmem>>, vector<96x128xbf16>,
    %c0_i32 = arith.constant 0 : i32
    %35 = arith.cmpi eq, %arg1, %c0_i32 : i32
    %36 = arith.extui %35 : i1 to i32
    %c0_i32_21 = arith.constant 0 : i32
    %37 = arith.cmpi ne, %36, %c0_i32_21 : i32
    scf.if %37 {
      %cst_44 = arith.constant 0.000000e+00 : bf16
      %63 = vector.broadcast %cst_44 : bf16 to vector<96x18xbf16>
      %c0_45 = arith.constant 0 : index
      %c128_46 = arith.constant 128 : index
      %64 = vector.load %arg10[%c0_45, %c128_46] : memref<96x580xbf16, #tpu.memory_space<vmem>>, vector<96x18xbf16>
      tpu.vector_store %arg10[%c0_45, %c128_46], %63 {strides = array<i32>} : memref<96x580xbf16, #tpu.memory_space<vmem>>, vector<96x18xbf16>,
    } else {
    }
    %c0_i32_22 = arith.constant 0 : i32
    %38 = arith.cmpi eq, %arg1, %c0_i32_22 : i32
    %39 = arith.extui %38 : i1 to i32
    %c0_i32_23 = arith.constant 0 : i32
    %40 = arith.cmpi ne, %39, %c0_i32_23 : i32
    scf.if %40 {
      %cst_44 = arith.constant 0.000000e+00 : bf16
      %63 = vector.broadcast %cst_44 : bf16 to vector<96x18xbf16>
      %c0_45 = arith.constant 0 : index
      %c434 = arith.constant 434 : index
      %64 = vector.load %arg10[%c0_45, %c434] : memref<96x580xbf16, #tpu.memory_space<vmem>>, vector<96x18xbf16>
      tpu.vector_store %arg10[%c0_45, %c434], %63 {strides = array<i32>} : memref<96x580xbf16, #tpu.memory_space<vmem>>, vector<96x18xbf16>,
    } else {
    }
    %c0_24 = arith.constant 0 : index
    %c0_25 = arith.constant 0 : index
    %41 = vector.load %arg7[%c0_24, %c0_25] : memref<32x864xbf16, #tpu.memory_space<vmem>>, vector<32x864xbf16>
    %c0_26 = arith.constant 0 : index
    %c0_27 = arith.constant 0 : index
    %42 = vector.load %arg8[%c0_26, %c0_27] : memref<32x1xf32, #tpu.memory_space<vmem>>, vector<32x1xf32>
    %c0_28 = arith.constant 0 : index
    %c127 = arith.constant 127 : index
    %43 = vector.load %arg10[%c0_28, %c127] : memref<96x580xbf16, #tpu.memory_space<vmem>>, vector<96x288xbf16>
    %c0_29 = arith.constant 0 : index
    %c128_30 = arith.constant 128 : index
    %44 = vector.load %arg10[%c0_29, %c128_30] : memref<96x580xbf16, #tpu.memory_space<vmem>>, vector<96x288xbf16>
    %c0_31 = arith.constant 0 : index
    %c129 = arith.constant 129 : index
    %45 = vector.load %arg10[%c0_31, %c129] : memref<96x580xbf16, #tpu.memory_space<vmem>>, vector<96x288xbf16>
    %c0_32 = arith.constant 0 : index
    %c145 = arith.constant 145 : index
    %46 = vector.load %arg10[%c0_32, %c145] : memref<96x580xbf16, #tpu.memory_space<vmem>>, vector<96x288xbf16>
    %c0_33 = arith.constant 0 : index
    %c146 = arith.constant 146 : index
    %47 = vector.load %arg10[%c0_33, %c146] : memref<96x580xbf16, #tpu.memory_space<vmem>>, vector<96x288xbf16>
    %c0_34 = arith.constant 0 : index
    %c147 = arith.constant 147 : index
    %48 = vector.load %arg10[%c0_34, %c147] : memref<96x580xbf16, #tpu.memory_space<vmem>>, vector<96x288xbf16>
    %c0_35 = arith.constant 0 : index
    %c163 = arith.constant 163 : index
    %49 = vector.load %arg10[%c0_35, %c163] : memref<96x580xbf16, #tpu.memory_space<vmem>>, vector<96x288xbf16>
    %c0_36 = arith.constant 0 : index
    %c164 = arith.constant 164 : index
    %50 = vector.load %arg10[%c0_36, %c164] : memref<96x580xbf16, #tpu.memory_space<vmem>>, vector<96x288xbf16>
    %c0_37 = arith.constant 0 : index
    %c165 = arith.constant 165 : index
    %51 = vector.load %arg10[%c0_37, %c165] : memref<96x580xbf16, #tpu.memory_space<vmem>>, vector<96x288xbf16>
    %52 = tpu.concatenate %43, %44, %45, %46, %47, %48, %49, %50, %51 in 0 : vector<96x288xbf16>, vector<96x288xbf16>, vector<96x288xbf16>, vector<96x288xbf16>, vector<96x288xbf16>, vector<96x288xbf16>, vector<96x288xbf16>, vector<96x288xbf16>, vector<96x288xbf16> -> vector<864x288xbf16>
    %cst_38 = arith.constant dense<0.000000e+00> : vector<32x288xf32>
    %53 = tpu.matmul %41, %52, %cst_38 {dimension_numbers = #tpu.dot_dimension_numbers<[1], [0], [0], [1], [0, 0, 1, 1], [], []>} : vector<32x864xbf16>, vector<864x288xbf16>, vector<32x288xf32> -> vector<32x288xf32>
    %54 = vector.broadcast %42 : vector<32x1xf32> to vector<32x288xf32>
    %55 = arith.addf %53, %54 : vector<32x288xf32>
    %cst_39 = arith.constant 0.000000e+00 : f32
    %56 = vector.broadcast %cst_39 : f32 to vector<32x288xf32>
    %57 = arith.maximumf %55, %56 : vector<32x288xf32>
    %58 = vector.shape_cast %57 : vector<32x288xf32> to vector<32x16x18xf32>
    %59 = vector.extract_strided_slice %58 {offsets = [0, 0, 1], sizes = [32, 16, 16], strides = [1, 1, 1]} : vector<32x16x18xf32> to vector<32x16x16xf32>
    %c0_40 = arith.constant 0 : index
    %c0_41 = arith.constant 0 : index
    %c0_42 = arith.constant 0 : index
    %c0_43 = arith.constant 0 : index
    %60 = vector.load %arg9[%c0_40, %c0_41, %c0_42, %c0_43] : memref<1x32x16x16xf32, #tpu.memory_space<vmem>>, vector<1x32x16x16xf32>
    %61 = vector.shape_cast %60 : vector<1x32x16x16xf32> to vector<32x16x16xf32>
    %62 = vector.shape_cast %59 : vector<32x16x16xf32> to vector<1x32x16x16xf32>
    tpu.vector_store %arg9[%c0_40, %c0_41, %c0_42, %c0_43], %62 {strides = array<i32>} : memref<1x32x16x16xf32, #tpu.memory_space<vmem>>, vector<1x32x16x16xf32>,
    return
  }
  func.func @transform_0(%arg0: i32, %arg1: i32) -> (i32, i32, i32, i32) {
    %c0_i32 = arith.constant 0 : i32
    %c0_i32_0 = arith.constant 0 : i32
    %c0_i32_1 = arith.constant 0 : i32
    return %arg0, %c0_i32, %arg1, %c0_i32_0 : i32, i32, i32, i32
  }
  func.func @transform_1(%arg0: i32, %arg1: i32) -> (i32, i32, i32, i32) {
    %c1_i32 = arith.constant 1 : i32
    %0 = arith.addi %arg1, %c1_i32 : i32
    %c2_i32 = arith.constant 2 : i32
    %1 = arith.muli %0, %c2_i32 : i32
    %c0_i32 = arith.constant 0 : i32
    %c0_i32_0 = arith.constant 0 : i32
    %c0_i32_1 = arith.constant 0 : i32
    return %arg0, %c0_i32, %1, %c0_i32_0 : i32, i32, i32, i32
  }
  func.func @transform_2(%arg0: i32, %arg1: i32) -> (i32, i32) {
    %c0_i32 = arith.constant 0 : i32
    %c0_i32_0 = arith.constant 0 : i32
    %c0_i32_1 = arith.constant 0 : i32
    return %c0_i32, %c0_i32_0 : i32, i32
  }
  func.func @transform_3(%arg0: i32, %arg1: i32) -> (i32, i32) {
    %c0_i32 = arith.constant 0 : i32
    %c0_i32_0 = arith.constant 0 : i32
    %c0_i32_1 = arith.constant 0 : i32
    return %c0_i32, %c0_i32_0 : i32, i32
  }
  func.func @transform_4(%arg0: i32, %arg1: i32) -> (i32, i32) {
    %c0_i32 = arith.constant 0 : i32
    %c0_i32_0 = arith.constant 0 : i32
    %c0_i32_1 = arith.constant 0 : i32
    return %c0_i32, %c0_i32_0 : i32, i32
  }
  func.func @transform_5(%arg0: i32, %arg1: i32) -> (i32, i32) {
    %c0_i32 = arith.constant 0 : i32
    %c0_i32_0 = arith.constant 0 : i32
    %c0_i32_1 = arith.constant 0 : i32
    return %c0_i32, %c0_i32_0 : i32, i32
  }
  func.func @transform_6(%arg0: i32, %arg1: i32) -> (i32, i32) {
    %c0_i32 = arith.constant 0 : i32
    %c0_i32_0 = arith.constant 0 : i32
    %c0_i32_1 = arith.constant 0 : i32
    return %c0_i32, %c0_i32_0 : i32, i32
  }
  func.func @transform_7(%arg0: i32, %arg1: i32) -> (i32, i32, i32, i32) {
    %c0_i32 = arith.constant 0 : i32
    %c0_i32_0 = arith.constant 0 : i32
    %c0_i32_1 = arith.constant 0 : i32
    return %arg0, %c0_i32, %arg1, %c0_i32_0 : i32, i32, i32, i32
  }
}

</mosaic_0001>

<bundles_post_ra>
// kernel: input_cv_block.1
= control target key start
LH: loop header
LB: loop body
LE: loop exit
PB: predicated region body
PF: predicated region fallthrough
CT: control target
= control target key end

     0   :  { %s5791_s24 = smov 0   ;;  %s5793_s25 = smov 0   ;;  %s9923_s0 = inlined_call_operand.vmem [shape: bf16[2,12,32,18], index: 0, kind: input, shape index: {}, may-alias: {0,1}]   ;;  %s9924_s1 = inlined_call_operand.vmem [shape: bf16[2,12,32,18], index: 1, kind: input, shape index: {}, may-alias: {0,1}]   ;;  %s9925_s2 = inlined_call_operand.vmem [shape: bf16[96,108], index: 2, kind: input, shape index: {}]   ;;  %s9926_s3 = inlined_call_operand.vmem [shape: f32[96,1], index: 3, kind: input, shape index: {}]   ;;  %s9927_s4 = inlined_call_operand.vmem [shape: f32[1,324], index: 4, kind: input, shape index: {}]   ;;  %s9928_s5 = inlined_call_operand.vmem [shape: bf16[32,864], index: 5, kind: input, shape index: {}]   ;;  %s9929_s6 = inlined_call_operand.vmem [shape: f32[32,1], index: 6, kind: input, shape index: {}]   ;;  %s9930_s7 = inlined_call_operand.vmem [shape: f32[2,32,16,16], index: 7, kind: output, shape index: {}]  }
   0x1   :  { %s5795_s26 = smov 0   ;;  %s5797_s27 = smov 0  }
   0x2   :  { %s5799_s28 = smov 0  }
   0x3 LB: > { %s29_s29 = sadd.s32 1, %s5707_s27  ;;  %p45_p1 = scmp.ne.s32.totalorder %s5699_s25, %s5695_s24  ;;  %s5711_s28 = sphi %s5799_s28, %s17_s28   ;;  %s5707_s27 = sphi %s5797_s27, %s10496_s27   ;;  %s5703_s26 = sphi %s5795_s26, %s10495_s26   ;;  %s5699_s25 = sphi %s5793_s25, %s10494_s25   ;;  %s5695_s24 = sphi %s5791_s24, %s10493_s24  }
   0x4   : > { %p31_p0 = scmp.ge.s32.totalorder %s29_s29, 2  ;;  %p46_p2 = scmp.eq.s32.totalorder %s5711_s28, 0 }
   0x5   : > { %s38_s9 = sadd.s32 1, %s5699_s25  ;;  %p5218_p5 = scmp.ge.s32.totalorder %s5711_s28, 2 }
   0x6   : > { %s10498_s29 = smov (%p31_p0, %s29_s29), 0  ;;  %p5822_p3 = por %p46_p2, %p45_p1 }
   0x7   : > { %s33_s8 = ssub.s32 %s5707_s27, %s10498_s29  ;;  %251 = sbr.rel (%p5218_p5) target bundleno = 46 (0x2e), region = 36 }
   0x8   : > { %p36_p4 = scmp.eq.s32.totalorder %s33_s8, 0 }
   0xa   : > { %s5830_s10 = scalar_select %p36_p4, %s5699_s25, %s38_s9  }
   0xc   : > { %254 = sbr.rel (!%p5822_p3) target bundleno = 29 (0x1d), region = 40  ;;  %s256_s11 = sand.u32 (%p5822_p3), 1, %s5699_s25  }
   0xd   : > { %s5588_s12 = smul.u32 (%p5822_p3), 192, %s5707_s27 }
   0xe   : > { %s5587_s13 = smul.u32 (%p5822_p3), 96, %s256_s11 }
   0xf   : > { %s263_s16 = scalar_lea.vmem (%p5822_p3), %s9923_s0, %s5588_s12 }
  0x10   : > { %v280_v0 = vld [vmem:[%s263_s16] sm:$0xff] (%p5822_p3)   ;;  %v284_v1 = vld [vmem:[%s263_s16 + $0x10] sm:$0xff] (%p5822_p3)   ;;  %s258_s17 = scalar_lea.vmem (%p5822_p3), [#allocation3], %s5587_s13 }
  0x11   : > { %v288_v2 = vld [vmem:[%s263_s16 + $0x20] sm:$0xff]   ;;  %281 = vst [vmem:[%s258_s17] sm:$0xff] %v280_v0   ;;  %v292_v3 = vld [vmem:[%s263_s16 + $0x30] sm:$0xff]  }
  0x12   : > { %285 = vst [vmem:[%s258_s17 + $0x8] sm:$0xff] %v284_v1   ;;  %v296_v4 = vld [vmem:[%s263_s16 + $0x40] sm:$0xff]   ;;  %v300_v5 = vld [vmem:[%s263_s16 + $0x50] sm:$0xff]  }
  0x13   : > { %289 = vst [vmem:[%s258_s17 + $0x10] sm:$0xff] %v288_v2   ;;  %v304_v6 = vld [vmem:[%s263_s16 + $0x60] sm:$0xff]   ;;  %v308_v7 = vld [vmem:[%s263_s16 + $0x70] sm:$0xff]  }
  0x14   : > { %293 = vst [vmem:[%s258_s17 + $0x18] sm:$0xff] %v292_v3   ;;  %v312_v8 = vld [vmem:[%s263_s16 + $0x80] sm:$0xff]   ;;  %v316_v9 = vld [vmem:[%s263_s16 + $0x90] sm:$0xff]  }
  0x15   : > { %297 = vst [vmem:[%s258_s17 + $0x20] sm:$0xff] %v296_v4   ;;  %v320_v10 = vld [vmem:[%s263_s16 + $0xa0] sm:$0xff]   ;;  %v324_v11 = vld [vmem:[%s263_s16 + $0xb0] sm:$0xff]  }
  0x16   : > { %301 = vst [vmem:[%s258_s17 + $0x28] sm:$0xff] %v300_v5  }
  0x17   : > { %305 = vst [vmem:[%s258_s17 + $0x30] sm:$0xff] %v304_v6  }
  0x18   : > { %309 = vst [vmem:[%s258_s17 + $0x38] sm:$0xff] %v308_v7  }
  0x19   : > { %313 = vst [vmem:[%s258_s17 + $0x40] sm:$0xff] %v312_v8  }
  0x1a   : > { %317 = vst [vmem:[%s258_s17 + $0x48] sm:$0xff] %v316_v9  }
  0x1b   : > { %321 = vst [vmem:[%s258_s17 + $0x50] sm:$0xff] %v320_v10  }
  0x1c   : > { %325 = vst [vmem:[%s258_s17 + $0x58] sm:$0xff] %v324_v11  }
  0x1d PF: > { %399 = sbr.rel (!%p5822_p3) target bundleno = 46 (0x2e), region = 81  ;;  %s401_s18 = sand.u32 (%p5822_p3), 1, %s5699_s25  }
  0x1e   : > { %s5220_s19 = smul.u32 (%p5822_p3), 192, %s5707_s27 }
  0x1f   : > { %s5589_s20 = smul.u32 (%p5822_p3), 48, %s401_s18 }
  0x20   : > { %s5146_s23 = scalar_lea.vmem (%p5822_p3), %s9924_s1, %s5220_s19 }
  0x21   : > { %v5221_v12 = vld [vmem:[%s5146_s23 + $0x8] sm:$0xf] (%p5822_p3)  ;;  %v5222_v13 = vld [vmem:[%s5146_s23 + $0x18] sm:$0xf] (%p5822_p3)  ;;  %s403_s8 = scalar_lea.vmem (%p5822_p3), [#allocation4], %s5589_s20 }
  0x22   : > { %427 = vst [vmem:[%s403_s8] sm:$0xf] %v5221_v12  ;;  %v5223_v14 = vld [vmem:[%s5146_s23 + $0x28] sm:$0xf]  ;;  %v5224_v15 = vld [vmem:[%s5146_s23 + $0x38] sm:$0xf] }
  0x23   : > { %429 = vst [vmem:[%s403_s8 + $0x4] sm:$0xf] %v5222_v13  ;;  %v5225_v16 = vld [vmem:[%s5146_s23 + $0x48] sm:$0xf]  ;;  %v5226_v17 = vld [vmem:[%s5146_s23 + $0x58] sm:$0xf] }
  0x24   : > { %431 = vst [vmem:[%s403_s8 + $0x8] sm:$0xf] %v5223_v14  ;;  %v5227_v18 = vld [vmem:[%s5146_s23 + $0x68] sm:$0xf]  ;;  %v5228_v19 = vld [vmem:[%s5146_s23 + $0x78] sm:$0xf] }
  0x25   : > { %433 = vst [vmem:[%s403_s8 + $0xc] sm:$0xf] %v5224_v15  ;;  %v5229_v20 = vld [vmem:[%s5146_s23 + $0x88] sm:$0xf]  ;;  %v5230_v21 = vld [vmem:[%s5146_s23 + $0x98] sm:$0xf] }
  0x26   : > { %435 = vst [vmem:[%s403_s8 + $0x10] sm:$0xf] %v5225_v16  ;;  %v5231_v22 = vld [vmem:[%s5146_s23 + $0xa8] sm:$0xf]  ;;  %v5232_v23 = vld [vmem:[%s5146_s23 + $0xb8] sm:$0xf] }
  0x27   : > { %437 = vst [vmem:[%s403_s8 + $0x14] sm:$0xf] %v5226_v17 }
  0x28   : > { %439 = vst [vmem:[%s403_s8 + $0x18] sm:$0xf] %v5227_v18 }
  0x29   : > { %441 = vst [vmem:[%s403_s8 + $0x1c] sm:$0xf] %v5228_v19 }
  0x2a   : > { %443 = vst [vmem:[%s403_s8 + $0x20] sm:$0xf] %v5229_v20 }
  0x2b   : > { %445 = vst [vmem:[%s403_s8 + $0x24] sm:$0xf] %v5230_v21 }
  0x2c   : > { %447 = vst [vmem:[%s403_s8 + $0x28] sm:$0xf] %v5231_v22 }
  0x2d   : > { %449 = vst [vmem:[%s403_s8 + $0x2c] sm:$0xf] %v5232_v23 }
  0x2e PF: > { %p5233_p6 = scmp.ge.s32.totalorder %s5711_s28, 1  ;;  %p496_p7 = scmp.lt.s32.totalorder %s5711_s28, 3 }
  0x30   : > { %p497_p8 = pnand %p5233_p6, %p496_p7 }
  0x32   : > { %500 = sbr.rel (%p497_p8) target bundleno = 2502 (0x9c6), region = 122 }
  0x37   : > { %s503_s30 = sand.u32 1, %s5695_s24   ;;  %v5713_v24 = vmov 1983009808   ;;  %vm676_vm0 = vcmask 1047556   ;;  %v5714_v26 = vmov 1934713408  }
  0x38   : > { %s5590_s9 = smul.u32 96, %s503_s30  ;;  %v679_v25 = vunpack.c.l.s4 %v5713_v24  ;;  %v693_v27 = vunpack.c.l.s4 %v5714_v26  ;;  %s5715_s12 = smov 72   ;;  %vm9931_vm1 = vcmask 130048   ;;  %vm1027_vm2 = vcmask 277504  }
  0x39   : > { %s5716_s13 = smov 18   ;;  %s5717_s14 = smov 36   ;;  %vm1030_vm3 = vcmask 424960   ;;  %vm1033_vm4 = vcmask 572416   ;;  %vm1036_vm5 = vcmask 719872   ;;  %vm1039_vm6 = vcmask 867328  }
  0x3a   : > { %s5852_s11 = scalar_lea.vmem [#allocation3], %s5590_s9  ;;  %v5863_v38 = vunpack.c.0.s8 %v679_v25  ;;  %v5868_v45 = vunpack.c.0.s8 %v693_v27  ;;  %s5591_s15 = smul.u32 48, %s503_s30  ;;  %vm1045_vm7 = vcmask 113664   ;;  %vm1042_vm8 = vcmask 1014784  }
  0x3b   : > { %v563_v28 = vld [vmem:[%s5852_s11] sm:$0xf]  ;;  %v565_v29 = vld [vmem:[%s5852_s11 + $0x8] sm:$0xf]  ;;  %v567_v30 = vld [vmem:[%s5852_s11 + $0x10] sm:$0xf] }
  0x3c   : > { %v569_v31 = vld [vmem:[%s5852_s11 + $0x18] sm:$0xf]  ;;  %v571_v32 = vld [vmem:[%s5852_s11 + $0x20] sm:$0xf]  ;;  %v573_v33 = vld [vmem:[%s5852_s11 + $0x28] sm:$0xf]  ;;  %v589_v42 = vpack.i.b16 %v565_v29, %v563_v28 }
  0x3d   : > { %v575_v34 = vld [vmem:[%s5852_s11 + $0x30] sm:$0xf]  ;;  %v577_v35 = vld [vmem:[%s5852_s11 + $0x38] sm:$0xf]  ;;  %v579_v36 = vld [vmem:[%s5852_s11 + $0x40] sm:$0xf]  ;;  %v605_v37 = vpack.i.b16 %v573_v33, %v571_v32  ;;  %v597_v43 = vpack.i.b16 %v569_v31, %v567_v30 }
  0x3e   : > { %10064 = vst [vmem:[#allocation5_spill] sm:$0xff] %v5863_v38  ;;  %v581_v39 = vld [vmem:[%s5852_s11 + $0x48] sm:$0xf]  ;;  %v583_v40 = vld [vmem:[%s5852_s11 + $0x50] sm:$0xf]  ;;  %v613_v44 = vpack.i.b16 %v577_v35, %v575_v34  ;;  %v599_v46 = vshrl.u32 %v567_v30, 16 }
  0x3f   : > { %v585_v41 = vld [vmem:[%s5852_s11 + $0x58] sm:$0xf]  ;;  %10065 = vst [vmem:[#allocation6_spill] sm:$0xff] %v5868_v45  ;;  %v600_v47 = vshrl.u32 %v569_v31, 16  ;;  %v615_v48 = vshrl.u32 %v575_v34, 16  ;;  %v616_v49 = vshrl.u32 %v577_v35, 16  ;;  %v621_v50 = vpack.i.b16 %v581_v39, %v579_v36 }
  0x40   : > { %v627_v51 = vpack.i.b16 %v585_v41, %v583_v40  ;;  %v628_v52 = vshrl.u32 %v583_v40, 16  ;;  %v629_v53 = vshrl.u32 %v585_v41, 16  ;;  %v675_v54 = vrot.slane %v605_v37, 4  ;;  %v5887_v10 = vld [vmem:[%s5852_s11 + $0x4] sm:$0xf]  ;;  %s5718_s16 = smov 16  }
  0x41   : > { %v682_v55 = vrot.slane %v613_v44, 4  ;;  %v591_v56 = vshrl.u32 %v563_v28, 16  ;;  %v592_v57 = vshrl.u32 %v565_v29, 16  ;;  %v5871_v58 = vperm.slane %v621_v50, %v5863_v38  ;;  %v5890_v11 = vld [vmem:[%s5852_s11 + $0xc] sm:$0xf]  ;;  %s5719_s24 = smov 88  }
  0x42   : > { %v5874_v59 = vperm.slane %v627_v51, %v5863_v38  ;;  %v601_v60 = vpack.i.b16 %v600_v47, %v599_v46  ;;  %v607_v61 = vshrl.u32 %v571_v32, 16  ;;  %v677_v62 = vsel %vm676_vm0, %v675_v54, %v589_v42  ;;  %v5914_v28 = vld [vmem:[%s5852_s11 + $0x14] sm:$0xf]  ;;  %v5917_v29 = vld [vmem:[%s5852_s11 + $0x1c] sm:$0xf]  ;;  %s6066_s17 = scalar_lea.vmem [#allocation4], %s5591_s15 }
  0x43   : > { %v683_v63 = vsel %vm676_vm0, %v682_v55, %v597_v43  ;;  %v593_v0 = vpack.i.b16 %v592_v57, %v591_v56  ;;  %v608_v1 = vshrl.u32 %v573_v33, 16  ;;  %v5879_v2 = vperm.slane %v677_v62, %v5863_v38  ;;  %v5928_v34 = vld [vmem:[%s5852_s11 + $0x24] sm:$0xf]  ;;  %v5939_v40 = vld [vmem:[%s5852_s11 + $0x34] sm:$0xf]  ;;  %s5720_s18 = smov 52  }
  0x44   : > { %v5882_v3 = vperm.slane %v683_v63, %v5863_v38  ;;  %v742_v4 = vrot.slane %v5874_v59, 4  ;;  %v744_v5 = vrot.slane %v5871_v58, 4  ;;  %v617_v7 = vpack.i.b16 %v616_v49, %v615_v48  ;;  %v5947_v46 = vld [vmem:[%s5852_s11 + $0x3c] sm:$0xf]  ;;  %v5950_v47 = vld [vmem:[%s5852_s11 + $0x44] sm:$0xf] }
  0x45   : > { %v609_v6 = vpack.i.b16 %v608_v1, %v607_v61  ;;  %v622_v8 = vshrl.u32 %v579_v36, 16  ;;  %v623_v9 = vshrl.u32 %v581_v39, 16  ;;  %v690_v13 = vrot.slane %v5879_v2, 4  ;;  %v5936_v39 = vld [vmem:[%s5852_s11 + $0x2c] sm:$0xf]  ;;  %s5721_s19 = smov 54  }
  0x46   : > { %v688_v12 = vrot.slane %v5882_v3, 4  ;;  %v745_v14 = vsel %vm676_vm0, %v5874_v59, %v744_v5  ;;  %v630_v15 = vpack.i.b16 %v629_v53, %v628_v52  ;;  %v710_v19 = vrot.slane %v617_v7, 4  ;;  %v5957_v52 = vld [vmem:[%s5852_s11 + $0x4c] sm:$0xf]  ;;  %v5960_v53 = vld [vmem:[%s5852_s11 + $0x54] sm:$0xf] }
  0x47   : > { %v5897_v16 = vperm.slane %v745_v14, %v5868_v45  ;;  %v624_v17 = vpack.i.b16 %v623_v9, %v622_v8  ;;  %v704_v18 = vrot.slane %v609_v6, 4  ;;  %v691_v20 = vsel %vm676_vm0, %v5882_v3, %v690_v13  ;;  %v5964_v55 = vld [vmem:[%s5852_s11 + $0x5c] sm:$0xf]  ;;  %s5722_s20 = smov 90   ;;  %s5723_s21 = smov 126  }
  0x48   : > { %v5902_v21 = vperm.slane %v630_v15, %v5863_v38  ;;  %v633_v22 = vpack.i.b16 %v5890_v11, %v5887_v10  ;;  %v635_v23 = vshrl.u32 %v5887_v10, 16  ;;  %v5908_v24 = vperm.slane %v691_v20, %v5868_v45  ;;  %s5724_s22 = smov 34   ;;  %s5725_s23 = smov 70  }
  0x49   : > { %v756_v25 = vrot.slane %v5897_v16, 4  ;;  %v921_v26 = vunpack.c.l.b16 %v5897_v16  ;;  %v705_v27 = vsel %vm676_vm0, %v704_v18, %v593_v0  ;;  %v711_v31 = vsel %vm676_vm0, %v710_v19, %v601_v60  ;;  %s5726_s8 = smov 106   ;;  %s5728_s30 = smov 108  }
  0x4a   : > { %v5920_v30 = vperm.slane %v705_v27, %v5863_v38  ;;  %v5924_v32 = vperm.slane %v624_v17, %v5863_v38  ;;  %v768_v33 = vrot.slane %v5902_v21, 4  ;;  %v920_v35 = vunpack.c.l.b16 %v5908_v24  ;;  %s5729_s9 = smov 124   ;;  %s5730_s11 = smov 14  }
  0x4b   : > { %v702_v36 = vrot.slane %v5908_v24, 4  ;;  %v5933_v37 = vperm.slane %v711_v31, %v5863_v38  ;;  %v636_v41 = vshrl.u32 %v5890_v11, 16  ;;  %v641_v48 = vpack.i.b16 %v5917_v29, %v5914_v28  ;;  %s5750_s15 = smov 114   ;;  %p553_p9 = scmp.lt.s32.totalorder %s5703_s26, 1 }
  0x4c   : > { %v718_v42 = vrot.slane %v5920_v30, 4  ;;  %v769_v43 = vsel %vm676_vm0, %v768_v33, %v5924_v32  ;;  %v770_v44 = vrot.slane %v5924_v32, 4  ;;  %v922_v49 = vpack.c.b16 %v921_v26, %v920_v35 }
  0x4d   : > { %v716_v50 = vrot.slane %v5933_v37, 4  ;;  %v775_v51 = vperm.slane %v769_v43, %v5868_v45  ;;  %v643_v54 = vshrl.u32 %v5914_v28, 16  ;;  %v644_v56 = vshrl.u32 %v5917_v29, 16  ;;  %s10500_s26 = smov (!%p553_p9, %s5703_s26), 1 }
  0x4e   : > { %v649_v57 = vpack.i.b16 %v5936_v39, %v5928_v34  ;;  %v651_v60 = vshrl.u32 %v5928_v34, 16  ;;  %v652_v61 = vshrl.u32 %v5936_v39, 16  ;;  %923 = vrot.lane.b32.xlu1 %v922_v49, %s5715_s12  ;;  %v657_v1 = vpack.i.b16 %v5947_v46, %v5939_v40  ;;  %s5749_s12 = smov 4  }
  0x4f   : > { %v717_v62 = vsel %vm676_vm0, %v716_v50, %v5920_v30  ;;  %v780_v63 = vrot.slane %v775_v51, 4  ;;  %v900_v0 = vunpack.c.l.b16 %v775_v51  ;;  %v659_v6 = vshrl.u32 %v5939_v40, 16 }
  0x50   : > { %v723_v5 = vperm.slane %v717_v62, %v5868_v45  ;;  %v660_v7 = vshrl.u32 %v5947_v46, 16  ;;  %v665_v8 = vpack.i.b16 %v5957_v52, %v5950_v47  ;;  %v666_v9 = vshrl.u32 %v5950_v47, 16 }
  0x51   : > { %v667_v13 = vshrl.u32 %v5957_v52, 16  ;;  %v671_v14 = vpack.i.b16 %v5964_v55, %v5960_v53  ;;  %v672_v15 = vshrl.u32 %v5960_v53, 16  ;;  %v673_v19 = vshrl.u32 %v5964_v55, 16 }
  0x52   : > { %v899_v17 = vunpack.c.l.b16 %v723_v5  ;;  %v728_v18 = vrot.slane %v723_v5, 4  ;;  %v784_v20 = vrot.slane %v649_v57, 4  ;;  %v790_v26 = vrot.slane %v657_v1, 4 }
  0x53   : > { %v844_v27 = vperm.slane %v665_v8, %v5863_v38  ;;  %v849_v31 = vperm.slane %v671_v14, %v5863_v38  ;;  %v689_v33 = vsel %vm676_vm0, %v688_v12, %v5879_v2  ;;  %v743_v50 = vsel %vm676_vm0, %v742_v4, %v5871_v58 }
  0x54   : > { %v901_v35 = vpack.c.b16 %v900_v0, %v899_v17  ;;  %v785_v43 = vsel %vm676_vm0, %v784_v20, %v633_v22  ;;  %v5994_v49 = vperm.slane %v689_v33, %v5868_v45  ;;  %v791_v57 = vsel %vm676_vm0, %v790_v26, %v641_v48 }
  0x55   : > { %v789_v51 = vperm.slane %v785_v43, %v5863_v38  ;;  %v850_v62 = vrot.slane %v849_v31, 4  ;;  %v6003_v3 = vperm.slane %v743_v50, %v5868_v45  ;;  %v795_v2 = vperm.slane %v791_v57, %v5863_v38 }
  0x56   : > { %902 = vrot.lane.b32.xlu0 %v901_v35, %s5716_s13  ;;  %v700_v12 = vrot.slane %v5994_v49, 4  ;;  %v729_v22 = vsel %vm676_vm0, 0, %v728_v18  ;;  %v781_v59 = vsel %vm676_vm0, 0, %v780_v63  ;;  %v852_v18 = vrot.slane %v844_v27, 4 }
  0x57   : > { %v851_v58 = vsel %vm676_vm0, %v850_v62, %v844_v27  ;;  %v754_v4 = vrot.slane %v6003_v3, 4  ;;  %v913_v48 = vunpack.c.l.b16 %v729_v22  ;;  %v914_v0 = vunpack.c.l.b16 %v781_v59 }
  0x58   : > { %v796_v1 = vrot.slane %v795_v2, 4  ;;  %v857_v5 = vperm.slane %v851_v58, %v5868_v45  ;;  %v701_v8 = vsel %vm676_vm0, 0, %v700_v12  ;;  %v798_v14 = vrot.slane %v789_v51, 4 }
  0x59   : > { %v755_v17 = vsel %vm676_vm0, 0, %v754_v4  ;;  %v906_v20 = vunpack.c.l.b16 %v701_v8  ;;  %v6015_v26 = vpack.c.b16 %v914_v0, %v913_v48  ;;  %v853_v62 = vsel %vm676_vm0, %v849_v31, %v852_v18 }
  0x5a   : > { %v797_v63 = vsel %vm676_vm0, %v796_v1, %v789_v51  ;;  %v949_v33 = vunpack.c.l.b16 %v857_v5  ;;  %v907_v35 = vunpack.c.l.b16 %v755_v17  ;;  %v862_v43 = vrot.slane %v857_v5, 4 }
  0x5b   : > { %v803_v50 = vperm.slane %v797_v63, %v5868_v45  ;;  %v799_v57 = vsel %vm676_vm0, %v795_v2, %v798_v14  ;;  %v719_v12 = vsel %vm676_vm0, %v5933_v37, %v718_v42  ;;  %v861_v51 = vperm.slane %v853_v62, %v5868_v45 }
  0x5c   : > { %v908_v22 = vpack.c.b16 %v907_v35, %v906_v20  ;;  %v863_v59 = vsel %vm676_vm0, 0, %v862_v43  ;;  %v807_v27 = vperm.slane %v799_v57, %v5868_v45  ;;  %v727_v2 = vperm.slane %v719_v12, %v5868_v45 }
  0x5d   : > { %v948_v58 = vunpack.c.l.b16 %v803_v50  ;;  %v808_v4 = vrot.slane %v803_v50, 4  ;;  %v963_v48 = vunpack.c.l.b16 %v863_v59  ;;  %v864_v30 = vrot.slane %v861_v51, 4  ;;  %v1050_v59 = vld [vmem:[%s6066_s17 + $0x8] sm:$0xf] }
  0x5e   : > { %909 = vrot.lane.b32.xlu0 %v908_v22, %s5717_s14  ;;  %v976_v31 = vunpack.c.l.b16 %v807_v27  ;;  %v977_v0 = vunpack.c.l.b16 %v861_v51  ;;  %v810_v37 = vrot.slane %v807_v27, 4  ;;  %v730_v5 = vrot.slane %v727_v2, 4  ;;  %v1049_v51 = vld [vmem:[%s6066_s17 + $0x4] sm:$0xf] }
  0x5f   : > { %v950_v42 = vpack.c.b16 %v949_v33, %v948_v58  ;;  %v809_v1 = vsel %vm676_vm0, 0, %v808_v4  ;;  %v771_v8 = vsel %vm676_vm0, %v5902_v21, %v770_v44  ;;  %v927_v18 = vunpack.c.l.b16 %v727_v2 }
  0x60   : > { %v962_v14 = vunpack.c.l.b16 %v809_v1  ;;  %v978_v17 = vpack.c.b16 %v977_v0, %v976_v31  ;;  %v779_v20 = vperm.slane %v771_v8, %v5868_v45  ;;  %v731_v63 = vsel %vm676_vm0, 0, %v730_v5  ;;  %v1097_v8 = vld [vmem:[%s6066_s17 + $0x28] sm:$0xf] }
  0x61   : > { %951 = vrot.lane.b32.xlu1 %v950_v42, %s5718_s16  ;;  %v637_v33 = vpack.i.b16 %v636_v41, %v635_v23  ;;  %v645_v21 = vpack.i.b16 %v644_v56, %v643_v54  ;;  %v653_v32 = vpack.i.b16 %v652_v61, %v651_v60  ;;  %v941_v43 = vunpack.c.l.b16 %v731_v63  ;;  %v1052_v41 = vld [vmem:[%s6066_s17 + $0x10] sm:$0xf]  ;;  %v1048_v61 = vld [vmem:[%s6066_s17] sm:$0xf]  ;;  %v1055_v42 = vld [vmem:[%s6066_s17 + $0x1c] sm:$0xf] }
  0x62   : > { %v964_v44 = vpack.c.b16 %v963_v48, %v962_v14  ;;  %979 = vrot.lane.b32.xlu2 %v978_v17, %s5719_s24  ;;  %v782_v35 = vrot.slane %v779_v20, 4  ;;  %v928_v50 = vunpack.c.l.b16 %v779_v20  ;;  %v661_v10 = vpack.i.b16 %v660_v7, %v659_v6  ;;  %v1053_v6 = vld [vmem:[%s6066_s17 + $0x14] sm:$0xf]  ;;  %v1054_v7 = vld [vmem:[%s6066_s17 + $0x18] sm:$0xf]  ;;  %s5731_s24 = smov 1  }
  0x63   : > { %v668_v11 = vpack.i.b16 %v667_v13, %v666_v9  ;;  %v674_v23 = vpack.i.b16 %v673_v19, %v672_v15  ;;  %v812_v28 = vrot.slane %v653_v32, 4  ;;  %v811_v39 = vsel %vm676_vm0, 0, %v810_v37  ;;  %s5743_s16 = smov 112  }
  0x64   : > { %v783_v29 = vsel %vm676_vm0, 0, %v782_v35  ;;  %v929_v34 = vpack.c.b16 %v928_v50, %v927_v18  ;;  %v865_v40 = vsel %vm676_vm0, 0, %v864_v30  ;;  %v818_v52 = vrot.slane %v661_v10, 4  ;;  %v1096_v35 = vld [vmem:[%s6066_s17 + $0x20] sm:$0xf] }
  0x65   : > { %v942_v46 = vunpack.c.l.b16 %v783_v29  ;;  %v813_v47 = vsel %vm676_vm0, %v812_v28, %v637_v33  ;;  %v870_v53 = vperm.slane %v668_v11, %v5863_v38  ;;  %v875_v55 = vperm.slane %v674_v23, %v5863_v38 }
  0x66   : > { %965 = vrot.lane.b32.xlu0 %v964_v44, %s5720_s18  ;;  %v817_v54 = vperm.slane %v813_v47, %v5863_v38  ;;  %v990_v56 = vunpack.c.l.b16 %v811_v39  ;;  %v991_v60 = vunpack.c.l.b16 %v865_v40  ;;  %v819_v13 = vsel %vm676_vm0, %v818_v52, %v645_v21  ;;  %v1051_v44 = vld [vmem:[%s6066_s17 + $0xc] sm:$0xf]  ;;  %s5733_s18 = smov 109  }
  0x67   : > { %v943_v9 = vpack.c.b16 %v942_v46, %v941_v43  ;;  %v878_v15 = vrot.slane %v870_v53, 4  ;;  %v1056_v19 = vrot.slane %v1052_v41, 4  ;;  %v823_v57 = vperm.slane %v819_v13, %v5863_v38  ;;  %v1107_v39 = vld [vmem:[%s6066_s17 + $0x2c] sm:$0xf] }
  0x68   : > { %v876_v62 = vrot.slane %v875_v55, 4  ;;  %v826_v12 = vrot.slane %v817_v54, 4  ;;  %v6078_v22 = vpack.c.b16 %v991_v60, %v990_v56  ;;  %v1062_v4 = vrot.slane %v1054_v7, 4  ;;  %v1106_v56 = vld [vmem:[%s6066_s17 + $0x24] sm:$0xf]  ;;  %s5732_s17 = smov 33  }
  0x69   : > { %916 = vrot.lane.b32.xlu1 %v6015_v26, %s5721_s19  ;;  %v879_v27 = vsel %vm676_vm0, %v875_v55, %v878_v15  ;;  %v1057_v58 = vsel %vm676_vm0, %v1056_v19, %v1048_v61  ;;  %v1076_v48 = vrot.slane %v1053_v6, 4  ;;  %v824_v2 = vrot.slane %v823_v57, 4 }
  0x6a   : > { %930 = vrot.lane.b32.xlu2 %v929_v34, %s5722_s20  ;;  %v877_v30 = vsel %vm676_vm0, %v876_v62, %v870_v53  ;;  %v827_v31 = vsel %vm676_vm0, %v823_v57, %v826_v12  ;;  %v6090_v0 = vperm.slane %v879_v27, %v5868_v45  ;;  %v1061_v1 = vperm.slane %v1057_v58, %v5863_v38 }
  0x6b   : > { %v883_v26 = vperm.slane %v877_v30, %v5868_v45  ;;  %v6094_v37 = vperm.slane %v827_v31, %v5868_v45  ;;  %v1063_v5 = vsel %vm676_vm0, %v1062_v4, %v1050_v59  ;;  %v825_v14 = vsel %vm676_vm0, %v824_v2, %v817_v54 }
  0x6c   : > { %v984_v17 = vunpack.c.l.b16 %v6090_v0  ;;  %v1067_v20 = vperm.slane %v1063_v5, %v5863_v38  ;;  %v1077_v18 = vsel %vm676_vm0, %v1076_v48, %v1049_v51  ;;  %v831_v63 = vperm.slane %v825_v14, %v5868_v45 }
  0x6d   : > { %v888_v33 = vrot.slane %v883_v26, 4  ;;  %v983_v21 = vunpack.c.l.b16 %v6094_v37  ;;  %v956_v32 = vunpack.c.l.b16 %v883_v26  ;;  %v1081_v50 = vperm.slane %v1077_v18, %v5863_v38 }
  0x6e   : > { %944 = vrot.lane.b32.xlu0 %v943_v9, %s5723_s21  ;;  %v1068_v43 = vrot.slane %v1067_v20, 4  ;;  %v1082_v10 = vrot.slane %v1055_v42, 4  ;;  %v1098_v11 = vrot.slane %v1097_v8, 4  ;;  %v836_v23 = vrot.slane %v831_v63, 4 }
  0x6f   : > { %v889_v28 = vsel %vm676_vm0, 0, %v888_v33  ;;  %v985_v29 = vpack.c.b16 %v984_v17, %v983_v21  ;;  %v955_v34 = vunpack.c.l.b16 %v831_v63  ;;  %v1108_v6 = vrot.slane %v1107_v39, 4 }
  0x70   : > { %v970_v40 = vunpack.c.l.b16 %v889_v28  ;;  %v1069_v41 = vsel %vm676_vm0, %v1068_v43, %v1061_v1  ;;  %v1083_v46 = vsel %vm676_vm0, %v1082_v10, %v1051_v44  ;;  %v1099_v47 = vsel %vm676_vm0, %v1098_v11, %v1096_v35 }
  0x71   : > { %v837_v52 = vsel %vm676_vm0, 0, %v836_v23  ;;  %v957_v53 = vpack.c.b16 %v956_v32, %v955_v34  ;;  %v6117_v54 = vperm.slane %v1069_v41, %v5868_v45  ;;  %v1087_v55 = vperm.slane %v1083_v46, %v5863_v38  ;;  %v1348_v41 = vld [vmem:[%s9926_s3 + $0x10] sm:$0xff] }
  0x72   : > { %v969_v60 = vunpack.c.l.b16 %v837_v52  ;;  %v6122_v61 = vperm.slane %v1099_v47, %v5868_v45  ;;  %v703_v7 = vsel %vm676_vm0, 0, %v702_v36  ;;  %v757_v19 = vsel %vm676_vm0, 0, %v756_v25  ;;  %v1346_v47 = vld [vmem:[%s9926_s3] sm:$0xff]  ;;  %v1353_v52 = vld [vmem:[%s9926_s3 + $0x38] sm:$0xff] }
  0x73   : > { %958 = vrot.lane.b32.xlu2 %v957_v53, %s5724_s22  ;;  %v1088_v9 = vrot.slane %v1087_v55, 4  ;;  %v1119_v13 = vshrl.u32 %v6117_v54, 16  ;;  %v1074_v15 = vrot.slane %v6117_v54, 4  ;;  %v1109_v62 = vsel %vm676_vm0, %v1108_v6, %v1106_v56  ;;  %v1347_v53 = vld [vmem:[%s9926_s3 + $0x8] sm:$0xff]  ;;  %v1349_v55 = vld [vmem:[%s9926_s3 + $0x18] sm:$0xff]  ;;  %v1356_v56 = vld [vmem:[%s9926_s3 + $0x50] sm:$0xff] }
  0x74   : > { %v971_v57 = vpack.c.b16 %v970_v40, %v969_v60  ;;  %v1131_v12 = vshrl.u32 %v6122_v61, 16  ;;  %v1104_v24 = vrot.slane %v6122_v61, 4  ;;  %v6137_v59 = vperm.slane %v1109_v62, %v5868_v45  ;;  %v1350_v60 = vld [vmem:[%s9926_s3 + $0x20] sm:$0xff]  ;;  %v1351_v6 = vld [vmem:[%s9926_s3 + $0x28] sm:$0xff]  ;;  %v1796_v62 = vld [vmem:[%s9929_s6 + $0x10] sm:$0xff]  ;;  %s5734_s22 = smov 127  }
  0x75   : > { %v1089_v36 = vsel %vm676_vm0, %v1088_v9, %v1081_v50  ;;  %v1075_v27 = vsel %vm676_vm0, 0, %v1074_v15  ;;  %v934_v51 = vunpack.c.l.b16 %v703_v7  ;;  %v935_v58 = vunpack.c.l.b16 %v757_v19  ;;  %v1795_v7 = vld [vmem:[%s9929_s6 + $0x8] sm:$0xff]  ;;  %v1352_v9 = vld [vmem:[%s9926_s3 + $0x30] sm:$0xff]  ;;  %v1357_v19 = vld [vmem:[%s9926_s3 + $0x58] sm:$0xff] }
  0x76   : > { %972 = vrot.lane.b32.xlu1 %v971_v57, %s5725_s23  ;;  %986 = vrot.lane.b32.xlu0 %v985_v29, %s5726_s8  ;;  %v6141_v16 = vperm.slane %v1089_v36, %v5868_v45  ;;  %v1105_v25 = vsel %vm676_vm0, 0, %v1104_v24  ;;  %v838_v4 = vrot.slane %v6094_v37, 4  ;;  %v1132_v48 = vshrl.u32 %v6137_v59, 16  ;;  %v1355_v15 = vld [vmem:[%s9926_s3 + $0x48] sm:$0xff]  ;;  %v1794_v57 = vld [vmem:[%s9929_s6] sm:$0xff]  ;;  %s5736_s23 = smov 92  }
  0x77   : > { %v1114_v2 = vrot.slane %v6137_v59, 4  ;;  %v890_v30 = vrot.slane %v6090_v0, 4  ;;  %v936_v42 = vpack.c.b16 %v935_v58, %v934_v51  ;;  %v5727_v5 = vmov 0   ;;  %s5737_s8 = smov 91  }
  0x78   : > { %v1120_v31 = vshrl.u32 %v6141_v16, 16  ;;  %v1094_v26 = vrot.slane %v6141_v16, 4  ;;  %v839_v1 = vsel %vm676_vm0, 0, %v838_v4  ;;  %5670 = vset.pattern.permute.xlu1 %v5727_v5  ;;  %1721 = vst [vmem:[#allocation2] sm:$0xf] %v5727_v5  ;;  %5671 = vset.pattern.permute.xlu2 %v5727_v5  ;;  %v1133_v37 = vpack.i.b16 %v1132_v48, %v1131_v12  ;;  %v1797_v12 = vld [vmem:[%s9929_s6 + $0x18] sm:$0xff] }
  0x79   : > { %v1115_v8 = vsel %vm676_vm0, 0, %v1114_v2  ;;  %v891_v14 = vsel %vm676_vm0, 0, %v890_v30  ;;  %v997_v0 = vunpack.c.l.b16 %v839_v1  ;;  %1722 = vst [vmem:[#allocation2 + $0x14] sm:$0xf] %v5727_v5  ;;  %5672 = vset.pattern.permute.xlu0 %v5727_v5  ;;  %v1125_v32 = vshrl.u32 %v1075_v27, 16 }
  0x7a   : > { %v1121_v17 = vpack.i.b16 %v1120_v31, %v1119_v13  ;;  %v1095_v20 = vsel %vm676_vm0, 0, %v1094_v26  ;;  %v1136_v18 = vpack.i.b16 %v1115_v8, %v1105_v25  ;;  %v998_v63 = vunpack.c.l.b16 %v891_v14  ;;  %1723 = vst [vmem:[#allocation2 + $0x28] sm:$0xf] %v5727_v5  ;;  %v1354_v13 = vld [vmem:[%s9926_s3 + $0x40] sm:$0xff] }
  0x7b   : > { %v1144_v33 = vunpack.c.l.b16 %v1133_v37  ;;  %v1124_v21 = vpack.i.b16 %v1095_v20, %v1075_v27  ;;  %937 = vrot.lane.b32.xlu2 %v936_v42, %s5728_s30  ;;  %1724 = vst [vmem:[#allocation2 + $0x3c] sm:$0xf] %v5727_v5  ;;  %v1126_v44 = vshrl.u32 %v1095_v20, 16  ;;  %v1137_v43 = vshrl.u32 %v1105_v25, 16 }
  0x7c   : > { %v1143_v35 = vunpack.c.l.b16 %v1121_v17  ;;  %1725 = vst [vmem:[#allocation2 + $0x50] sm:$0xf] %v5727_v5  ;;  %v1138_v50 = vshrl.u32 %v1115_v8, 16  ;;  %v1149_v23 = vunpack.c.l.b16 %v1136_v18  ;;  %v999_v28 = vpack.c.b16 %v998_v63, %v997_v0 }
  0x7d   : > { %1726 = vst [vmem:[#allocation2 + $0x64] sm:$0xf] %v5727_v5  ;;  %v1148_v11 = vunpack.c.l.b16 %v1124_v21  ;;  %v1127_v29 = vpack.i.b16 %v1126_v44, %v1125_v32  ;;  %vm1002_vm9 = vcmask 146432   ;;  %vm1006_vm10 = vcmask 293888  }
  0x7e   : > { %993 = vrot.lane.b32.xlu1 %v6078_v22, %s5729_s9  ;;  %v1145_v10 = vpack.c.b16 %v1144_v33, %v1143_v35  ;;  %1727 = vst [vmem:[#allocation2 + $0x78] sm:$0xf] %v5727_v5  ;;  %v1139_v34 = vpack.i.b16 %v1138_v50, %v1137_v43  ;;  %vm1009_vm11 = vcmask 441344   ;;  %vm1012_vm12 = vcmask 588800   ;;  %s5745_s9 = smov 76  }
  0x7f   : > { %1728 = vst [vmem:[#allocation2 + $0x8c] sm:$0xf] %v5727_v5  ;;  %v1150_v39 = vpack.c.b16 %v1149_v23, %v1148_v11  ;;  %v1153_v22 = vunpack.c.l.b16 %v1127_v29  ;;  %v5280_v1 = vld [vmem:[#allocation2] sm:$0xf]  ;;  %vm1015_vm13 = vcmask 736256   ;;  %vm1018_vm14 = vcmask 883712  }
  0x80   : > { %1146 = vrot.lane.b32.xlu0 %v1145_v10, %s5716_s13  ;;  %1729 = vst [vmem:[#allocation2 + $0xa0] sm:$0xf] %v5727_v5  ;;  %v1154_v40 = vunpack.c.l.b16 %v1139_v34  ;;  %v5533_v37 = vld [vmem:[#allocation2 + $0x10] sm:$0xf0]  ;;  %vm1021_vm15 = vcmask 1031168   ;;  %s5510_s13 = sshll.u32 %s10500_s26, 9 }
  0x81   : > { %1730 = vst [vmem:[#allocation2 + $0xb4] sm:$0xf] %v5727_v5  ;;  %v5296_v24 = vld [vmem:[#allocation2 + $0x28] sm:$0xf]  ;;  %v5281_v14 = vor.u32 %v5533_v37, %v5280_v1 }
  0x82   : > { %1731 = vst [vmem:[#allocation2 + $0xc8] sm:$0xf] %v5727_v5  ;;  %v1155_v46 = vpack.c.b16 %v1154_v40, %v1153_v22  ;;  %v5537_v36 = vld [vmem:[#allocation2 + $0x38] sm:$0xf0]  ;;  %v1130_v22 = vpack.i.b16 %v6137_v59, %v6122_v61  ;;  %v895_v40 = vunpack.c.l.b16 %v6003_v3 }
  0x83   : > { %1000 = vrot.lane.b32.xlu2 %v999_v28, %s5730_s11  ;;  %1732 = vst [vmem:[#allocation2 + $0xdc] sm:$0xf] %v5727_v5  ;;  %v5312_v27 = vld [vmem:[#allocation2 + $0x50] sm:$0xf]  ;;  %v5297_v51 = vor.u32 %v5537_v36, %v5296_v24  ;;  %s5747_s11 = smov 40  }
  0x84   : > { %v5541_v25 = vld [vmem:[#allocation2 + $0x60] sm:$0xf0] }
  0x85   : > { %v5313_v58 = vor.u32 %v5541_v25, %v5312_v27  ;;  %v5328_v20 = vld [vmem:[#allocation2 + $0x78] sm:$0xf] }
  0x86   : > { %1151 = vrot.lane.b32.xlu1 %v1150_v39, %s5717_s14  ;;  %v5545_v18 = vld [vmem:[#allocation2 + $0x88] sm:$0xf0]  ;;  %v1118_v39 = vpack.i.b16 %v6141_v16, %v6117_v54  ;;  %s5735_s14 = smov 110  }
  0x87   : > { %v5344_v48 = vld [vmem:[#allocation2 + $0xa0] sm:$0xf]  ;;  %v5329_v33 = vor.u32 %v5545_v18, %v5328_v20 }
  0x88   : > { %1370 = vperm.xlu0 %5672, %v1348_v41   ;;  %v5549_v2 = vld [vmem:[#allocation2 + $0xb0] sm:$0xf0]  ;;  %v894_v41 = vunpack.c.l.b16 %v5994_v49 }
  0x89   : > { %v5360_v30 = vld [vmem:[#allocation2 + $0xc8] sm:$0xf]  ;;  %v5345_v26 = vor.u32 %v5549_v2, %v5344_v48 }
  0x8a   : > { %v5553_v42 = vld [vmem:[#allocation2 + $0xd8] sm:$0xf0] }
  0x8b   : > { %1156 = vrot.lane.b32.xlu2 %v1155_v46, %s5721_s19  ;;  %v5361_v8 = vor.u32 %v5553_v42, %v5360_v30  ;;  %s5746_s19 = smov 58  }
  0x8e   : > { %1360 = vperm.xlu1 %5670, %v1346_v47  }
  0x90   : > { %1395 = vperm.xlu0 %5672, %v1353_v52  }
  0x93   : > { %1365 = vperm.xlu2 %5671, %v1347_v53   ;;  %v1140_v53 = vunpack.c.l.b16 %v1118_v39 }
  0x96   : > { %1375 = vperm.xlu1 %5670, %v1349_v55   ;;  %v1141_v55 = vunpack.c.l.b16 %v1130_v22 }
  0x98   : > { %1410 = vperm.xlu0 %5672, %v1356_v56   ;;  %v1142_v54 = vpack.c.b16 %v1141_v55, %v1140_v53 }
  0x9b   : > { %1380 = vperm.xlu2 %5671, %v1350_v60  }
  0x9e   : > { %1385 = vperm.xlu1 %5670, %v1351_v6  }
  0xa0   : > { %2411 = vperm.xlu0 %5672, %v1795_v7   ;;  %v896_v7 = vpack.c.b16 %v895_v40, %v894_v41 }
  0xa3   : > { %1390 = vperm.xlu2 %5671, %v1352_v9  }
  0xa6   : > { %1400 = vperm.xlu1 %5670, %v1354_v13  }
  0xa8   : > { %2494 = vrot.lane.b32.xlu0 %v5281_v14, %s5731_s24 }
  0xab   : > { %1405 = vperm.xlu2 %5671, %v1355_v15  }
  0xae   : > { %1415 = vperm.xlu1 %5670, %v1357_v19  }
  0xb0   : > { %2518 = vrot.lane.b32.xlu0 %v5329_v33, %s5731_s24 }
  0xb3   : > { %2406 = vperm.xlu2 %5671, %v1794_v57  }
  0xb6   : > { %2416 = vperm.xlu1 %5670, %v1796_v62  }
  0xbb   : > { %2421 = vperm.xlu2 %5671, %v1797_v12  }
  0xbc   : > { %v980_v4 = vpop.permute.xlu2 %979 }
  0xbe   : > { %2502 = vrot.lane.b32.xlu1 %v5297_v51, %s5731_s24 }
  0xc0   : > { %v924_v0 = vpop.permute.xlu1 %923 }
  0xc3   : > { %2510 = vrot.lane.b32.xlu2 %v5313_v58, %s5731_s24 }
  0xc4   : > { %v931_v63 = vpop.permute.xlu2 %930 }
  0xc6   : > { %2526 = vrot.lane.b32.xlu1 %v5345_v26, %s5731_s24 }
  0xc8   : > { %v903_v31 = vpop.permute.xlu0 %902 }
  0xc9   : > { %v1005_v49 = vsel %vm1002_vm9, %v896_v7, %v903_v31 }
  0xcb   : > { %2534 = vrot.lane.b32.xlu2 %v5361_v8, %s5731_s24 }
  0xcd   : > { %v959_v44 = vpop.permute.xlu2 %958 }
  0xd0   : > { %v910_v17 = vpop.permute.xlu0 %909 }
  0xd1   : > { %v1008_v59 = vsel %vm1006_vm10, %v1005_v49, %v910_v17 }
  0xd3   : > { %v952_v21 = vpop.permute.xlu1 %951 }
  0xd5   : > { %v938_v11 = vpop.permute.xlu2 %937 }
  0xd8   : > { %v966_v32 = vpop.permute.xlu0 %965 }
  0xdb   : > { %v917_v35 = vpop.permute.xlu1 %916 }
  0xdc   : > { %v1011_v9 = vsel %vm1009_vm11, %v1008_v59, %v917_v35 }
  0xdd   : > { %v1001_v47 = vpop.permute.xlu2 %1000  ;;  %v1014_v57 = vsel %vm1012_vm12, %v1011_v9, %v924_v0  ;;  %vm1201_vm12 = vcmask 1039360  }
  0xde   : > { %v1017_v62 = vsel %vm1015_vm13, %v1014_v57, %v931_v63 }
  0xdf   : > { %v1020_v12 = vsel %vm1018_vm14, %v1017_v62, %v938_v11 }
  0xe0   : > { %v945_v43 = vpop.permute.xlu0 %944 }
  0xe1   : > { %v1026_v50 = vsel %vm9931_vm1, %v945_v43, %v952_v21  ;;  %v1023_v24 = vsel %vm1021_vm15, %v1020_v12, %v945_v43  ;;  %vm1752_vm1 = vcmask 142336  }
  0xe2   : > { %v1029_v10 = vsel %vm1027_vm2, %v1026_v50, %v959_v44  ;;  %vm1174_vm2 = vcmask 7168  }
  0xe3   : > { %v1032_v23 = vsel %vm1030_vm3, %v1029_v10, %v966_v32  ;;  %vm1184_vm3 = vcmask 269312  }
  0xe5   : > { %v1157_v16 = vpop.permute.xlu2 %1156 }
  0xe8   : > { %v973_v28 = vpop.permute.xlu1 %972  ;;  %v987_v29 = vpop.permute.xlu0 %986 }
  0xe9   : > { %v1035_v34 = vsel %vm1033_vm4, %v1032_v23, %v973_v28  ;;  %vm1188_vm4 = vcmask 859136  }
  0xea   : > { %v1038_v46 = vsel %vm1036_vm5, %v1035_v34, %v980_v4  ;;  %vm1273_vm5 = vcmask 1045504  }
  0xeb   : > { %v1041_v52 = vsel %vm1039_vm6, %v1038_v46, %v987_v29  ;;  %vm1252_vm6 = vcmask 752640  }
  0xed   : > { %v6243_v27 = vpop.permute.xlu2 %1365 }
  0xf0   : > { %v994_v56 = vpop.permute.xlu1 %993 }
  0xf1   : > { %v1047_v60 = vsel %vm1045_vm7, %v994_v56, %v1001_v47  ;;  %v1044_v6 = vsel %vm1042_vm8, %v1041_v52, %v994_v56  ;;  %vm1261_vm7 = vcmask 744448   ;;  %vm1294_vm8 = vcmask 1041408  }
  0xf2   : > { %1172 = vrot.lane.b32.xlu2 %v1047_v60, %s5731_s24  ;;  %1170 = vrot.lane.b32.xlu1 %v1044_v6, %s5731_s24  ;;  %v1147_v3 = vpop.permute.xlu0 %1146 }
  0xf3   : > { %v1160_v61 = vsel %vm1002_vm9, %v1142_v54, %v1147_v3  ;;  %vm1284_vm9 = vcmask 1043456  }
  0xf5   : > { %v6247_v25 = vpop.permute.xlu2 %1380 }
  0xf8   : > { %v1152_v13 = vpop.permute.xlu1 %1151 }
  0xf9   : > { %v1162_v15 = vsel %vm1006_vm10, %v1160_v61, %v1152_v13  ;;  %vm1234_vm10 = vcmask 891904  }
  0xfa   : > { %v1164_v19 = vsel %vm1009_vm11, %v1162_v15, %v1157_v16  ;;  %v6253_v48 = vpop.permute.xlu0 %1370  ;;  %vm1225_vm11 = vcmask 900096  }
  0xfb   : > { %1178 = vrot.lane.b32.xlu0 %v1164_v19, %s5732_s17  ;;  %s5744_s17 = smov 94  }
  0xfd   : > { %v6251_v4 = vpop.permute.xlu2 %1390 }
 0x100   : > { %v6241_v36 = vpop.permute.xlu1 %1360 }
 0x102   : > { %v6259_v31 = vpop.permute.xlu0 %1395 }
 0x103   : > { %1168 = vrot.lane.b32.xlu0 %v1023_v24, %s5731_s24 }
 0x105   : > { %v6257_v30 = vpop.permute.xlu2 %1405 }
 0x108   : > { %v6245_v51 = vpop.permute.xlu1 %1375 }
 0x10a   : > { %v6265_v1 = vpop.permute.xlu0 %1410 }
 0x10d   : > { %v6263_v42 = vpop.permute.xlu2 %2406 }
 0x10e   : > { %10066 = vst [vmem:[#allocation7_spill] sm:$0xff] %v6263_v42 }
 0x110   : > { %v6249_v58 = vpop.permute.xlu1 %1385 }
 0x112   : > { %v6271_v14 = vpop.permute.xlu0 %2411 }
 0x113   : > { %10069 = vst [vmem:[#allocation10_spill] sm:$0xff] %v6271_v14 }
 0x115   : > { %v6269_v8 = vpop.permute.xlu2 %2421 }
 0x116   : > { %10068 = vst [vmem:[#allocation9_spill] sm:$0xff] %v6269_v8 }
 0x118   : > { %v6255_v2 = vpop.permute.xlu1 %1400 }
 0x11a   : > { %v6277_v20 = vpop.permute.xlu0 %2494 }
 0x11b   : > { %10070 = vst [vmem:[#allocation11_spill] sm:$0xff] %v6277_v20 }
 0x11d   : > { %v6275_v17 = vpop.permute.xlu2 %2510 }
 0x120   : > { %v6261_v26 = vpop.permute.xlu1 %1415 }
 0x122   : > { %v6283_v33 = vpop.permute.xlu0 %2518 }
 0x125   : > { %v6281_v63 = vpop.permute.xlu2 %2534 }
 0x128   : > { %v6267_v37 = vpop.permute.xlu1 %2416 }
 0x129   : > { %10067 = vst [vmem:[#allocation8_spill] sm:$0xff] %v6267_v37 }
 0x130   : > { %v6273_v0 = vpop.permute.xlu1 %2502 }
 0x138   : > { %v6279_v18 = vpop.permute.xlu1 %2526 }
 0x14c   : > { %v1173_v32 = vpop.permute.xlu2 %1172 }
 0x164   : > { %v1171_v21 = vpop.permute.xlu1 %1170 }
 0x165   : > { %v1176_v44 = vsel %vm1174_vm2, %v1171_v21, %v1173_v32 }
 0x16d   : > { %v1179_v35 = vpop.permute.xlu0 %1178 }
 0x16e   : > { %v1187_v43 = vsel %vm1184_vm3, %v1176_v44, %v1179_v35  ;;  %vm1733_vm3 = vcmask 1044000  }
 0x16f   : > { %v6286_v50 = vsel %vm1188_vm4, %v1187_v43, 0  ;;  %vm1734_vm4 = vcmask 556036  }
 0x170   : > { %1232 = vrot.lane.b32.xlu0 %v6286_v50, %s5733_s18  ;;  %v1194_v28 = vrot.slane %v6286_v50, 2  ;;  %v1206_v39 = vrot.slane %v6286_v50, 4  ;;  %v1218_v41 = vrot.slane %v6286_v50, 6 }
 0x175   : > { %v1169_v10 = vpop.permute.xlu0 %1168 }
 0x176   : > { %v6291_v11 = vsel %vm1174_vm2, %v1169_v10, %v1171_v21  ;;  %v6294_v23 = vsel %vm1174_vm2, 0, %v1169_v10 }
 0x177   : > { %1228 = vrot.lane.b32.xlu1 %v6294_v23, %s5733_s18  ;;  %1230 = vrot.lane.b32.xlu2 %v6291_v11, %s5733_s18  ;;  %v1192_v29 = vrot.slane %v6294_v23, 2  ;;  %v1193_v34 = vrot.slane %v6291_v11, 2  ;;  %v1204_v22 = vrot.slane %v6294_v23, 4  ;;  %v1205_v40 = vrot.slane %v6291_v11, 4 }
 0x178   : > { %1268 = vrot.lane.b32.xlu0 %v6286_v50, %s5722_s20  ;;  %v1216_v46 = vrot.slane %v6294_v23, 6  ;;  %v1217_v47 = vrot.slane %v6291_v11, 6 }
 0x17f   : > { %1264 = vrot.lane.b32.xlu1 %v6294_v23, %s5722_s20  ;;  %1266 = vrot.lane.b32.xlu2 %v6291_v11, %s5722_s20 }
 0x180   : > { %1199 = vrot.lane.b32.xlu0 %v1194_v28, %s5734_s22 }
 0x187   : > { %1195 = vrot.lane.b32.xlu1 %v1192_v29, %s5734_s22  ;;  %1197 = vrot.lane.b32.xlu2 %v1193_v34, %s5734_s22 }
 0x188   : > { %1211 = vrot.lane.b32.xlu0 %v1206_v39, %s5723_s21 }
 0x18f   : > { %1207 = vrot.lane.b32.xlu1 %v1204_v22, %s5723_s21  ;;  %1209 = vrot.lane.b32.xlu2 %v1205_v40, %s5723_s21 }
 0x190   : > { %1223 = vrot.lane.b32.xlu0 %v1218_v41, %s5735_s14 }
 0x197   : > { %1219 = vrot.lane.b32.xlu1 %v1216_v46, %s5735_s14  ;;  %1221 = vrot.lane.b32.xlu2 %v1217_v47, %s5735_s14 }
 0x198   : > { %1241 = vrot.lane.b32.xlu0 %v1194_v28, %s5728_s30 }
 0x19f   : > { %1237 = vrot.lane.b32.xlu1 %v1192_v29, %s5728_s30  ;;  %1239 = vrot.lane.b32.xlu2 %v1193_v34, %s5728_s30 }
 0x1a0   : > { %1250 = vrot.lane.b32.xlu0 %v1206_v39, %s5736_s23 }
 0x1a7   : > { %1246 = vrot.lane.b32.xlu1 %v1204_v22, %s5736_s23  ;;  %1248 = vrot.lane.b32.xlu2 %v1205_v40, %s5736_s23 }
 0x1a8   : > { %1259 = vrot.lane.b32.xlu0 %v1218_v41, %s5737_s8 }
 0x1af   : > { %1255 = vrot.lane.b32.xlu1 %v1216_v46, %s5737_s8  ;;  %1257 = vrot.lane.b32.xlu2 %v1217_v47, %s5737_s8 }
 0x1d1   : > { %v6333_v52 = vpop.permute.xlu2 %1230 }
 0x1d9   : > { %v1267_v53 = vpop.permute.xlu2 %1266 }
 0x1e1   : > { %v6335_v56 = vpop.permute.xlu2 %1197 }
 0x1e2   : > { %v1233_v55 = vpop.permute.xlu0 %1232 }
 0x1e9   : > { %v6337_v60 = vpop.permute.xlu1 %1228  ;;  %v6342_v61 = vpop.permute.xlu2 %1209 }
 0x1ea   : > { %v1269_v6 = vpop.permute.xlu0 %1268 }
 0x1eb   : > { %v1473_v7 = vsel %vm1273_vm5, %v1269_v6, 0  ;;  %v1272_v54 = vsel %vm1015_vm13, %v1267_v53, %v1269_v6 }
 0x1ec   : > { %1554 = vmatpush.bf16.msra.mxu2 %v1473_v7  ;;  %v1470_v3 = vsel %vm1273_vm5, %v1272_v54, 0 }
 0x1ed   : > { %1515 = vmatpush.bf16.msra.mxu1 %v1470_v3  ;;  %v1236_v3 = vsel %vm1234_vm10, %v6333_v52, %v1233_v55 }
 0x1f1   : > { %v1265_v49 = vpop.permute.xlu1 %1264  ;;  %v1222_v19 = vpop.permute.xlu2 %1221 }
 0x1f2   : > { %v6344_v59 = vpop.permute.xlu0 %1199  ;;  %v1271_v16 = vsel %vm1015_vm13, %v1265_v49, %v1267_v53 }
 0x1f3   : > { %v1467_v9 = vsel %vm1273_vm5, %v1271_v16, 0 }
 0x1f4   : > { %1476 = vmatpush.bf16.msra.mxu0 %v1467_v9 }
 0x1f9   : > { %v6348_v13 = vpop.permute.xlu1 %1195  ;;  %v1240_v12 = vpop.permute.xlu2 %1239 }
 0x1fa   : > { %v1212_v15 = vpop.permute.xlu0 %1211 }
 0x201   : > { %v1208_v57 = vpop.permute.xlu1 %1207  ;;  %v1249_v32 = vpop.permute.xlu2 %1248 }
 0x202   : > { %v1224_v62 = vpop.permute.xlu0 %1223 }
 0x203   : > { %v1227_v16 = vsel %vm1225_vm11, %v1222_v19, %v1224_v62 }
 0x209   : > { %v1220_v24 = vpop.permute.xlu1 %1219  ;;  %v1258_v10 = vpop.permute.xlu2 %1257 }
 0x20a   : > { %v1242_v21 = vpop.permute.xlu0 %1241 }
 0x20b   : > { %v1245_v41 = vsel %vm1018_vm14, %v1240_v12, %v1242_v21  ;;  %v1314_v54 = vsel %vm1273_vm5, %v1233_v55, %v1242_v21 }
 0x20c   : > { %v1310_v49 = vsel %vm1273_vm5, %v1236_v3, %v1245_v41 }
 0x211   : > { %v1238_v44 = vpop.permute.xlu1 %1237 }
 0x212   : > { %v1251_v35 = vpop.permute.xlu0 %1250  ;;  %v1244_v9 = vsel %vm1018_vm14, %v1238_v44, %v1240_v12  ;;  %v1292_v12 = vsel %vm1284_vm9, %v6344_v59, %v1212_v15  ;;  %v1226_v44 = vsel %vm1225_vm11, %v1220_v24, %v1222_v19 }
 0x213   : > { %v1254_v34 = vsel %vm1252_vm6, %v1249_v32, %v1251_v35  ;;  %v1323_v40 = vsel %vm1284_vm9, %v1242_v21, %v1251_v35  ;;  %v1235_v21 = vsel %vm1234_vm10, %v6337_v60, %v6333_v52  ;;  %v1282_v60 = vsel %vm1273_vm5, %v6286_v50, %v6344_v59 }
 0x214   : > { %v1320_v46 = vsel %vm1284_vm9, %v1245_v41, %v1254_v34 }
 0x219   : > { %v1247_v43 = vpop.permute.xlu1 %1246 }
 0x21a   : > { %v1260_v28 = vpop.permute.xlu0 %1259  ;;  %v1253_v53 = vsel %vm1252_vm6, %v1247_v43, %v1249_v32  ;;  %v1215_v43 = vsel %vm1021_vm15, %v6342_v61, %v1212_v15 }
 0x21b   : > { %v1332_v29 = vsel %vm1294_vm8, %v1251_v35, %v1260_v28  ;;  %v1263_v39 = vsel %vm1261_vm7, %v1258_v10, %v1260_v28  ;;  %v1317_v32 = vsel %vm1284_vm9, %v1244_v9, %v1253_v53  ;;  %v1302_v35 = vsel %vm1294_vm8, %v1212_v15, %v1224_v62  ;;  %v5511_v15 = vld [vmem:[%s9925_s2] sm:$0xff] }
 0x21c   : > { %1555 = vmatpush.bf16.msra.mxu2 %v1332_v29  ;;  %v1329_v22 = vsel %vm1294_vm8, %v1254_v34, %v1263_v39  ;;  %v1299_v55 = vsel %vm1294_vm8, %v1215_v43, %v1227_v16  ;;  %v1203_v62 = vsel %vm1201_vm12, %v6335_v56, %v6344_v59  ;;  %v1214_v29 = vsel %vm1021_vm15, %v1208_v57, %v6342_v61  ;;  %v5515_v59 = vld [vmem:[%s9925_s2 + $0x20] sm:$0xff] }
 0x21d   : > { %1516 = vmatpush.bf16.msra.mxu1 %v1329_v22  ;;  %v1289_v28 = vsel %vm1284_vm9, %v1203_v62, %v1215_v43  ;;  %v1296_v52 = vsel %vm1294_vm8, %v1214_v29, %v1226_v44  ;;  %v1279_v19 = vsel %vm1273_vm5, %v6291_v11, %v1203_v62  ;;  %v1202_v61 = vsel %vm1201_vm12, %v6348_v13, %v6335_v56  ;;  %v5512_v11 = vld [vmem:[%s9925_s2 + $0x8] sm:$0xff]  ;;  %v5513_v56 = vld [vmem:[%s9925_s2 + $0x10] sm:$0xff]  ;;  %v1628_v39 = vld [vmem:[%s9927_s4] sm:$0x7] }
 0x21e   : > { %v1286_v57 = vsel %vm1284_vm9, %v1202_v61, %v1214_v29  ;;  %v1275_v50 = vsel %vm1273_vm5, %v6294_v23, %v1202_v61  ;;  %v5514_v23 = vld [vmem:[%s9925_s2 + $0x18] sm:$0xff]  ;;  %v5516_v13 = vld [vmem:[%s9925_s2 + $0x28] sm:$0xff]  ;;  %v6437_v41 = vperm.slane %v1628_v39, 2  ;;  %vm1765_vm9 = vcmask 552336  }
 0x220   : > { %1556 = vmatpush.bf16.msra.mxu2 %v1323_v40 }
 0x221   : > { %v1256_v47 = vpop.permute.xlu1 %1255  ;;  %1517 = vmatpush.bf16.msra.mxu1 %v1320_v46  ;;  %v6439_v46 = vperm.slane %v1628_v39, 1 }
 0x222   : > { %v1262_v6 = vsel %vm1261_vm7, %v1256_v47, %v1258_v10  ;;  %v1306_v10 = vsel %vm1273_vm5, %v1235_v21, %v1244_v9  ;;  %vm1697_vm5 = vcmask 551936  }
 0x223   : > { %v1326_v7 = vsel %vm1294_vm8, %v1253_v53, %v1262_v6  ;;  %vm6446_vm8 = vmor %vm1734_vm4, %vm1733_vm3 }
 0x224   : > { %1477 = vmatpush.bf16.msra.mxu0 %v1326_v7  ;;  %1557 = vmatpush.bf16.msra.mxu2 %v1314_v54  ;;  %v6442_v54 = vperm.slane %v1628_v39, 0 }
 0x225   : > { %1518 = vmatpush.bf16.msra.mxu1 %v1310_v49 }
 0x228   : > { %1478 = vmatpush.bf16.msra.mxu0 %v1317_v32  ;;  %1558 = vmatpush.bf16.msra.mxu2 %v1302_v35 }
 0x229   : > { %1519 = vmatpush.bf16.msra.mxu1 %v1299_v55 }
 0x22c   : > { %1479 = vmatpush.bf16.msra.mxu0 %v1306_v10  ;;  %1559 = vmatpush.bf16.msra.mxu2 %v1292_v12 }
 0x22d   : > { %1520 = vmatpush.bf16.msra.mxu1 %v1289_v28 }
 0x230   : > { %1480 = vmatpush.bf16.msra.mxu0 %v1296_v52  ;;  %1560 = vmatpush.bf16.msra.mxu2 %v1282_v60 }
 0x231   : > { %1521 = vmatpush.bf16.msra.mxu1 %v1279_v19 }
 0x233   : > { %5272 = vmatmul.msk.bf16.vlgmr.msra.gmra.mxu2 %vm1018_vm14, %v5511_v15 }
 0x234   : > { %1481 = vmatpush.bf16.msra.mxu0 %v1286_v57  ;;  %5266 = vmatmul.msk.bf16.vlgmr.msra.gmra.mxu1 %vm1018_vm14, %v5511_v15 }
 0x238   : > { %1482 = vmatpush.bf16.msra.mxu0 %v1275_v50 }
 0x23b   : > { %5260 = vmatmul.msk.bf16.vlgmr.msra.gmra.mxu0 %vm1018_vm14, %v5511_v15 }
 0x243   : > { %5273 = vmatmul.msk.bf16.gmra.mxu2 %vm1018_vm14, %v5512_v11 }
 0x244   : > { %5267 = vmatmul.msk.bf16.gmra.mxu1 %vm1018_vm14, %v5512_v11 }
 0x24b   : > { %5261 = vmatmul.msk.bf16.gmra.mxu0 %vm1018_vm14, %v5512_v11 }
 0x253   : > { %5274 = vmatmul.msk.bf16.gmra.mxu2 %vm1018_vm14, %v5513_v56 }
 0x254   : > { %5268 = vmatmul.msk.bf16.gmra.mxu1 %vm1018_vm14, %v5513_v56 }
 0x25b   : > { %5262 = vmatmul.msk.bf16.gmra.mxu0 %vm1018_vm14, %v5513_v56 }
 0x263   : > { %5275 = vmatmul.msk.bf16.gmra.mxu2 %vm1018_vm14, %v5514_v23 }
 0x264   : > { %5269 = vmatmul.msk.bf16.gmra.mxu1 %vm1018_vm14, %v5514_v23 }
 0x26b   : > { %5263 = vmatmul.msk.bf16.gmra.mxu0 %vm1018_vm14, %v5514_v23 }
 0x273   : > { %5276 = vmatmul.msk.bf16.gmra.mxu2 %vm1018_vm14, %v5515_v59 }
 0x274   : > { %5270 = vmatmul.msk.bf16.gmra.mxu1 %vm1018_vm14, %v5515_v59 }
 0x27b   : > { %5264 = vmatmul.msk.bf16.gmra.mxu0 %vm1018_vm14, %v5515_v59 }
 0x283   : > { %5277 = vmatmul.msk.bf16.gmra.mxu2 %vm1018_vm14, %v5516_v13 }
 0x284   : > { %5271 = vmatmul.msk.bf16.gmra.mxu1 %vm1018_vm14, %v5516_v13 }
 0x28b   : > { %5265 = vmatmul.msk.bf16.gmra.mxu0 %vm1018_vm14, %v5516_v13 }
 0x2b1   : > { %v1523_v24 = vpop.f32.mrf.mxu1 }
 0x2b2   : > { %v1524_v34 = vadd.f32 %v1523_v24, %v6241_v36 }
 0x2b4   : > { %v1593_v53 = vmax.f32 %v1524_v34, 0.0 }
 0x2b6   : > { %v1562_v22 = vpop.f32.mrf.mxu2  ;;  %v1637_v9 = vmul.f32 %v6439_v46, %v1593_v53 }
 0x2b7   : > { %v1563_v40 = vadd.f32 %v1562_v22, %v6241_v36 }
 0x2b8   : > { %v1484_v47 = vpop.f32.mrf.mxu0 }
 0x2b9   : > { %v1594_v6 = vmax.f32 %v1563_v40, 0.0  ;;  %v1485_v7 = vadd.f32 %v1484_v47, %v6241_v36  ;;  %v1525_v3 = vpop.f32.mrf.mxu1 }
 0x2ba   : > { %v1526_v36 = vadd.f32 %v1525_v3, %v6243_v27 }
 0x2bb   : > { %v1638_v49 = vmul.f32 %v6437_v41, %v1594_v6  ;;  %v1592_v16 = vmax.f32 %v1485_v7, 0.0 }
 0x2bc   : > { %v1596_v62 = vmax.f32 %v1526_v36, 0.0 }
 0x2bd   : > { %v1673_v32 = vpack.c.bf16 %v1638_v49, %v1638_v49  ;;  %v1636_v43 = vmul.f32 %v6442_v54, %v1592_v16 }
 0x2be   : > { %v1564_v55 = vpop.f32.mrf.mxu2  ;;  %v1640_v15 = vmul.f32 %v6439_v46, %v1596_v62 }
 0x2bf   : > { %1698 = vst.msk [vmem:[#allocation2 + $0xc] sm:$0xf] %vm1697_vm5, %v1673_v32  ;;  %v1672_v21 = vpack.c.bf16 %v1637_v9, %v1636_v43  ;;  %v1565_v10 = vadd.f32 %v1564_v55, %v6243_v27 }
 0x2c0   : > { %1736 = vst.msk [vmem:[#allocation2 + $0xc] sm:$0xff] %vm6446_vm8, %v5727_v5  ;;  %v1486_v12 = vpop.f32.mrf.mxu0 }
 0x2c1   : > { %1766 = vst.msk [vmem:[#allocation2 + $0xc] sm:$0xf] %vm1765_vm9, %v5727_v5  ;;  %v1597_v44 = vmax.f32 %v1565_v10, 0.0  ;;  %v1487_v28 = vadd.f32 %v1486_v12, %v6243_v27  ;;  %v1528_v29 = vpop.f32.mrf.mxu1 }
 0x2c2   : > { %1696 = vst [vmem:[#allocation2 + $0x4] sm:$0xff] %v1672_v21  ;;  %v1529_v57 = vadd.f32 %v1528_v29, %v6253_v48 }
 0x2c3   : > { %1753 = vst.msk [vmem:[#allocation2 + $0x4] sm:$0xf] %vm1752_vm1, %v5727_v5  ;;  %v1641_v52 = vmul.f32 %v6437_v41, %v1597_v44  ;;  %v1595_v60 = vmax.f32 %v1487_v28, 0.0 }
 0x2c4   : > { %v1599_v23 = vmax.f32 %v1529_v57, 0.0 }
 0x2c5   : > { %v1675_v19 = vpack.c.bf16 %v1641_v52, %v1641_v52  ;;  %v1639_v61 = vmul.f32 %v6442_v54, %v1595_v60 }
 0x2c6   : > { %v1567_v50 = vpop.f32.mrf.mxu2  ;;  %v1643_v22 = vmul.f32 %v6439_v46, %v1599_v23 }
 0x2c7   : > { %1700 = vst.msk [vmem:[#allocation2 + $0x20] sm:$0xf] %vm1697_vm5, %v1675_v19  ;;  %v1674_v11 = vpack.c.bf16 %v1640_v15, %v1639_v61  ;;  %v1568_v27 = vadd.f32 %v1567_v50, %v6253_v48 }
 0x2c8   : > { %1737 = vst.msk [vmem:[#allocation2 + $0x20] sm:$0xff] %vm6446_vm8, %v5727_v5  ;;  %v1489_v56 = vpop.f32.mrf.mxu0  ;;  %v5384_v61 = vld [vmem:[#allocation2 + $0xc] sm:$0xf] }
 0x2c9   : > { %1767 = vst.msk [vmem:[#allocation2 + $0x20] sm:$0xf] %vm1765_vm9, %v5727_v5  ;;  %v1600_v59 = vmax.f32 %v1568_v27, 0.0  ;;  %v1490_v13 = vadd.f32 %v1489_v56, %v6253_v48  ;;  %v1530_v24 = vpop.f32.mrf.mxu1  ;;  %v5555_v3 = vld [vmem:[#allocation2 + $0x8] sm:$0xf] }
 0x2ca   : > { %1699 = vst [vmem:[#allocation2 + $0x18] sm:$0xff] %v1674_v11  ;;  %v1531_v53 = vadd.f32 %v1530_v24, %v6245_v51  ;;  %v5288_v16 = vld [vmem:[#allocation2 + $0x8] sm:$0xf]  ;;  %v5531_v9 = vld [vmem:[#allocation2 + $0x4] sm:$0xf] }
 0x2cb   : > { %1754 = vst.msk [vmem:[#allocation2 + $0x18] sm:$0xf] %vm1752_vm1, %v5727_v5  ;;  %v1644_v34 = vmul.f32 %v6437_v41, %v1600_v59  ;;  %v1598_v39 = vmax.f32 %v1490_v13, 0.0  ;;  %v5376_v50 = vld [vmem:[#allocation2 + $0x4] sm:$0xf] }
 0x2cc   : > { %v1602_v32 = vmax.f32 %v1531_v53, 0.0 }
 0x2cd   : > { %v1677_v40 = vpack.c.bf16 %v1644_v34, %v1644_v34  ;;  %v1642_v47 = vmul.f32 %v6442_v54, %v1598_v39 }
 0x2ce   : > { %v1569_v6 = vpop.f32.mrf.mxu2 }
 0x2cf   : > { %1702 = vst.msk [vmem:[#allocation2 + $0x34] sm:$0xf] %vm1697_vm5, %v1677_v40  ;;  %v1676_v7 = vpack.c.bf16 %v1643_v22, %v1642_v47  ;;  %v1570_v48 = vadd.f32 %v1569_v6, %v6245_v51 }
 0x2d0   : > { %1738 = vst.msk [vmem:[#allocation2 + $0x34] sm:$0xff] %vm6446_vm8, %v5727_v5  ;;  %v1491_v49 = vpop.f32.mrf.mxu0  ;;  %v5557_v27 = vld [vmem:[#allocation2 + $0x1c] sm:$0xf0] }
 0x2d1   : > { %1768 = vst.msk [vmem:[#allocation2 + $0x34] sm:$0xf] %vm1765_vm9, %v5727_v5  ;;  %v1603_v43 = vmax.f32 %v1570_v48, 0.0  ;;  %v1492_v36 = vadd.f32 %v1491_v49, %v6245_v51  ;;  %v1533_v55 = vpop.f32.mrf.mxu1  ;;  %v5378_v21 = vld [vmem:[#allocation2 + $0x18] sm:$0xf0]  ;;  %v1646_v51 = vmul.f32 %v6439_v46, %v1602_v32  ;;  %v6510_v40 = vor.u32 %v5557_v27, %v5384_v61 }
 0x2d2   : > { %1701 = vst [vmem:[#allocation2 + $0x2c] sm:$0xff] %v1676_v7  ;;  %v6488_v10 = vor.u32 %v5555_v3, %v5378_v21  ;;  %v5534_v12 = vld [vmem:[#allocation2 + $0x18] sm:$0xf0]  ;;  %v5282_v62 = vld [vmem:[#allocation2 + $0x14] sm:$0xf0]  ;;  %v1534_v60 = vadd.f32 %v1533_v55, %v6247_v25 }
 0x2d3   : > { %1755 = vst.msk [vmem:[#allocation2 + $0x2c] sm:$0xf] %vm1752_vm1, %v5727_v5  ;;  %v1647_v44 = vmul.f32 %v6437_v41, %v1603_v43  ;;  %v1601_v28 = vmax.f32 %v1492_v36, 0.0  ;;  %v5289_v29 = vor.u32 %v5534_v12, %v5288_v16  ;;  %v5285_v52 = vor.u32 %v5531_v9, %v5282_v62  ;;  %v5556_v11 = vld [vmem:[#allocation2 + $0x14] sm:$0xf0] }
 0x2d4   : > { %2022 = vrot.lane.b32.xlu0 %v6488_v10, %s5734_s22  ;;  %v1605_v59 = vmax.f32 %v1534_v60, 0.0  ;;  %v6508_v22 = vor.u32 %v5556_v11, %v5376_v50 }
 0x2d5   : > { %v1679_v15 = vpack.c.bf16 %v1647_v44, %v1647_v44  ;;  %v1645_v19 = vmul.f32 %v6442_v54, %v1601_v28  ;;  %2498 = vrot.lane.b32.xlu2 %v5289_v29, %s5731_s24  ;;  %2496 = vrot.lane.b32.xlu1 %v5285_v52, %s5731_s24 }
 0x2d6   : > { %v1572_v57 = vpop.f32.mrf.mxu2  ;;  %v1649_v6 = vmul.f32 %v6439_v46, %v1605_v59 }
 0x2d7   : > { %1704 = vst.msk [vmem:[#allocation2 + $0x48] sm:$0xf] %vm1697_vm5, %v1679_v15  ;;  %v1678_v56 = vpack.c.bf16 %v1646_v51, %v1645_v19  ;;  %v1573_v23 = vadd.f32 %v1572_v57, %v6247_v25 }
 0x2d8   : > { %1739 = vst.msk [vmem:[#allocation2 + $0x48] sm:$0xff] %vm6446_vm8, %v5727_v5  ;;  %v1494_v13 = vpop.f32.mrf.mxu0 }
 0x2d9   : > { %1769 = vst.msk [vmem:[#allocation2 + $0x48] sm:$0xf] %vm1765_vm9, %v5727_v5  ;;  %v1606_v24 = vmax.f32 %v1573_v23, 0.0  ;;  %v1495_v34 = vadd.f32 %v1494_v13, %v6247_v25  ;;  %v1535_v39 = vpop.f32.mrf.mxu1 }
 0x2da   : > { %1703 = vst [vmem:[#allocation2 + $0x40] sm:$0xff] %v1678_v56  ;;  %v1536_v48 = vadd.f32 %v1535_v39, %v6249_v58 }
 0x2db   : > { %1756 = vst.msk [vmem:[#allocation2 + $0x40] sm:$0xf] %vm1752_vm1, %v5727_v5  ;;  %v1650_v47 = vmul.f32 %v6437_v41, %v1606_v24  ;;  %v1604_v53 = vmax.f32 %v1495_v34, 0.0 }
 0x2dc   : > { %2070 = vrot.lane.b32.xlu0 %v6488_v10, %s5723_s21  ;;  %v1608_v32 = vmax.f32 %v1536_v48, 0.0 }
 0x2dd   : > { %v1681_v7 = vpack.c.bf16 %v1650_v47, %v1650_v47  ;;  %v1648_v25 = vmul.f32 %v6442_v54, %v1604_v53  ;;  %2020 = vrot.lane.b32.xlu2 %v6508_v22, %s5734_s22  ;;  %2024 = vrot.lane.b32.xlu1 %v6510_v40, %s5734_s22 }
 0x2de   : > { %v1574_v3 = vpop.f32.mrf.mxu2  ;;  %v1652_v44 = vmul.f32 %v6439_v46, %v1608_v32 }
 0x2df   : > { %1706 = vst.msk [vmem:[#allocation2 + $0x5c] sm:$0xf] %vm1697_vm5, %v1681_v7  ;;  %v1680_v49 = vpack.c.bf16 %v1649_v6, %v1648_v25  ;;  %v1575_v16 = vadd.f32 %v1574_v3, %v6249_v58 }
 0x2e0   : > { %1740 = vst.msk [vmem:[#allocation2 + $0x5c] sm:$0xff] %vm6446_vm8, %v5727_v5  ;;  %v1496_v9 = vpop.f32.mrf.mxu0 }
 0x2e1   : > { %1770 = vst.msk [vmem:[#allocation2 + $0x5c] sm:$0xf] %vm1765_vm9, %v5727_v5  ;;  %v1609_v43 = vmax.f32 %v1575_v16, 0.0  ;;  %v1497_v36 = vadd.f32 %v1496_v9, %v6249_v58  ;;  %v1538_v55 = vpop.f32.mrf.mxu1 }
 0x2e2   : > { %1705 = vst [vmem:[#allocation2 + $0x54] sm:$0xff] %v1680_v49  ;;  %v1539_v62 = vadd.f32 %v1538_v55, %v6251_v4 }
 0x2e3   : > { %1757 = vst.msk [vmem:[#allocation2 + $0x54] sm:$0xf] %vm1752_vm1, %v5727_v5  ;;  %v1653_v21 = vmul.f32 %v6437_v41, %v1609_v43  ;;  %v1607_v12 = vmax.f32 %v1497_v36, 0.0 }
 0x2e4   : > { %2118 = vrot.lane.b32.xlu0 %v6488_v10, %s5735_s14  ;;  %v1611_v51 = vmax.f32 %v1539_v62, 0.0 }
 0x2e5   : > { %v1683_v28 = vpack.c.bf16 %v1653_v21, %v1653_v21  ;;  %v1651_v29 = vmul.f32 %v6442_v54, %v1607_v12  ;;  %2068 = vrot.lane.b32.xlu2 %v6508_v22, %s5723_s21  ;;  %2072 = vrot.lane.b32.xlu1 %v6510_v40, %s5723_s21 }
 0x2e6   : > { %v1577_v58 = vpop.f32.mrf.mxu2  ;;  %v1655_v27 = vmul.f32 %v6439_v46, %v1611_v51 }
 0x2e7   : > { %1708 = vst.msk [vmem:[#allocation2 + $0x70] sm:$0xf] %vm1697_vm5, %v1683_v28  ;;  %v1682_v52 = vpack.c.bf16 %v1652_v44, %v1651_v29  ;;  %v1578_v60 = vadd.f32 %v1577_v58, %v6251_v4 }
 0x2e8   : > { %1741 = vst.msk [vmem:[#allocation2 + $0x70] sm:$0xff] %vm6446_vm8, %v5727_v5  ;;  %v1499_v15 = vpop.f32.mrf.mxu0 }
 0x2e9   : > { %1771 = vst.msk [vmem:[#allocation2 + $0x70] sm:$0xf] %vm1765_vm9, %v5727_v5  ;;  %v1612_v19 = vmax.f32 %v1578_v60, 0.0  ;;  %v1500_v61 = vadd.f32 %v1499_v15, %v6251_v4  ;;  %v1540_v57 = vpop.f32.mrf.mxu1 }
 0x2ea   : > { %1707 = vst [vmem:[#allocation2 + $0x68] sm:$0xff] %v1682_v52  ;;  %v1541_v59 = vadd.f32 %v1540_v57, %v6259_v31 }
 0x2eb   : > { %1758 = vst.msk [vmem:[#allocation2 + $0x68] sm:$0xf] %vm1752_vm1, %v5727_v5  ;;  %v1656_v50 = vmul.f32 %v6437_v41, %v1612_v19  ;;  %v1610_v11 = vmax.f32 %v1500_v61, 0.0 }
 0x2ec   : > { %2166 = vrot.lane.b32.xlu0 %v6488_v10, %s5733_s18  ;;  %v1614_v39 = vmax.f32 %v1541_v59, 0.0 }
 0x2ed   : > { %v1685_v56 = vpack.c.bf16 %v1656_v50, %v1656_v50  ;;  %v1654_v23 = vmul.f32 %v6442_v54, %v1610_v11  ;;  %2116 = vrot.lane.b32.xlu2 %v6508_v22, %s5735_s14  ;;  %2120 = vrot.lane.b32.xlu1 %v6510_v40, %s5735_s14 }
 0x2ee   : > { %v1579_v4 = vpop.f32.mrf.mxu2  ;;  %v1658_v3 = vmul.f32 %v6439_v46, %v1614_v39 }
 0x2ef   : > { %1710 = vst.msk [vmem:[#allocation2 + $0x84] sm:$0xf] %vm1697_vm5, %v1685_v56  ;;  %v1684_v13 = vpack.c.bf16 %v1655_v27, %v1654_v23  ;;  %v1580_v24 = vadd.f32 %v1579_v4, %v6259_v31 }
 0x2f0   : > { %1742 = vst.msk [vmem:[#allocation2 + $0x84] sm:$0xff] %vm6446_vm8, %v5727_v5  ;;  %v1501_v34 = vpop.f32.mrf.mxu0 }
 0x2f1   : > { %1772 = vst.msk [vmem:[#allocation2 + $0x84] sm:$0xf] %vm1765_vm9, %v5727_v5  ;;  %v1615_v47 = vmax.f32 %v1580_v24, 0.0  ;;  %v1502_v53 = vadd.f32 %v1501_v34, %v6259_v31  ;;  %v1543_v6 = vpop.f32.mrf.mxu1 }
 0x2f2   : > { %1709 = vst [vmem:[#allocation2 + $0x7c] sm:$0xff] %v1684_v13  ;;  %v1544_v48 = vadd.f32 %v1543_v6, %v6255_v2 }
 0x2f3   : > { %1759 = vst.msk [vmem:[#allocation2 + $0x7c] sm:$0xf] %vm1752_vm1, %v5727_v5  ;;  %v1659_v7 = vmul.f32 %v6437_v41, %v1615_v47  ;;  %v1613_v25 = vmax.f32 %v1502_v53, 0.0 }
 0x2f4   : > { %2214 = vrot.lane.b32.xlu0 %v6488_v10, %s5728_s30  ;;  %v1617_v43 = vmax.f32 %v1544_v48, 0.0 }
 0x2f5   : > { %v1687_v49 = vpack.c.bf16 %v1659_v7, %v1659_v7  ;;  %v1657_v16 = vmul.f32 %v6442_v54, %v1613_v25  ;;  %2164 = vrot.lane.b32.xlu2 %v6508_v22, %s5733_s18  ;;  %2168 = vrot.lane.b32.xlu1 %v6510_v40, %s5733_s18 }
 0x2f6   : > { %v1582_v31 = vpop.f32.mrf.mxu2  ;;  %v1661_v28 = vmul.f32 %v6439_v46, %v1617_v43 }
 0x2f7   : > { %1712 = vst.msk [vmem:[#allocation2 + $0x98] sm:$0xf] %vm1697_vm5, %v1687_v49  ;;  %v1686_v9 = vpack.c.bf16 %v1658_v3, %v1657_v16  ;;  %v1583_v32 = vadd.f32 %v1582_v31, %v6255_v2  ;;  %v5290_v31 = vld [vmem:[#allocation2 + $0x1c] sm:$0xf0] }
 0x2f8   : > { %1743 = vst.msk [vmem:[#allocation2 + $0x98] sm:$0xff] %vm6446_vm8, %v5727_v5  ;;  %v1504_v36 = vpop.f32.mrf.mxu0 }
 0x2f9   : > { %1773 = vst.msk [vmem:[#allocation2 + $0x98] sm:$0xf] %vm1765_vm9, %v5727_v5  ;;  %v1618_v55 = vmax.f32 %v1583_v32, 0.0  ;;  %v1505_v21 = vadd.f32 %v1504_v36, %v6255_v2  ;;  %v1545_v12 = vpop.f32.mrf.mxu1  ;;  %v5564_v38 = vld [vmem:[#allocation2 + $0x80] sm:$0xf] }
 0x2fa   : > { %1711 = vst [vmem:[#allocation2 + $0x90] sm:$0xff] %v1686_v9  ;;  %v1546_v52 = vadd.f32 %v1545_v12, %v6257_v30 }
 0x2fb   : > { %1760 = vst.msk [vmem:[#allocation2 + $0x90] sm:$0xf] %vm1752_vm1, %v5727_v5  ;;  %v1662_v62 = vmul.f32 %v6437_v41, %v1618_v55  ;;  %v1616_v44 = vmax.f32 %v1505_v21, 0.0 }
 0x2fc   : > { %2262 = vrot.lane.b32.xlu0 %v6488_v10, %s5736_s23  ;;  %v1620_v19 = vmax.f32 %v1546_v52, 0.0  ;;  %v5559_v52 = vld [vmem:[#allocation2 + $0x3c] sm:$0xf0] }
 0x2fd   : > { %v1689_v29 = vpack.c.bf16 %v1662_v62, %v1662_v62  ;;  %v1660_v58 = vmul.f32 %v6442_v54, %v1616_v44  ;;  %2212 = vrot.lane.b32.xlu2 %v6508_v22, %s5728_s30  ;;  %2216 = vrot.lane.b32.xlu1 %v6510_v40, %s5728_s30 }
 0x2fe   : > { %v1584_v2 = vpop.f32.mrf.mxu2  ;;  %v1664_v23 = vmul.f32 %v6439_v46, %v1620_v19 }
 0x2ff   : > { %1714 = vst.msk [vmem:[#allocation2 + $0xac] sm:$0xf] %vm1697_vm5, %v1689_v29  ;;  %v1688_v60 = vpack.c.bf16 %v1661_v28, %v1660_v58  ;;  %v1585_v51 = vadd.f32 %v1584_v2, %v6257_v30  ;;  %v5396_v2 = vld [vmem:[#allocation2 + $0x34] sm:$0xf] }
 0x300   : > { %1744 = vst.msk [vmem:[#allocation2 + $0xac] sm:$0xff] %vm6446_vm8, %v5727_v5  ;;  %v1506_v15 = vpop.f32.mrf.mxu0  ;;  %v5566_v37 = vld [vmem:[#allocation2 + $0x94] sm:$0xf0] }
 0x301   : > { %1774 = vst.msk [vmem:[#allocation2 + $0xac] sm:$0xf] %vm1765_vm9, %v5727_v5  ;;  %v1621_v61 = vmax.f32 %v1585_v51, 0.0  ;;  %v1507_v57 = vadd.f32 %v1506_v15, %v6257_v30  ;;  %v1548_v50 = vpop.f32.mrf.mxu1  ;;  %v5390_v51 = vld [vmem:[#allocation2 + $0x40] sm:$0xf0] }
 0x302   : > { %1713 = vst [vmem:[#allocation2 + $0xa4] sm:$0xff] %v1688_v60  ;;  %v1549_v56 = vadd.f32 %v1548_v50, %v6265_v1  ;;  %v5560_v60 = vld [vmem:[#allocation2 + $0x44] sm:$0xf0]  ;;  %v5546_v45 = vld [vmem:[#allocation2 + $0x90] sm:$0xf0] }
 0x303   : > { %1761 = vst.msk [vmem:[#allocation2 + $0xa4] sm:$0xf] %vm1752_vm1, %v5727_v5  ;;  %v1665_v11 = vmul.f32 %v6437_v41, %v1621_v61  ;;  %v1619_v27 = vmax.f32 %v1507_v57, 0.0 }
 0x304   : > { %2310 = vrot.lane.b32.xlu0 %v6488_v10, %s5737_s8  ;;  %v1623_v34 = vmax.f32 %v1549_v56, 0.0  ;;  %v5535_v56 = vld [vmem:[#allocation2 + $0x2c] sm:$0xf] }
 0x305   : > { %v1691_v59 = vpack.c.bf16 %v1665_v11, %v1665_v11  ;;  %v1663_v4 = vmul.f32 %v6442_v54, %v1619_v27  ;;  %2260 = vrot.lane.b32.xlu2 %v6508_v22, %s5736_s23  ;;  %2264 = vrot.lane.b32.xlu1 %v6510_v40, %s5736_s23 }
 0x306   : > { %v1587_v30 = vpop.f32.mrf.mxu2  ;;  %v1667_v48 = vmul.f32 %v6439_v46, %v1623_v34  ;;  %v5538_v34 = vld [vmem:[#allocation2 + $0x40] sm:$0xf0] }
 0x307   : > { %1716 = vst.msk [vmem:[#allocation2 + $0xc0] sm:$0xf] %vm1697_vm5, %v1691_v59  ;;  %v1690_v13 = vpack.c.bf16 %v1664_v23, %v1663_v4  ;;  %v1588_v24 = vadd.f32 %v1587_v30, %v6265_v1  ;;  %v5298_v59 = vld [vmem:[#allocation2 + $0x3c] sm:$0xf0]  ;;  %v5536_v4 = vld [vmem:[#allocation2 + $0x34] sm:$0xf] }
 0x308   : > { %1745 = vst.msk [vmem:[#allocation2 + $0xc0] sm:$0xff] %vm6446_vm8, %v5727_v5  ;;  %v1509_v39 = vpop.f32.mrf.mxu0  ;;  %v5306_v30 = vld [vmem:[#allocation2 + $0x44] sm:$0xf0] }
 0x309   : > { %1775 = vst.msk [vmem:[#allocation2 + $0xc0] sm:$0xf] %vm1765_vm9, %v5727_v5  ;;  %v1624_v47 = vmax.f32 %v1588_v24, 0.0  ;;  %v1510_v53 = vadd.f32 %v1509_v39, %v6265_v1  ;;  %v1550_v6 = vpop.f32.mrf.mxu1  ;;  %v5532_v1 = vld [vmem:[#allocation2 + $0xc] sm:$0xf] }
 0x30a   : > { %1715 = vst [vmem:[#allocation2 + $0xb8] sm:$0xff] %v1690_v13  ;;  %v1551_v16 = vadd.f32 %v1550_v6, %v6261_v26  ;;  %v5293_v36 = vor.u32 %v5532_v1, %v5290_v31  ;;  %v5304_v39 = vld [vmem:[#allocation2 + $0x30] sm:$0xf]  ;;  %v5542_v1 = vld [vmem:[#allocation2 + $0x68] sm:$0xf0] }
 0x30b   : > { %1762 = vst.msk [vmem:[#allocation2 + $0xb8] sm:$0xf] %vm1752_vm1, %v5727_v5  ;;  %v1668_v7 = vmul.f32 %v6437_v41, %v1624_v47  ;;  %v1622_v25 = vmax.f32 %v1510_v53, 0.0  ;;  %v5301_v47 = vor.u32 %v5535_v56, %v5298_v59  ;;  %v5309_v53 = vor.u32 %v5536_v4, %v5306_v30  ;;  %v5561_v31 = vld [vmem:[#allocation2 + $0x58] sm:$0xf] }
 0x30c   : > { %2358 = vrot.lane.b32.xlu0 %v6488_v10, %s5722_s20  ;;  %v1626_v55 = vmax.f32 %v1551_v16, 0.0  ;;  %v5305_v6 = vor.u32 %v5538_v34, %v5304_v39  ;;  %v5402_v16 = vld [vmem:[#allocation2 + $0x68] sm:$0xf0]  ;;  %v5539_v39 = vld [vmem:[#allocation2 + $0x54] sm:$0xf] }
 0x30d   : > { %v1693_v3 = vpack.c.bf16 %v1668_v7, %v1668_v7  ;;  %v1666_v49 = vmul.f32 %v6442_v54, %v1622_v25  ;;  %2308 = vrot.lane.b32.xlu2 %v6508_v22, %s5737_s8  ;;  %2312 = vrot.lane.b32.xlu1 %v6510_v40, %s5737_s8  ;;  %v5400_v25 = vld [vmem:[#allocation2 + $0x54] sm:$0xf] }
 0x30e   : > { %v1589_v9 = vpop.f32.mrf.mxu2  ;;  %v1670_v28 = vmul.f32 %v6439_v46, %v1626_v55  ;;  %v5558_v46 = vld [vmem:[#allocation2 + $0x30] sm:$0xf]  ;;  %v5408_v55 = vld [vmem:[#allocation2 + $0x5c] sm:$0xf] }
 0x30f   : > { %1718 = vst.msk [vmem:[#allocation2 + $0xd4] sm:$0xf] %vm1697_vm5, %v1693_v3  ;;  %v1692_v32 = vpack.c.bf16 %v1667_v48, %v1666_v49  ;;  %v1590_v43 = vadd.f32 %v1589_v9, %v6261_v26  ;;  %v5562_v48 = vld [vmem:[#allocation2 + $0x64] sm:$0xf0] }
 0x310   : > { %1746 = vst.msk [vmem:[#allocation2 + $0xd4] sm:$0xff] %vm6446_vm8, %v5727_v5  ;;  %v1511_v10 = vpop.f32.mrf.mxu0  ;;  %v5401_v9 = vor.u32 %v5562_v48, %v5400_v25  ;;  %v5322_v25 = vld [vmem:[#allocation2 + $0x6c] sm:$0xf0] }
 0x311   : > { %1776 = vst.msk [vmem:[#allocation2 + $0xd4] sm:$0xf] %vm1765_vm9, %v5727_v5  ;;  %v1627_v21 = vmax.f32 %v1590_v43, 0.0  ;;  %v1512_v12 = vadd.f32 %v1511_v10, %v6261_v26  ;;  %v5388_v26 = vld [vmem:[#allocation2 + $0x2c] sm:$0xf] }
 0x312   : > { %1717 = vst [vmem:[#allocation2 + $0xcc] sm:$0xff] %v1692_v32  ;;  %v5405_v32 = vor.u32 %v5561_v31, %v5402_v16  ;;  %v5320_v43 = vld [vmem:[#allocation2 + $0x58] sm:$0xf] }
 0x313   : > { %1763 = vst.msk [vmem:[#allocation2 + $0xcc] sm:$0xf] %vm1752_vm1, %v5727_v5  ;;  %v1671_v62 = vmul.f32 %v6437_v41, %v1627_v21  ;;  %v1625_v44 = vmax.f32 %v1512_v12, 0.0  ;;  %v5321_v10 = vor.u32 %v5542_v1, %v5320_v43  ;;  %v5563_v21 = vld [vmem:[#allocation2 + $0x6c] sm:$0xf0] }
 0x314   : > { %2500 = vrot.lane.b32.xlu0 %v5293_v36, %s5731_s24  ;;  %v5330_v43 = vld [vmem:[#allocation2 + $0x8c] sm:$0xf0] }
 0x315   : > { %v1695_v29 = vpack.c.bf16 %v1671_v62, %v1671_v62  ;;  %v1669_v58 = vmul.f32 %v6442_v54, %v1625_v44  ;;  %2356 = vrot.lane.b32.xlu2 %v6508_v22, %s5722_s20  ;;  %2360 = vrot.lane.b32.xlu1 %v6510_v40, %s5722_s20  ;;  %v5389_v54 = vor.u32 %v5559_v52, %v5388_v26 }
 0x316   : > { %v5397_v22 = vor.u32 %v5560_v60, %v5396_v2  ;;  %v5393_v40 = vor.u32 %v5558_v46, %v5390_v51  ;;  %v5409_v44 = vor.u32 %v5563_v21, %v5408_v55  ;;  %v5414_v21 = vld [vmem:[#allocation2 + $0x90] sm:$0xf0] }
 0x317   : > { %1720 = vst.msk [vmem:[#allocation2 + $0xe8] sm:$0xf] %vm1697_vm5, %v1695_v29  ;;  %v1694_v41 = vpack.c.bf16 %v1670_v28, %v1669_v58 }
 0x318   : > { %1747 = vst.msk [vmem:[#allocation2 + $0xe8] sm:$0xff] %vm6446_vm8, %v5727_v5 }
 0x319   : > { %1777 = vst.msk [vmem:[#allocation2 + $0xe8] sm:$0xf] %vm1765_vm9, %v5727_v5 }
 0x31a   : > { %1719 = vst [vmem:[#allocation2 + $0xe0] sm:$0xff] %v1694_v41 }
 0x31b   : > { %1764 = vst.msk [vmem:[#allocation2 + $0xe0] sm:$0xf] %vm1752_vm1, %v5727_v5  ;;  %vm3250_vm1 = vcmask 785408  }
 0x31c   : > { %2028 = vrot.lane.b32.xlu0 %v5393_v40, %s5734_s22 }
 0x31d   : > { %2026 = vrot.lane.b32.xlu2 %v5389_v54, %s5734_s22  ;;  %2030 = vrot.lane.b32.xlu1 %v5397_v22, %s5734_s22 }
 0x324   : > { %2076 = vrot.lane.b32.xlu0 %v5393_v40, %s5723_s21 }
 0x325   : > { %2074 = vrot.lane.b32.xlu2 %v5389_v54, %s5723_s21  ;;  %2078 = vrot.lane.b32.xlu1 %v5397_v22, %s5723_s21 }
 0x32c   : > { %2124 = vrot.lane.b32.xlu0 %v5393_v40, %s5735_s14 }
 0x32d   : > { %2122 = vrot.lane.b32.xlu2 %v5389_v54, %s5735_s14  ;;  %2126 = vrot.lane.b32.xlu1 %v5397_v22, %s5735_s14 }
 0x32f   : > { %v6679_v35 = vpop.permute.xlu2 %2498 }
 0x330   : > { %10073 = vst [vmem:[#allocation12_spill] sm:$0xff] %v6679_v35  ;;  %v5544_v35 = vld [vmem:[#allocation2 + $0x84] sm:$0xf] }
 0x334   : > { %2172 = vrot.lane.b32.xlu0 %v5393_v40, %s5733_s18 }
 0x335   : > { %2170 = vrot.lane.b32.xlu2 %v5389_v54, %s5733_s18  ;;  %2174 = vrot.lane.b32.xlu1 %v5397_v22, %s5733_s18 }
 0x337   : > { %v6684_v5 = vpop.permute.xlu2 %2020 }
 0x33c   : > { %2220 = vrot.lane.b32.xlu0 %v5393_v40, %s5728_s30 }
 0x33d   : > { %2218 = vrot.lane.b32.xlu2 %v5389_v54, %s5728_s30  ;;  %2222 = vrot.lane.b32.xlu1 %v5397_v22, %s5728_s30 }
 0x33f   : > { %v6689_v15 = vpop.permute.xlu2 %2068 }
 0x344   : > { %2268 = vrot.lane.b32.xlu0 %v5393_v40, %s5736_s23 }
 0x345   : > { %2266 = vrot.lane.b32.xlu2 %v5389_v54, %s5736_s23  ;;  %2270 = vrot.lane.b32.xlu1 %v5397_v22, %s5736_s23 }
 0x346   : > { %v6694_v19 = vpop.permute.xlu0 %2022 }
 0x347   : > { %v6696_v61 = vpop.permute.xlu2 %2116  ;;  %v6698_v57 = vpop.permute.xlu1 %2496 }
 0x348   : > { %10074 = vst [vmem:[#allocation13_spill] sm:$0xff] %v6698_v57 }
 0x34c   : > { %2316 = vrot.lane.b32.xlu0 %v5393_v40, %s5737_s8 }
 0x34d   : > { %2314 = vrot.lane.b32.xlu2 %v5389_v54, %s5737_s8  ;;  %2318 = vrot.lane.b32.xlu1 %v5397_v22, %s5737_s8 }
 0x34e   : > { %v6703_v50 = vpop.permute.xlu0 %2070 }
 0x34f   : > { %v6705_v11 = vpop.permute.xlu2 %2164  ;;  %v6707_v27 = vpop.permute.xlu1 %2024 }
 0x350   : > { %10075 = vst [vmem:[#allocation14_spill] sm:$0xff] %v6705_v11 }
 0x354   : > { %2364 = vrot.lane.b32.xlu0 %v5393_v40, %s5722_s20 }
 0x355   : > { %2362 = vrot.lane.b32.xlu2 %v5389_v54, %s5722_s20  ;;  %2366 = vrot.lane.b32.xlu1 %v5397_v22, %s5722_s20 }
 0x356   : > { %v6712_v23 = vpop.permute.xlu0 %2118 }
 0x357   : > { %v6714_v13 = vpop.permute.xlu2 %2212  ;;  %v6716_v24 = vpop.permute.xlu1 %2072 }
 0x358   : > { %10076 = vst [vmem:[#allocation15_spill] sm:$0xff] %v6714_v13  ;;  %v5550_v13 = vld [vmem:[#allocation2 + $0xb8] sm:$0xf0] }
 0x35c   : > { %2506 = vrot.lane.b32.xlu0 %v5305_v6, %s5731_s24  ;;  %v5540_v6 = vld [vmem:[#allocation2 + $0x5c] sm:$0xf] }
 0x35d   : > { %2504 = vrot.lane.b32.xlu2 %v5301_v47, %s5731_s24  ;;  %2508 = vrot.lane.b32.xlu1 %v5309_v53, %s5731_s24  ;;  %v5314_v47 = vld [vmem:[#allocation2 + $0x64] sm:$0xf0]  ;;  %v5325_v31 = vor.u32 %v5540_v6, %v5322_v25 }
 0x35e   : > { %v6721_v7 = vpop.permute.xlu0 %2166  ;;  %v5317_v1 = vor.u32 %v5539_v39, %v5314_v47  ;;  %v5417_v39 = vor.u32 %v5564_v38, %v5414_v21  ;;  %v5336_v47 = vld [vmem:[#allocation2 + $0x80] sm:$0xf] }
 0x35f   : > { %10077 = vst [vmem:[#allocation16_spill] sm:$0xff] %v6721_v7  ;;  %v6723_v3 = vpop.permute.xlu2 %2260  ;;  %v6725_v49 = vpop.permute.xlu1 %2120  ;;  %v5337_v6 = vor.u32 %v5546_v45, %v5336_v47  ;;  %v5570_v7 = vld [vmem:[#allocation2 + $0xd0] sm:$0xf] }
 0x360   : > { %10078 = vst [vmem:[#allocation17_spill] sm:$0xff] %v6723_v3 }
 0x364   : > { %2034 = vrot.lane.b32.xlu0 %v5405_v32, %s5734_s22 }
 0x365   : > { %2032 = vrot.lane.b32.xlu2 %v5401_v9, %s5734_s22  ;;  %2514 = vrot.lane.b32.xlu1 %v5321_v10, %s5731_s24 }
 0x366   : > { %v6730_v36 = vpop.permute.xlu0 %2214 }
 0x367   : > { %10079 = vst [vmem:[#allocation18_spill] sm:$0xff] %v6730_v36  ;;  %v6732_v12 = vpop.permute.xlu2 %2308  ;;  %v6734_v62 = vpop.permute.xlu1 %2168 }
 0x368   : > { %10080 = vst [vmem:[#allocation19_spill] sm:$0xff] %v6732_v12  ;;  %v5432_v12 = vld [vmem:[#allocation2 + $0xac] sm:$0xf] }
 0x369   : > { %10081 = vst [vmem:[#allocation20_spill] sm:$0xff] %v6734_v62 }
 0x36c   : > { %2082 = vrot.lane.b32.xlu0 %v5405_v32, %s5723_s21 }
 0x36d   : > { %2080 = vrot.lane.b32.xlu2 %v5401_v9, %s5723_s21  ;;  %2036 = vrot.lane.b32.xlu1 %v5409_v44, %s5734_s22 }
 0x36e   : > { %v6739_v28 = vpop.permute.xlu0 %2262 }
 0x36f   : > { %10082 = vst [vmem:[#allocation21_spill] sm:$0xff] %v6739_v28  ;;  %v6741_v29 = vpop.permute.xlu2 %2356  ;;  %v6743_v58 = vpop.permute.xlu1 %2216  ;;  %v5567_v28 = vld [vmem:[#allocation2 + $0xa8] sm:$0xf] }
 0x370   : > { %10083 = vst [vmem:[#allocation22_spill] sm:$0xff] %v6741_v29 }
 0x371   : > { %10084 = vst [vmem:[#allocation23_spill] sm:$0xff] %v6743_v58 }
 0x374   : > { %2130 = vrot.lane.b32.xlu0 %v5405_v32, %s5735_s14 }
 0x375   : > { %2128 = vrot.lane.b32.xlu2 %v5401_v9, %s5735_s14  ;;  %2084 = vrot.lane.b32.xlu1 %v5409_v44, %s5723_s21 }
 0x376   : > { %v6748_v26 = vpop.permute.xlu0 %2310 }
 0x377   : > { %10085 = vst [vmem:[#allocation24_spill] sm:$0xff] %v6748_v26  ;;  %v6750_v52 = vpop.permute.xlu2 %2026  ;;  %v6752_v2 = vpop.permute.xlu1 %2264 }
 0x378   : > { %10086 = vst [vmem:[#allocation25_spill] sm:$0xff] %v6752_v2 }
 0x37c   : > { %2178 = vrot.lane.b32.xlu0 %v5405_v32, %s5733_s18 }
 0x37d   : > { %2176 = vrot.lane.b32.xlu2 %v5401_v9, %s5733_s18  ;;  %2132 = vrot.lane.b32.xlu1 %v5409_v44, %s5735_s14 }
 0x37e   : > { %v6757_v60 = vpop.permute.xlu0 %2358 }
 0x37f   : > { %10087 = vst [vmem:[#allocation26_spill] sm:$0xff] %v6757_v60  ;;  %v6759_v41 = vpop.permute.xlu2 %2074  ;;  %v6761_v51 = vpop.permute.xlu1 %2312 }
 0x380   : > { %10088 = vst [vmem:[#allocation27_spill] sm:$0xff] %v6761_v51  ;;  %v5568_v51 = vld [vmem:[#allocation2 + $0xb4] sm:$0xf0] }
 0x384   : > { %2226 = vrot.lane.b32.xlu0 %v5405_v32, %s5728_s30 }
 0x385   : > { %2224 = vrot.lane.b32.xlu2 %v5401_v9, %s5728_s30  ;;  %2180 = vrot.lane.b32.xlu1 %v5409_v44, %s5733_s18 }
 0x386   : > { %v6766_v46 = vpop.permute.xlu0 %2500 }
 0x387   : > { %10089 = vst [vmem:[#allocation28_spill] sm:$0xff] %v6766_v46  ;;  %v6768_v54 = vpop.permute.xlu2 %2122  ;;  %v6770_v22 = vpop.permute.xlu1 %2360 }
 0x388   : > { %10090 = vst [vmem:[#allocation29_spill] sm:$0xff] %v6770_v22 }
 0x38c   : > { %2274 = vrot.lane.b32.xlu0 %v5405_v32, %s5736_s23 }
 0x38d   : > { %2272 = vrot.lane.b32.xlu2 %v5401_v9, %s5736_s23  ;;  %2228 = vrot.lane.b32.xlu1 %v5409_v44, %s5728_s30 }
 0x38e   : > { %v6775_v40 = vpop.permute.xlu0 %2028 }
 0x38f   : > { %v6777_v56 = vpop.permute.xlu2 %2170  ;;  %v6779_v59 = vpop.permute.xlu1 %2030 }
 0x390   : > { %10091 = vst [vmem:[#allocation30_spill] sm:$0xff] %v6777_v56  ;;  %v5438_v56 = vld [vmem:[#allocation2 + $0xe0] sm:$0xf0] }
 0x394   : > { %2322 = vrot.lane.b32.xlu0 %v5405_v32, %s5737_s8 }
 0x395   : > { %2320 = vrot.lane.b32.xlu2 %v5401_v9, %s5737_s8  ;;  %2276 = vrot.lane.b32.xlu1 %v5409_v44, %s5736_s23 }
 0x396   : > { %v6784_v4 = vpop.permute.xlu0 %2076 }
 0x397   : > { %v6786_v30 = vpop.permute.xlu2 %2218  ;;  %v6788_v34 = vpop.permute.xlu1 %2078 }
 0x398   : > { %10092 = vst [vmem:[#allocation31_spill] sm:$0xff] %v6786_v30  ;;  %v5548_v30 = vld [vmem:[#allocation2 + $0xac] sm:$0xf] }
 0x39c   : > { %2370 = vrot.lane.b32.xlu0 %v5405_v32, %s5722_s20  ;;  %v5543_v32 = vld [vmem:[#allocation2 + $0x7c] sm:$0xf] }
 0x39d   : > { %2368 = vrot.lane.b32.xlu2 %v5401_v9, %s5722_s20  ;;  %2324 = vrot.lane.b32.xlu1 %v5409_v44, %s5737_s8  ;;  %v5333_v8 = vor.u32 %v5543_v32, %v5330_v43 }
 0x39e   : > { %v6793_v53 = vpop.permute.xlu0 %2124 }
 0x39f   : > { %v6795_v48 = vpop.permute.xlu2 %2266  ;;  %v6797_v16 = vpop.permute.xlu1 %2126 }
 0x3a0   : > { %10093 = vst [vmem:[#allocation32_spill] sm:$0xff] %v6795_v48 }
 0x3a4   : > { %2512 = vrot.lane.b32.xlu0 %v5317_v1, %s5731_s24  ;;  %v5565_v1 = vld [vmem:[#allocation2 + $0x8c] sm:$0xf0] }
 0x3a5   : > { %2516 = vrot.lane.b32.xlu2 %v5325_v31, %s5731_s24  ;;  %2372 = vrot.lane.b32.xlu1 %v5409_v44, %s5722_s20  ;;  %v5412_v44 = vld [vmem:[#allocation2 + $0x7c] sm:$0xf]  ;;  %v5420_v31 = vld [vmem:[#allocation2 + $0x84] sm:$0xf] }
 0x3a6   : > { %v6802_v9 = vpop.permute.xlu0 %2172  ;;  %v5413_v32 = vor.u32 %v5565_v1, %v5412_v44  ;;  %v5421_v38 = vor.u32 %v5566_v37, %v5420_v31 }
 0x3a7   : > { %10094 = vst [vmem:[#allocation33_spill] sm:$0xff] %v6802_v9  ;;  %v6804_v10 = vpop.permute.xlu2 %2314  ;;  %v6806_v55 = vpop.permute.xlu1 %2174  ;;  %v5554_v9 = vld [vmem:[#allocation2 + $0xe0] sm:$0xf0] }
 0x3a8   : > { %10095 = vst [vmem:[#allocation34_spill] sm:$0xff] %v6804_v10 }
 0x3a9   : > { %10096 = vst [vmem:[#allocation35_spill] sm:$0xff] %v6806_v55 }
 0x3ac   : > { %2040 = vrot.lane.b32.xlu0 %v5417_v39, %s5734_s22 }
 0x3ad   : > { %2522 = vrot.lane.b32.xlu2 %v5337_v6, %s5731_s24  ;;  %2520 = vrot.lane.b32.xlu1 %v5333_v8, %s5731_s24 }
 0x3ae   : > { %v6811_v25 = vpop.permute.xlu0 %2220 }
 0x3af   : > { %10097 = vst [vmem:[#allocation36_spill] sm:$0xff] %v6811_v25  ;;  %v6813_v14 = vpop.permute.xlu2 %2362  ;;  %v6815_v42 = vpop.permute.xlu1 %2222  ;;  %v5354_v25 = vld [vmem:[#allocation2 + $0xbc] sm:$0xf0] }
 0x3b0   : > { %10098 = vst [vmem:[#allocation37_spill] sm:$0xff] %v6813_v14 }
 0x3b1   : > { %10099 = vst [vmem:[#allocation38_spill] sm:$0xff] %v6815_v42  ;;  %v5346_v42 = vld [vmem:[#allocation2 + $0xb4] sm:$0xf0] }
 0x3b4   : > { %2088 = vrot.lane.b32.xlu0 %v5417_v39, %s5723_s21 }
 0x3b5   : > { %2038 = vrot.lane.b32.xlu2 %v5413_v32, %s5734_s22  ;;  %2042 = vrot.lane.b32.xlu1 %v5421_v38, %s5734_s22 }
 0x3b6   : > { %v6820_v45 = vpop.permute.xlu0 %2268 }
 0x3b7   : > { %10100 = vst [vmem:[#allocation39_spill] sm:$0xff] %v6820_v45  ;;  %v6822_v8 = vpop.permute.xlu2 %2504  ;;  %v6824_v43 = vpop.permute.xlu1 %2270 }
 0x3b8   : > { %10101 = vst [vmem:[#allocation40_spill] sm:$0xff] %v6824_v43  ;;  %v5569_v43 = vld [vmem:[#allocation2 + $0xbc] sm:$0xf0] }
 0x3bc   : > { %2136 = vrot.lane.b32.xlu0 %v5417_v39, %s5735_s14 }
 0x3bd   : > { %2086 = vrot.lane.b32.xlu2 %v5413_v32, %s5723_s21  ;;  %2090 = vrot.lane.b32.xlu1 %v5421_v38, %s5723_s21 }
 0x3be   : > { %v6829_v21 = vpop.permute.xlu0 %2316 }
 0x3bf   : > { %10102 = vst [vmem:[#allocation41_spill] sm:$0xff] %v6829_v21  ;;  %v6831_v37 = vpop.permute.xlu2 %2032  ;;  %v6833_v47 = vpop.permute.xlu1 %2318 }
 0x3c0   : > { %10103 = vst [vmem:[#allocation42_spill] sm:$0xff] %v6833_v47 }
 0x3c4   : > { %2184 = vrot.lane.b32.xlu0 %v5417_v39, %s5733_s18 }
 0x3c5   : > { %2134 = vrot.lane.b32.xlu2 %v5413_v32, %s5735_s14  ;;  %2138 = vrot.lane.b32.xlu1 %v5421_v38, %s5735_s14 }
 0x3c6   : > { %v6838_v6 = vpop.permute.xlu0 %2364 }
 0x3c7   : > { %10104 = vst [vmem:[#allocation43_spill] sm:$0xff] %v6838_v6  ;;  %v6840_v44 = vpop.permute.xlu2 %2080  ;;  %v6842_v1 = vpop.permute.xlu1 %2366 }
 0x3c8   : > { %10105 = vst [vmem:[#allocation44_spill] sm:$0xff] %v6842_v1 }
 0x3cc   : > { %2232 = vrot.lane.b32.xlu0 %v5417_v39, %s5728_s30 }
 0x3cd   : > { %2182 = vrot.lane.b32.xlu2 %v5413_v32, %s5733_s18  ;;  %2186 = vrot.lane.b32.xlu1 %v5421_v38, %s5733_s18 }
 0x3ce   : > { %v6847_v31 = vpop.permute.xlu0 %2506 }
 0x3cf   : > { %10106 = vst [vmem:[#allocation45_spill] sm:$0xff] %v6847_v31  ;;  %v6849_v46 = vpop.permute.xlu2 %2128  ;;  %v6851_v14 = vpop.permute.xlu1 %2508  ;;  %v5338_v31 = vld [vmem:[#allocation2 + $0x94] sm:$0xf0] }
 0x3d0   : > { %10107 = vst [vmem:[#allocation46_spill] sm:$0xff] %v6851_v14  ;;  %v5341_v21 = vor.u32 %v5544_v35, %v5338_v31  ;;  %v5433_v35 = vor.u32 %v5569_v43, %v5432_v12 }
 0x3d4   : > { %2280 = vrot.lane.b32.xlu0 %v5417_v39, %s5736_s23 }
 0x3d5   : > { %2230 = vrot.lane.b32.xlu2 %v5413_v32, %s5728_s30  ;;  %2234 = vrot.lane.b32.xlu1 %v5421_v38, %s5728_s30 }
 0x3d6   : > { %v6856_v6 = vpop.permute.xlu0 %2034 }
 0x3d7   : > { %v6858_v1 = vpop.permute.xlu2 %2176  ;;  %v6860_v60 = vpop.permute.xlu1 %2514 }
 0x3d8   : > { %10108 = vst [vmem:[#allocation47_spill] sm:$0xff] %v6858_v1 }
 0x3d9   : > { %10109 = vst [vmem:[#allocation48_spill] sm:$0xff] %v6860_v60 }
 0x3dc   : > { %2328 = vrot.lane.b32.xlu0 %v5417_v39, %s5737_s8 }
 0x3dd   : > { %2278 = vrot.lane.b32.xlu2 %v5413_v32, %s5736_s23  ;;  %2282 = vrot.lane.b32.xlu1 %v5421_v38, %s5736_s23 }
 0x3de   : > { %v6865_v22 = vpop.permute.xlu0 %2082 }
 0x3df   : > { %v6867_v14 = vpop.permute.xlu2 %2224  ;;  %v6869_v29 = vpop.permute.xlu1 %2036 }
 0x3e0   : > { %10110 = vst [vmem:[#allocation49_spill] sm:$0xff] %v6867_v14 }
 0x3e4   : > { %2376 = vrot.lane.b32.xlu0 %v5417_v39, %s5722_s20  ;;  %v5424_v39 = vld [vmem:[#allocation2 + $0xa4] sm:$0xf] }
 0x3e5   : > { %2326 = vrot.lane.b32.xlu2 %v5413_v32, %s5737_s8  ;;  %2330 = vrot.lane.b32.xlu1 %v5421_v38, %s5737_s8  ;;  %v5425_v2 = vor.u32 %v5568_v51, %v5424_v39 }
 0x3e6   : > { %v6874_v60 = vpop.permute.xlu0 %2130 }
 0x3e7   : > { %v6876_v47 = vpop.permute.xlu2 %2272  ;;  %v6878_v10 = vpop.permute.xlu1 %2084 }
 0x3e8   : > { %10111 = vst [vmem:[#allocation50_spill] sm:$0xff] %v6876_v47  ;;  %v5426_v47 = vld [vmem:[#allocation2 + $0xb8] sm:$0xf0] }
 0x3e9   : > { %v5429_v31 = vor.u32 %v5567_v28, %v5426_v47 }
 0x3ec   : > { %2524 = vrot.lane.b32.xlu0 %v5341_v21, %s5731_s24 }
 0x3ed   : > { %2374 = vrot.lane.b32.xlu2 %v5413_v32, %s5722_s20  ;;  %2378 = vrot.lane.b32.xlu1 %v5421_v38, %s5722_s20 }
 0x3ee   : > { %v6883_v26 = vpop.permute.xlu0 %2178 }
 0x3ef   : > { %10112 = vst [vmem:[#allocation51_spill] sm:$0xff] %v6883_v26  ;;  %v6885_v48 = vpop.permute.xlu2 %2320  ;;  %v6887_v45 = vpop.permute.xlu1 %2132  ;;  %v5357_v26 = vor.u32 %v5548_v30, %v5354_v25  ;;  %v5441_v30 = vor.u32 %v5570_v7, %v5438_v56 }
 0x3f0   : > { %10113 = vst [vmem:[#allocation52_spill] sm:$0xff] %v6885_v48 }
 0x3f4   : > { %2046 = vrot.lane.b32.xlu0 %v5429_v31, %s5734_s22 }
 0x3f5   : > { %2044 = vrot.lane.b32.xlu2 %v5425_v2, %s5734_s22  ;;  %2048 = vrot.lane.b32.xlu1 %v5433_v35, %s5734_s22 }
 0x3f6   : > { %v6892_v32 = vpop.permute.xlu0 %2226 }
 0x3f7   : > { %10114 = vst [vmem:[#allocation53_spill] sm:$0xff] %v6892_v32  ;;  %v6894_v38 = vpop.permute.xlu2 %2368  ;;  %v6896_v21 = vpop.permute.xlu1 %2180  ;;  %v5547_v32 = vld [vmem:[#allocation2 + $0xa4] sm:$0xf] }
 0x3f8   : > { %10115 = vst [vmem:[#allocation54_spill] sm:$0xff] %v6894_v38 }
 0x3f9   : > { %10116 = vst [vmem:[#allocation55_spill] sm:$0xff] %v6896_v21  ;;  %v5349_v21 = vor.u32 %v5547_v32, %v5346_v42  ;;  %v5572_v32 = vld [vmem:[#allocation2 + $0xe4] sm:$0xf0] }
 0x3fc   : > { %2094 = vrot.lane.b32.xlu0 %v5429_v31, %s5723_s21 }
 0x3fd   : > { %2092 = vrot.lane.b32.xlu2 %v5425_v2, %s5723_s21  ;;  %2096 = vrot.lane.b32.xlu1 %v5433_v35, %s5723_s21 }
 0x3fe   : > { %v6901_v12 = vpop.permute.xlu0 %2274 }
 0x3ff   : > { %10117 = vst [vmem:[#allocation56_spill] sm:$0xff] %v6901_v12  ;;  %v6903_v28 = vpop.permute.xlu2 %2516  ;;  %v6905_v51 = vpop.permute.xlu1 %2228 }
 0x400   : > { %10118 = vst [vmem:[#allocation57_spill] sm:$0xff] %v6903_v28 }
 0x401   : > { %10119 = vst [vmem:[#allocation58_spill] sm:$0xff] %v6905_v51 }
 0x404   : > { %2142 = vrot.lane.b32.xlu0 %v5429_v31, %s5735_s14 }
 0x405   : > { %2140 = vrot.lane.b32.xlu2 %v5425_v2, %s5735_s14  ;;  %2144 = vrot.lane.b32.xlu1 %v5433_v35, %s5735_s14 }
 0x406   : > { %v6910_v43 = vpop.permute.xlu0 %2322 }
 0x407   : > { %10120 = vst [vmem:[#allocation59_spill] sm:$0xff] %v6910_v43  ;;  %v6912_v47 = vpop.permute.xlu2 %2522  ;;  %v6914_v39 = vpop.permute.xlu1 %2276 }
 0x408   : > { %10121 = vst [vmem:[#allocation60_spill] sm:$0xff] %v6912_v47 }
 0x409   : > { %10122 = vst [vmem:[#allocation61_spill] sm:$0xff] %v6914_v39 }
 0x40c   : > { %2190 = vrot.lane.b32.xlu0 %v5429_v31, %s5733_s18 }
 0x40d   : > { %2188 = vrot.lane.b32.xlu2 %v5425_v2, %s5733_s18  ;;  %2192 = vrot.lane.b32.xlu1 %v5433_v35, %s5733_s18 }
 0x40e   : > { %v6919_v28 = vpop.permute.xlu0 %2370 }
 0x40f   : > { %10123 = vst [vmem:[#allocation62_spill] sm:$0xff] %v6919_v28  ;;  %v6921_v38 = vpop.permute.xlu2 %2038  ;;  %v6923_v48 = vpop.permute.xlu1 %2324 }
 0x410   : > { %10124 = vst [vmem:[#allocation63_spill] sm:$0xff] %v6923_v48 }
 0x414   : > { %2238 = vrot.lane.b32.xlu0 %v5429_v31, %s5728_s30 }
 0x415   : > { %2236 = vrot.lane.b32.xlu2 %v5425_v2, %s5728_s30  ;;  %2240 = vrot.lane.b32.xlu1 %v5433_v35, %s5728_s30 }
 0x416   : > { %v6928_v47 = vpop.permute.xlu0 %2512 }
 0x417   : > { %v6930_v43 = vpop.permute.xlu2 %2086  ;;  %v6932_v39 = vpop.permute.xlu1 %2372 }
 0x418   : > { %10125 = vst [vmem:[#allocation64_spill] sm:$0xff] %v6932_v39 }
 0x41c   : > { %2286 = vrot.lane.b32.xlu0 %v5429_v31, %s5736_s23 }
 0x41d   : > { %2284 = vrot.lane.b32.xlu2 %v5425_v2, %s5736_s23  ;;  %2288 = vrot.lane.b32.xlu1 %v5433_v35, %s5736_s23 }
 0x41e   : > { %v6937_v28 = vpop.permute.xlu0 %2040 }
 0x41f   : > { %v6939_v48 = vpop.permute.xlu2 %2134  ;;  %v6941_v12 = vpop.permute.xlu1 %2520 }
 0x424   : > { %2334 = vrot.lane.b32.xlu0 %v5429_v31, %s5737_s8 }
 0x425   : > { %2332 = vrot.lane.b32.xlu2 %v5425_v2, %s5737_s8  ;;  %2336 = vrot.lane.b32.xlu1 %v5433_v35, %s5737_s8 }
 0x426   : > { %v6946_v3 = vpop.permute.xlu0 %2088 }
 0x427   : > { %v6948_v39 = vpop.permute.xlu2 %2182  ;;  %v6950_v51 = vpop.permute.xlu1 %2042 }
 0x428   : > { %10126 = vst [vmem:[#allocation65_spill] sm:$0xff] %v6948_v39  ;;  %v5352_v39 = vld [vmem:[#allocation2 + $0xa8] sm:$0xf] }
 0x429   : > { %v5353_v1 = vor.u32 %v5550_v13, %v5352_v39  ;;  %v5368_v13 = vld [vmem:[#allocation2 + $0xd0] sm:$0xf] }
 0x42a   : > { %v5369_v25 = vor.u32 %v5554_v9, %v5368_v13 }
 0x42c   : > { %2382 = vrot.lane.b32.xlu0 %v5429_v31, %s5722_s20  ;;  %v5571_v31 = vld [vmem:[#allocation2 + $0xdc] sm:$0xf0] }
 0x42d   : > { %2380 = vrot.lane.b32.xlu2 %v5425_v2, %s5722_s20  ;;  %2384 = vrot.lane.b32.xlu1 %v5433_v35, %s5722_s20  ;;  %v5436_v35 = vld [vmem:[#allocation2 + $0xcc] sm:$0xf] }
 0x42e   : > { %v6955_v14 = vpop.permute.xlu0 %2136  ;;  %v5437_v42 = vor.u32 %v5571_v31, %v5436_v35 }
 0x42f   : > { %v6957_v36 = vpop.permute.xlu2 %2230  ;;  %v6959_v58 = vpop.permute.xlu1 %2090 }
 0x430   : > { %10127 = vst [vmem:[#allocation66_spill] sm:$0xff] %v6957_v36 }
 0x434   : > { %2530 = vrot.lane.b32.xlu0 %v5353_v1, %s5731_s24  ;;  %v5444_v1 = vld [vmem:[#allocation2 + $0xd4] sm:$0xf] }
 0x435   : > { %2528 = vrot.lane.b32.xlu2 %v5349_v21, %s5731_s24  ;;  %2532 = vrot.lane.b32.xlu1 %v5357_v26, %s5731_s24 }
 0x436   : > { %v6964_v2 = vpop.permute.xlu0 %2184 }
 0x437   : > { %10128 = vst [vmem:[#allocation67_spill] sm:$0xff] %v6964_v2  ;;  %v6966_v55 = vpop.permute.xlu2 %2278  ;;  %v6968_v36 = vpop.permute.xlu1 %2138  ;;  %v5552_v2 = vld [vmem:[#allocation2 + $0xd4] sm:$0xf] }
 0x438   : > { %10129 = vst [vmem:[#allocation68_spill] sm:$0xff] %v6966_v55  ;;  %v5445_v55 = vor.u32 %v5572_v32, %v5444_v1 }
 0x43c   : > { %2052 = vrot.lane.b32.xlu0 %v5441_v30, %s5734_s22 }
 0x43d   : > { %2050 = vrot.lane.b32.xlu2 %v5437_v42, %s5734_s22  ;;  %2538 = vrot.lane.b32.xlu1 %v5369_v25, %s5731_s24 }
 0x43e   : > { %v6973_v26 = vpop.permute.xlu0 %2232 }
 0x43f   : > { %10130 = vst [vmem:[#allocation69_spill] sm:$0xff] %v6973_v26  ;;  %v6975_v21 = vpop.permute.xlu2 %2326  ;;  %v6977_v39 = vpop.permute.xlu1 %2186  ;;  %v5551_v26 = vld [vmem:[#allocation2 + $0xcc] sm:$0xf] }
 0x440   : > { %10131 = vst [vmem:[#allocation70_spill] sm:$0xff] %v6975_v21 }
 0x441   : > { %10132 = vst [vmem:[#allocation71_spill] sm:$0xff] %v6977_v39  ;;  %v5370_v39 = vld [vmem:[#allocation2 + $0xe4] sm:$0xf0] }
 0x444   : > { %2100 = vrot.lane.b32.xlu0 %v5441_v30, %s5723_s21 }
 0x445   : > { %2098 = vrot.lane.b32.xlu2 %v5437_v42, %s5723_s21  ;;  %2054 = vrot.lane.b32.xlu1 %v5445_v55, %s5734_s22 }
 0x446   : > { %v6982_v7 = vpop.permute.xlu0 %2280 }
 0x447   : > { %10133 = vst [vmem:[#allocation72_spill] sm:$0xff] %v6982_v7  ;;  %v6984_v56 = vpop.permute.xlu2 %2374  ;;  %v6986_v9 = vpop.permute.xlu1 %2234 }
 0x448   : > { %10134 = vst [vmem:[#allocation73_spill] sm:$0xff] %v6984_v56 }
 0x449   : > { %10135 = vst [vmem:[#allocation74_spill] sm:$0xff] %v6986_v9  ;;  %v5362_v9 = vld [vmem:[#allocation2 + $0xdc] sm:$0xf0] }
 0x44a   : > { %v5365_v20 = vor.u32 %v5551_v26, %v5362_v9  ;;  %v2057_v26 = vsel %vm1201_vm12, %v6694_v19, %v6707_v27 }
 0x44c   : > { %2148 = vrot.lane.b32.xlu0 %v5441_v30, %s5735_s14 }
 0x44d   : > { %2146 = vrot.lane.b32.xlu2 %v5437_v42, %s5735_s14  ;;  %2102 = vrot.lane.b32.xlu1 %v5445_v55, %s5723_s21  ;;  %s9547_s21 = scalar_lea.vmem %s9930_s7, %s5510_s13 }
 0x44e   : > { %v6991_v35 = vpop.permute.xlu0 %2328 }
 0x44f   : > { %10136 = vst [vmem:[#allocation75_spill] sm:$0xff] %v6991_v35  ;;  %v6993_v31 = vpop.permute.xlu2 %2044  ;;  %v6995_v13 = vpop.permute.xlu1 %2282 }
 0x450   : > { %10137 = vst [vmem:[#allocation76_spill] sm:$0xff] %v6995_v13 }
 0x454   : > { %2196 = vrot.lane.b32.xlu0 %v5441_v30, %s5733_s18 }
 0x455   : > { %2194 = vrot.lane.b32.xlu2 %v5437_v42, %s5733_s18  ;;  %2150 = vrot.lane.b32.xlu1 %v5445_v55, %s5735_s14 }
 0x456   : > { %v7000_v25 = vpop.permute.xlu0 %2376 }
 0x457   : > { %10138 = vst [vmem:[#allocation77_spill] sm:$0xff] %v7000_v25  ;;  %v7002_v1 = vpop.permute.xlu2 %2092  ;;  %v7004_v32 = vpop.permute.xlu1 %2330 }
 0x458   : > { %10139 = vst [vmem:[#allocation78_spill] sm:$0xff] %v7004_v32 }
 0x45c   : > { %2244 = vrot.lane.b32.xlu0 %v5441_v30, %s5728_s30 }
 0x45d   : > { %2242 = vrot.lane.b32.xlu2 %v5437_v42, %s5728_s30  ;;  %2198 = vrot.lane.b32.xlu1 %v5445_v55, %s5733_s18  ;;  %s5739_s18 = smov 56  }
 0x45e   : > { %v7009_v56 = vpop.permute.xlu0 %2524 }
 0x45f   : > { %10140 = vst [vmem:[#allocation79_spill] sm:$0xff] %v7009_v56  ;;  %v7011_v35 = vpop.permute.xlu2 %2140  ;;  %v7013_v21 = vpop.permute.xlu1 %2378 }
 0x460   : > { %10141 = vst [vmem:[#allocation80_spill] sm:$0xff] %v7013_v21 }
 0x464   : > { %2292 = vrot.lane.b32.xlu0 %v5441_v30, %s5736_s23 }
 0x465   : > { %2290 = vrot.lane.b32.xlu2 %v5437_v42, %s5736_s23  ;;  %2246 = vrot.lane.b32.xlu1 %v5445_v55, %s5728_s30  ;;  %s5738_s30 = smov 74  }
 0x466   : > { %v7018_v25 = vpop.permute.xlu0 %2046 }
 0x467   : > { %v7020_v32 = vpop.permute.xlu2 %2188  ;;  %v7022_v7 = vpop.permute.xlu1 %2048 }
 0x468   : > { %10142 = vst [vmem:[#allocation81_spill] sm:$0xff] %v7020_v32 }
 0x46c   : > { %2340 = vrot.lane.b32.xlu0 %v5441_v30, %s5737_s8 }
 0x46d   : > { %2338 = vrot.lane.b32.xlu2 %v5437_v42, %s5737_s8  ;;  %2294 = vrot.lane.b32.xlu1 %v5445_v55, %s5736_s23 }
 0x46e   : > { %v7027_v56 = vpop.permute.xlu0 %2094 }
 0x46f   : > { %v7029_v21 = vpop.permute.xlu2 %2236  ;;  %v7031_v13 = vpop.permute.xlu1 %2096 }
 0x470   : > { %10143 = vst [vmem:[#allocation82_spill] sm:$0xff] %v7029_v21  ;;  %v5373_v21 = vor.u32 %v5552_v2, %v5370_v39  ;;  %v2105_v39 = vsel %vm1021_vm15, %v6703_v50, %v6716_v24 }
 0x474   : > { %2388 = vrot.lane.b32.xlu0 %v5441_v30, %s5722_s20 }
 0x475   : > { %2386 = vrot.lane.b32.xlu2 %v5437_v42, %s5722_s20  ;;  %2342 = vrot.lane.b32.xlu1 %v5445_v55, %s5737_s8  ;;  %s5742_s8 = smov 2  }
 0x476   : > { %v7036_v32 = vpop.permute.xlu0 %2142 }
 0x477   : > { %v7038_v62 = vpop.permute.xlu2 %2284  ;;  %v7040_v11 = vpop.permute.xlu1 %2144 }
 0x47c   : > { %2536 = vrot.lane.b32.xlu0 %v5365_v20, %s5731_s24  ;;  %v2056_v20 = vsel %vm1201_vm12, %v6684_v5, %v6694_v19 }
 0x47d   : > { %2540 = vrot.lane.b32.xlu2 %v5373_v21, %s5731_s24  ;;  %2390 = vrot.lane.b32.xlu1 %v5445_v55, %s5722_s20 }
 0x47e   : > { %v7045_v42 = vpop.permute.xlu0 %2190 }
 0x47f   : > { %v7047_v30 = vpop.permute.xlu2 %2332  ;;  %v7049_v57 = vpop.permute.xlu1 %2192 }
 0x480   : > { %10144 = vst [vmem:[#allocation83_spill] sm:$0xff] %v7047_v30 }
 0x484   : > { %2542 = vrot.lane.b32.xlu0 %v6684_v5, %s5731_s24  ;;  %v2104_v5 = vsel %vm1021_vm15, %v6689_v15, %v6703_v50 }
 0x485   : > { %2546 = vrot.lane.b32.xlu2 %v2057_v26, %s5731_s24  ;;  %2544 = vrot.lane.b32.xlu1 %v2056_v20, %s5731_s24  ;;  %v2153_v20 = vsel %vm1225_vm11, %v6712_v23, %v6725_v49 }
 0x486   : > { %v7061_v55 = vpop.permute.xlu0 %2238 }
 0x487   : > { %v7063_v2 = vpop.permute.xlu2 %2380  ;;  %v7065_v21 = vpop.permute.xlu1 %2240 }
 0x488   : > { %10145 = vst [vmem:[#allocation84_spill] sm:$0xff] %v7063_v2  ;;  %v2058_v2 = vsel %vm1201_vm12, %v6750_v52, %v6775_v40 }
 0x48c   : > { %2590 = vrot.lane.b32.xlu0 %v6689_v15, %s5731_s24  ;;  %v2152_v15 = vsel %vm1225_vm11, %v6696_v61, %v6712_v23 }
 0x48d   : > { %2594 = vrot.lane.b32.xlu2 %v2105_v39, %s5731_s24  ;;  %2592 = vrot.lane.b32.xlu1 %v2104_v5, %s5731_s24 }
 0x48e   : > { %v7077_v19 = vpop.permute.xlu0 %2286 }
 0x48f   : > { %v7079_v9 = vpop.permute.xlu2 %2528  ;;  %v7081_v26 = vpop.permute.xlu1 %2288 }
 0x494   : > { %2638 = vrot.lane.b32.xlu0 %v6696_v61, %s5731_s24 }
 0x495   : > { %2642 = vrot.lane.b32.xlu2 %v2153_v20, %s5731_s24  ;;  %2640 = vrot.lane.b32.xlu1 %v2152_v15, %s5731_s24 }
 0x496   : > { %v7093_v50 = vpop.permute.xlu0 %2334 }
 0x497   : > { %v7095_v39 = vpop.permute.xlu2 %2050  ;;  %v7097_v5 = vpop.permute.xlu1 %2336 }
 0x498   : > { %10146 = vst [vmem:[#allocation85_spill] sm:$0xff] %v7097_v5  ;;  %v2060_v5 = vsel %vm1201_vm12, %v6831_v37, %v6856_v6 }
 0x49c   : > { %2548 = vrot.lane.b32.xlu0 %v6707_v27, %s5731_s24  ;;  %v2106_v27 = vsel %vm1021_vm15, %v6759_v41, %v6784_v4 }
 0x49d   : > { %2552 = vrot.lane.b32.xlu2 %v2058_v2, %s5731_s24  ;;  %2550 = vrot.lane.b32.xlu1 %v6750_v52, %s5731_s24 }
 0x49e   : > { %v7107_v61 = vpop.permute.xlu0 %2382 }
 0x49f   : > { %10147 = vst [vmem:[#allocation86_spill] sm:$0xff] %v7107_v61  ;;  %v7109_v23 = vpop.permute.xlu2 %2098  ;;  %v7111_v20 = vpop.permute.xlu1 %2384  ;;  %v2107_v61 = vsel %vm1021_vm15, %v6784_v4, %v6788_v34  ;;  %v2061_v4 = vsel %vm1201_vm12, %v6856_v6, %v6869_v29  ;;  %v2109_v6 = vsel %vm1021_vm15, %v6865_v22, %v6878_v10 }
 0x4a0   : > { %10148 = vst [vmem:[#allocation87_spill] sm:$0xff] %v7111_v20  ;;  %v2154_v20 = vsel %vm1225_vm11, %v6768_v54, %v6793_v53 }
 0x4a4   : > { %2596 = vrot.lane.b32.xlu0 %v6716_v24, %s5731_s24 }
 0x4a5   : > { %2600 = vrot.lane.b32.xlu2 %v2106_v27, %s5731_s24  ;;  %2598 = vrot.lane.b32.xlu1 %v6759_v41, %s5731_s24 }
 0x4a6   : > { %v7121_v2 = vpop.permute.xlu0 %2530 }
 0x4a7   : > { %10149 = vst [vmem:[#allocation88_spill] sm:$0xff] %v7121_v2  ;;  %v7123_v52 = vpop.permute.xlu2 %2146  ;;  %v7125_v15 = vpop.permute.xlu1 %2532 }
 0x4a8   : > { %10150 = vst [vmem:[#allocation89_spill] sm:$0xff] %v7125_v15  ;;  %v2059_v15 = vsel %vm1201_vm12, %v6775_v40, %v6779_v59 }
 0x4ac   : > { %2644 = vrot.lane.b32.xlu0 %v6725_v49, %s5731_s24 }
 0x4ad   : > { %2648 = vrot.lane.b32.xlu2 %v2154_v20, %s5731_s24  ;;  %2646 = vrot.lane.b32.xlu1 %v6768_v54, %s5731_s24 }
 0x4ae   : > { %v7135_v24 = vpop.permute.xlu0 %2052 }
 0x4af   : > { %v7137_v41 = vpop.permute.xlu2 %2194  ;;  %v7139_v27 = vpop.permute.xlu1 %2538 }
 0x4b0   : > { %10151 = vst [vmem:[#allocation90_spill] sm:$0xff] %v7139_v27 }
 0x4b4   : > { %2554 = vrot.lane.b32.xlu0 %v2059_v15, %s5731_s24 }
 0x4b5   : > { %2558 = vrot.lane.b32.xlu2 %v6831_v37, %s5731_s24  ;;  %2556 = vrot.lane.b32.xlu1 %v6779_v59, %s5731_s24  ;;  %v2108_v37 = vsel %vm1021_vm15, %v6840_v44, %v6865_v22  ;;  %v2062_v22 = vsel %vm1201_vm12, %v6921_v38, %v6937_v28 }
 0x4b6   : > { %v7149_v49 = vpop.permute.xlu0 %2100 }
 0x4b7   : > { %v7151_v54 = vpop.permute.xlu2 %2242  ;;  %v7153_v20 = vpop.permute.xlu1 %2054 }
 0x4bc   : > { %2602 = vrot.lane.b32.xlu0 %v2107_v61, %s5731_s24 }
 0x4bd   : > { %2606 = vrot.lane.b32.xlu2 %v6840_v44, %s5731_s24  ;;  %2604 = vrot.lane.b32.xlu1 %v6788_v34, %s5731_s24  ;;  %v2063_v44 = vsel %vm1201_vm12, %v6937_v28, %v6950_v51 }
 0x4be   : > { %v7163_v40 = vpop.permute.xlu0 %2148 }
 0x4bf   : > { %v7165_v59 = vpop.permute.xlu2 %2290  ;;  %v7167_v15 = vpop.permute.xlu1 %2102 }
 0x4c4   : > { %2560 = vrot.lane.b32.xlu0 %v2060_v5, %s5731_s24 }
 0x4c5   : > { %2564 = vrot.lane.b32.xlu2 %v6869_v29, %s5731_s24  ;;  %2562 = vrot.lane.b32.xlu1 %v2061_v4, %s5731_s24 }
 0x4c6   : > { %v7179_v34 = vpop.permute.xlu0 %2196 }
 0x4c7   : > { %v7181_v61 = vpop.permute.xlu2 %2338  ;;  %v7183_v30 = vpop.permute.xlu1 %2150 }
 0x4c8   : > { %10152 = vst [vmem:[#allocation91_spill] sm:$0xff] %v7181_v61 }
 0x4cc   : > { %2608 = vrot.lane.b32.xlu0 %v2108_v37, %s5731_s24 }
 0x4cd   : > { %2612 = vrot.lane.b32.xlu2 %v6878_v10, %s5731_s24  ;;  %2610 = vrot.lane.b32.xlu1 %v2109_v6, %s5731_s24 }
 0x4ce   : > { %v7195_v29 = vpop.permute.xlu0 %2244 }
 0x4cf   : > { %v7197_v5 = vpop.permute.xlu2 %2386  ;;  %v7199_v4 = vpop.permute.xlu1 %2198 }
 0x4d0   : > { %10153 = vst [vmem:[#allocation92_spill] sm:$0xff] %v7197_v5  ;;  %v2111_v5 = vsel %vm1021_vm15, %v6946_v3, %v6959_v58 }
 0x4d4   : > { %2566 = vrot.lane.b32.xlu0 %v6921_v38, %s5731_s24  ;;  %v2110_v38 = vsel %vm1021_vm15, %v6930_v43, %v6946_v3 }
 0x4d5   : > { %2570 = vrot.lane.b32.xlu2 %v2063_v44, %s5731_s24  ;;  %2568 = vrot.lane.b32.xlu1 %v2062_v22, %s5731_s24 }
 0x4d6   : > { %v7211_v10 = vpop.permute.xlu0 %2292 }
 0x4d7   : > { %v7213_v37 = vpop.permute.xlu2 %2540  ;;  %v7215_v6 = vpop.permute.xlu1 %2246 }
 0x4d8   : > { %10154 = vst [vmem:[#allocation93_spill] sm:$0xff] %v7213_v37  ;;  %v2064_v37 = vsel %vm1201_vm12, %v6993_v31, %v7018_v25 }
 0x4dc   : > { %2614 = vrot.lane.b32.xlu0 %v6930_v43, %s5731_s24 }
 0x4dd   : > { %2618 = vrot.lane.b32.xlu2 %v2111_v5, %s5731_s24  ;;  %2616 = vrot.lane.b32.xlu1 %v2110_v38, %s5731_s24  ;;  %v2112_v38 = vsel %vm1021_vm15, %v7002_v1, %v7027_v56 }
 0x4de   : > { %v7227_v28 = vpop.permute.xlu0 %2340 }
 0x4df   : > { %10155 = vst [vmem:[#allocation94_spill] sm:$0xff] %v7227_v28  ;;  %v7229_v44 = vpop.permute.xlu2 %2546  ;;  %v7231_v22 = vpop.permute.xlu1 %2294 }
 0x4e0   : > { %10156 = vst [vmem:[#allocation95_spill] sm:$0xff] %v7229_v44 }
 0x4e4   : > { %2572 = vrot.lane.b32.xlu0 %v6950_v51, %s5731_s24 }
 0x4e5   : > { %2576 = vrot.lane.b32.xlu2 %v2064_v37, %s5731_s24  ;;  %2574 = vrot.lane.b32.xlu1 %v6993_v31, %s5731_s24 }
 0x4e6   : > { %v7241_v3 = vpop.permute.xlu0 %2388 }
 0x4e7   : > { %10157 = vst [vmem:[#allocation96_spill] sm:$0xff] %v7241_v3  ;;  %v7243_v43 = vpop.permute.xlu2 %2594  ;;  %v7245_v5 = vpop.permute.xlu1 %2342  ;;  %v2114_v3 = vsel %vm1021_vm15, %v7109_v23, %v7149_v49 }
 0x4e8   : > { %10158 = vst [vmem:[#allocation97_spill] sm:$0xff] %v7243_v43  ;;  %v2065_v43 = vsel %vm1201_vm12, %v7018_v25, %v7022_v7 }
 0x4e9   : > { %10159 = vst [vmem:[#allocation98_spill] sm:$0xff] %v7245_v5 }
 0x4ec   : > { %2620 = vrot.lane.b32.xlu0 %v6959_v58, %s5731_s24 }
 0x4ed   : > { %2624 = vrot.lane.b32.xlu2 %v2112_v38, %s5731_s24  ;;  %2622 = vrot.lane.b32.xlu1 %v7002_v1, %s5731_s24 }
 0x4ee   : > { %v7255_v51 = vpop.permute.xlu0 %2536 }
 0x4ef   : > { %v7257_v31 = vpop.permute.xlu2 %2642  ;;  %v7259_v37 = vpop.permute.xlu1 %2390 }
 0x4f0   : > { %10160 = vst [vmem:[#allocation99_spill] sm:$0xff] %v7257_v31  ;;  %v2113_v31 = vsel %vm1021_vm15, %v7027_v56, %v7031_v13 }
 0x4f1   : > { %10161 = vst [vmem:[#allocation100_spill] sm:$0xff] %v7259_v37  ;;  %v2066_v37 = vsel %vm1201_vm12, %v7095_v39, %v7135_v24 }
 0x4f4   : > { %2578 = vrot.lane.b32.xlu0 %v2065_v43, %s5731_s24 }
 0x4f5   : > { %2582 = vrot.lane.b32.xlu2 %v7095_v39, %s5731_s24  ;;  %2580 = vrot.lane.b32.xlu1 %v7022_v7, %s5731_s24  ;;  %v2067_v39 = vsel %vm1201_vm12, %v7135_v24, %v7153_v20  ;;  %v2115_v24 = vsel %vm1021_vm15, %v7149_v49, %v7167_v15  ;;  %v2156_v49 = vsel %vm1225_vm11, %v6849_v46, %v6874_v60  ;;  %vm10408_vm15 = vcmask 130048  }
 0x4f6   : > { %v2543_v58 = vpop.permute.xlu0 %2542 }
 0x4f7   : > { %v7269_v1 = vpop.permute.xlu2 %2552  ;;  %v7271_v38 = vpop.permute.xlu1 %2544 }
 0x4fc   : > { %2626 = vrot.lane.b32.xlu0 %v2113_v31, %s5731_s24 }
 0x4fd   : > { %2630 = vrot.lane.b32.xlu2 %v7109_v23, %s5731_s24  ;;  %2628 = vrot.lane.b32.xlu1 %v7031_v13, %s5731_s24  ;;  %v2155_v23 = vsel %vm1225_vm11, %v6793_v53, %v6797_v16 }
 0x4fe   : > { %v7281_v25 = vpop.permute.xlu0 %2590 }
 0x4ff   : > { %v7283_v7 = vpop.permute.xlu2 %2600  ;;  %v7285_v43 = vpop.permute.xlu1 %2592 }
 0x500   : > { %10162 = vst [vmem:[#allocation101_spill] sm:$0xff] %v7285_v43 }
 0x504   : > { %2584 = vrot.lane.b32.xlu0 %v2066_v37, %s5731_s24 }
 0x505   : > { %2654 = vrot.lane.b32.xlu2 %v6849_v46, %s5731_s24  ;;  %2652 = vrot.lane.b32.xlu1 %v6797_v16, %s5731_s24  ;;  %v2941_v16 = vsel %vm1174_vm2, %v6281_v63, %v7255_v51  ;;  %v2938_v63 = vsel %vm1174_vm2, %v6279_v18, %v7079_v9  ;;  %v2158_v18 = vsel %vm1225_vm11, %v6939_v48, %v6955_v14 }
 0x506   : > { %v7295_v56 = vpop.permute.xlu0 %2638 }
 0x507   : > { %v7297_v13 = vpop.permute.xlu2 %2648  ;;  %v7299_v31 = vpop.permute.xlu1 %2640 }
 0x50c   : > { %2632 = vrot.lane.b32.xlu0 %v2114_v3, %s5731_s24 }
 0x50d   : > { %2588 = vrot.lane.b32.xlu2 %v7153_v20, %s5731_s24  ;;  %2586 = vrot.lane.b32.xlu1 %v2067_v39, %s5731_s24  ;;  %v2944_v20 = vsel %vm1174_vm2, %v2543_v58, %v7271_v38 }
 0x50e   : > { %v7311_v37 = vpop.permute.xlu0 %2548 }
 0x50f   : > { %10163 = vst [vmem:[#allocation102_spill] sm:$0xff] %v7311_v37  ;;  %v7313_v5 = vpop.permute.xlu2 %2558  ;;  %v2551_v28 = vpop.permute.xlu1 %2550  ;;  %v10182_v37 = vld [vmem:[#allocation33_spill] sm:$0xff] }
 0x510   : > { %v2947_v61 = vsel %vm1174_vm2, %v2551_v28, %v7269_v1 }
 0x511   : > { %3257 = vmatpush.bf16.msra.mxu3 %v2947_v61 }
 0x514   : > { %2650 = vrot.lane.b32.xlu0 %v2155_v23, %s5731_s24 }
 0x515   : > { %2636 = vrot.lane.b32.xlu2 %v7167_v15, %s5731_s24  ;;  %2634 = vrot.lane.b32.xlu1 %v2115_v24, %s5731_s24  ;;  %v2157_v15 = vsel %vm1225_vm11, %v6874_v60, %v6887_v45  ;;  %v2935_v60 = vsel %vm1174_vm2, %v6283_v33, %v6941_v12  ;;  %v2932_v33 = vsel %vm1174_vm2, %v6275_v17, %v6928_v47  ;;  %v5520_v17 = vld [vmem:[%s9928_s5 + $0x18] sm:$0xf0] }
 0x516   : > { %3258 = vmatpush.bf16.msra.mxu3 %v2944_v20  ;;  %v7329_v61 = vpop.permute.xlu0 %2596  ;;  %v2929_v20 = vsel %vm1174_vm2, %v6273_v0, %v6822_v8  ;;  %v10169_v0 = vld [vmem:[#allocation13_spill] sm:$0xff] }
 0x517   : > { %10164 = vst [vmem:[#allocation103_spill] sm:$0xff] %v7329_v61  ;;  %v7331_v28 = vpop.permute.xlu2 %2606  ;;  %v7333_v53 = vpop.permute.xlu1 %2598 }
 0x51a   : > { %3259 = vmatpush.bf16.msra.mxu3 %v2941_v16  ;;  %v10170_v16 = vld [vmem:[#allocation11_spill] sm:$0xff] }
 0x51c   : > { %2656 = vrot.lane.b32.xlu0 %v2156_v49, %s5731_s24  ;;  %v2926_v49 = vsel %vm1174_vm2, %v10170_v16, %v10169_v0 }
 0x51d   : > { %2660 = vrot.lane.b32.xlu2 %v6887_v45, %s5731_s24  ;;  %2658 = vrot.lane.b32.xlu1 %v2157_v15, %s5731_s24  ;;  %v2159_v45 = vsel %vm1225_vm11, %v6955_v14, %v6968_v36  ;;  %v5448_v14 = vld [vmem:[%s9928_s5] sm:$0xf] }
 0x51e   : > { %3260 = vmatpush.bf16.msra.mxu3 %v2938_v63  ;;  %v7351_v3 = vpop.permute.xlu0 %2644  ;;  %v7399_v15 = vor.u32 %v5520_v17, %v5448_v14  ;;  %v2162_v14 = vsel %vm1225_vm11, %v7123_v52, %v7163_v40 }
 0x51f   : > { %10165 = vst [vmem:[#allocation104_spill] sm:$0xff] %v7351_v3  ;;  %v7353_v58 = vpop.permute.xlu2 %2564  ;;  %v7355_v46 = vpop.permute.xlu1 %2646 }
 0x520   : > { %10166 = vst [vmem:[#allocation105_spill] sm:$0xff] %v7353_v58  ;;  %v10184_v58 = vld [vmem:[#allocation35_spill] sm:$0xff] }
 0x521   : > { %10171 = vst [vmem:[#allocation13_spill] sm:$0xff] %v7399_v15 }
 0x522   : > { %3261 = vmatpush.bf16.msra.mxu3 %v2935_v60 }
 0x524   : > { %2662 = vrot.lane.b32.xlu0 %v6939_v48, %s5731_s24  ;;  %v2160_v48 = vsel %vm1225_vm11, %v7011_v35, %v7036_v32 }
 0x525   : > { %2666 = vrot.lane.b32.xlu2 %v2159_v45, %s5731_s24  ;;  %2664 = vrot.lane.b32.xlu1 %v2158_v18, %s5731_s24  ;;  %v2161_v45 = vsel %vm1225_vm11, %v7036_v32, %v7040_v11  ;;  %v5527_v32 = vld [vmem:[%s9928_s5 + $0x50] sm:$0xf0] }
 0x526   : > { %3262 = vmatpush.bf16.msra.mxu3 %v2932_v33  ;;  %v7373_v39 = vpop.permute.xlu0 %2554 }
 0x527   : > { %10167 = vst [vmem:[#allocation106_spill] sm:$0xff] %v7373_v39  ;;  %v7375_v23 = vpop.permute.xlu2 %2612  ;;  %v7377_v24 = vpop.permute.xlu1 %2556 }
 0x528   : > { %10168 = vst [vmem:[#allocation107_spill] sm:$0xff] %v7377_v24  ;;  %v10183_v24 = vld [vmem:[#allocation30_spill] sm:$0xff] }
 0x529   : > { %v2202_v3 = vsel %vm1234_vm10, %v10183_v24, %v10182_v37 }
 0x52a   : > { %3263 = vmatpush.bf16.msra.mxu3 %v2929_v20  ;;  %v5476_v20 = vld [vmem:[%s9928_s5 + $0x38] sm:$0xf] }
 0x52b   : > { %v7438_v17 = vor.u32 %v5527_v32, %v5476_v20 }
 0x52c   : > { %2668 = vrot.lane.b32.xlu0 %v6968_v36, %s5731_s24 }
 0x52d   : > { %2672 = vrot.lane.b32.xlu2 %v2160_v48, %s5731_s24  ;;  %2670 = vrot.lane.b32.xlu1 %v7011_v35, %s5731_s24  ;;  %10176 = vst [vmem:[#allocation111_spill] sm:$0xff] %v7438_v17 }
 0x52e   : > { %3264 = vmatpush.bf16.msra.mxu3 %v2926_v49  ;;  %v7401_v63 = vpop.permute.xlu0 %2602 }
 0x52f   : > { %v7403_v60 = vpop.permute.xlu2 %2570  ;;  %v7405_v36 = vpop.permute.xlu1 %2604 }
 0x530   : > { %10172 = vst [vmem:[#allocation11_spill] sm:$0xff] %v7403_v60 }
 0x531   : > { %10173 = vst [vmem:[#allocation108_spill] sm:$0xff] %v7405_v36  ;;  %3265 = vmatmul.bf16.vlgmr.msra.gmra.mxu3 %v7399_v15 }
 0x534   : > { %2674 = vrot.lane.b32.xlu0 %v2161_v45, %s5731_s24  ;;  %v10178_v45 = vld [vmem:[#allocation20_spill] sm:$0xff] }
 0x535   : > { %2678 = vrot.lane.b32.xlu2 %v7123_v52, %s5731_s24  ;;  %2676 = vrot.lane.b32.xlu1 %v7040_v11, %s5731_s24  ;;  %v2163_v11 = vsel %vm1225_vm11, %v7163_v40, %v7183_v30  ;;  %v10177_v52 = vld [vmem:[#allocation14_spill] sm:$0xff]  ;;  %v10179_v40 = vld [vmem:[#allocation16_spill] sm:$0xff] }
 0x536   : > { %v7416_v35 = vpop.permute.xlu0 %2560 }
 0x537   : > { %10174 = vst [vmem:[#allocation109_spill] sm:$0xff] %v7416_v35  ;;  %v7418_v18 = vpop.permute.xlu2 %2618  ;;  %v7420_v33 = vpop.permute.xlu1 %2562 }
 0x538   : > { %10175 = vst [vmem:[#allocation110_spill] sm:$0xff] %v7420_v33  ;;  %v10185_v33 = vld [vmem:[#allocation47_spill] sm:$0xff] }
 0x53c   : > { %2680 = vrot.lane.b32.xlu0 %v2162_v14, %s5731_s24  ;;  %v2201_v14 = vsel %vm1234_vm10, %v10179_v40, %v10178_v45 }
 0x53d   : > { %2684 = vrot.lane.b32.xlu2 %v7183_v30, %s5731_s24  ;;  %2682 = vrot.lane.b32.xlu1 %v2163_v11, %s5731_s24  ;;  %v2200_v30 = vsel %vm1234_vm10, %v10177_v52, %v10179_v40 }
 0x53e   : > { %v7440_v48 = vpop.permute.xlu0 %2608 }
 0x53f   : > { %v7442_v16 = vpop.permute.xlu2 %2576  ;;  %v7444_v49 = vpop.permute.xlu1 %2610 }
 0x541   : > { %3270 = vmatmul.bf16.gmra.mxu3 %v7438_v17 }
 0x544   : > { %2686 = vrot.lane.b32.xlu0 %v10177_v52, %s5731_s24 }
 0x545   : > { %2690 = vrot.lane.b32.xlu2 %v2201_v14, %s5731_s24  ;;  %2688 = vrot.lane.b32.xlu1 %v2200_v30, %s5731_s24 }
 0x546   : > { %v7457_v20 = vpop.permute.xlu0 %2566 }
 0x547   : > { %v7459_v32 = vpop.permute.xlu2 %2624  ;;  %v7461_v11 = vpop.permute.xlu1 %2568 }
 0x548   : > { %10180 = vst [vmem:[#allocation14_spill] sm:$0xff] %v7459_v32 }
 0x549   : > { %10181 = vst [vmem:[#allocation20_spill] sm:$0xff] %v7461_v11 }
 0x54c   : > { %2692 = vrot.lane.b32.xlu0 %v10178_v45, %s5731_s24  ;;  %v2203_v45 = vsel %vm1234_vm10, %v10182_v37, %v10184_v58  ;;  %v2965_v37 = vsel %vm1174_vm2, %v7333_v53, %v7283_v7  ;;  %v2962_v53 = vsel %vm1174_vm2, %v7281_v25, %v7285_v43  ;;  %v10193_v43 = vld [vmem:[#allocation81_spill] sm:$0xff] }
 0x54d   : > { %2696 = vrot.lane.b32.xlu2 %v2202_v3, %s5731_s24  ;;  %2694 = vrot.lane.b32.xlu1 %v10183_v24, %s5731_s24  ;;  %v2968_v3 = vsel %vm1174_vm2, %v7331_v28, %v7440_v48  ;;  %v2208_v36 = vsel %vm1234_vm10, %v10193_v43, %v7045_v42 }
 0x54e   : > { %v2615_v52 = vpop.permute.xlu0 %2614 }
 0x54f   : > { %v2583_v40 = vpop.permute.xlu2 %2582  ;;  %v7471_v14 = vpop.permute.xlu1 %2616 }
 0x550   : > { %v2971_v30 = vsel %vm1174_vm2, %v2615_v52, %v7471_v14 }
 0x551   : > { %3276 = vmatpush.bf16.msrb.mxu3 %v2971_v30 }
 0x554   : > { %2698 = vrot.lane.b32.xlu0 %v2203_v45, %s5731_s24  ;;  %v10187_v45 = vld [vmem:[#allocation51_spill] sm:$0xff] }
 0x555   : > { %2702 = vrot.lane.b32.xlu2 %v10185_v33, %s5731_s24  ;;  %2700 = vrot.lane.b32.xlu1 %v10184_v58, %s5731_s24  ;;  %v2204_v60 = vsel %vm1234_vm10, %v10185_v33, %v10187_v45  ;;  %v10188_v58 = vld [vmem:[#allocation55_spill] sm:$0xff] }
 0x556   : > { %3277 = vmatpush.bf16.msrb.mxu3 %v2968_v3  ;;  %v7486_v24 = vpop.permute.xlu0 %2572  ;;  %v2205_v28 = vsel %vm1234_vm10, %v10187_v45, %v10188_v58  ;;  %v10190_v45 = vld [vmem:[#allocation71_spill] sm:$0xff] }
 0x557   : > { %10186 = vst [vmem:[#allocation16_spill] sm:$0xff] %v7486_v24  ;;  %v7488_v52 = vpop.permute.xlu2 %2630  ;;  %v2575_v30 = vpop.permute.xlu1 %2574  ;;  %v10191_v24 = vld [vmem:[#allocation67_spill] sm:$0xff] }
 0x55a   : > { %3278 = vmatpush.bf16.msrb.mxu3 %v2965_v37 }
 0x55c   : > { %2704 = vrot.lane.b32.xlu0 %v2204_v60, %s5731_s24  ;;  %v10189_v60 = vld [vmem:[#allocation65_spill] sm:$0xff] }
 0x55d   : > { %2708 = vrot.lane.b32.xlu2 %v10188_v58, %s5731_s24  ;;  %2706 = vrot.lane.b32.xlu1 %v2205_v28, %s5731_s24  ;;  %v2207_v58 = vsel %vm1234_vm10, %v10191_v24, %v10190_v45  ;;  %v2206_v28 = vsel %vm1234_vm10, %v10189_v60, %v10191_v24 }
 0x55e   : > { %3279 = vmatpush.bf16.msrb.mxu3 %v2962_v53  ;;  %v7506_v3 = vpop.permute.xlu0 %2620 }
 0x55f   : > { %v7508_v37 = vpop.permute.xlu2 %2654  ;;  %v7510_v33 = vpop.permute.xlu1 %2622 }
 0x564   : > { %2710 = vrot.lane.b32.xlu0 %v10189_v60, %s5731_s24 }
 0x565   : > { %2714 = vrot.lane.b32.xlu2 %v2207_v58, %s5731_s24  ;;  %2712 = vrot.lane.b32.xlu1 %v2206_v28, %s5731_s24  ;;  %v2209_v28 = vsel %vm1234_vm10, %v7045_v42, %v7049_v57  ;;  %v2210_v42 = vsel %vm1234_vm10, %v7137_v41, %v7179_v34 }
 0x566   : > { %v7522_v25 = vpop.permute.xlu0 %2578 }
 0x567   : > { %v7524_v53 = vpop.permute.xlu2 %2588  ;;  %v7526_v61 = vpop.permute.xlu1 %2580 }
 0x568   : > { %10192 = vst [vmem:[#allocation33_spill] sm:$0xff] %v7526_v61 }
 0x56c   : > { %2716 = vrot.lane.b32.xlu0 %v10190_v45, %s5731_s24 }
 0x56d   : > { %2720 = vrot.lane.b32.xlu2 %v2208_v36, %s5731_s24  ;;  %2718 = vrot.lane.b32.xlu1 %v10193_v43, %s5731_s24 }
 0x56e   : > { %v7536_v24 = vpop.permute.xlu0 %2626 }
 0x56f   : > { %10194 = vst [vmem:[#allocation30_spill] sm:$0xff] %v7536_v24  ;;  %v7538_v60 = vpop.permute.xlu2 %2636  ;;  %v7540_v58 = vpop.permute.xlu1 %2628  ;;  %v10203_v24 = vld [vmem:[#allocation23_spill] sm:$0xff] }
 0x570   : > { %10195 = vst [vmem:[#allocation35_spill] sm:$0xff] %v7538_v60 }
 0x571   : > { %10196 = vst [vmem:[#allocation47_spill] sm:$0xff] %v7540_v58 }
 0x574   : > { %2722 = vrot.lane.b32.xlu0 %v2209_v28, %s5731_s24  ;;  %v2956_v28 = vsel %vm1174_vm2, %v2575_v30, %v7442_v16  ;;  %v2953_v30 = vsel %vm1174_vm2, %v7457_v20, %v7461_v11  ;;  %v10204_v20 = vld [vmem:[#allocation18_spill] sm:$0xff]  ;;  %v10220_v11 = vld [vmem:[#allocation69_spill] sm:$0xff] }
 0x575   : > { %2726 = vrot.lane.b32.xlu2 %v7137_v41, %s5731_s24  ;;  %2724 = vrot.lane.b32.xlu1 %v7049_v57, %s5731_s24  ;;  %v2211_v57 = vsel %vm1234_vm10, %v7179_v34, %v7199_v4  ;;  %v5517_v34 = vld [vmem:[%s9928_s5 + $0x4] sm:$0xf] }
 0x576   : > { %v7550_v36 = vpop.permute.xlu0 %2584 }
 0x577   : > { %v7552_v43 = vpop.permute.xlu2 %2660  ;;  %v7554_v45 = vpop.permute.xlu1 %2652  ;;  %v2959_v58 = vsel %vm1174_vm2, %v2583_v40, %v7550_v36 }
 0x578   : > { %10197 = vst [vmem:[#allocation51_spill] sm:$0xff] %v7552_v43  ;;  %3280 = vmatpush.bf16.msrb.mxu3 %v2959_v58 }
 0x579   : > { %10198 = vst [vmem:[#allocation55_spill] sm:$0xff] %v7554_v45 }
 0x57c   : > { %2728 = vrot.lane.b32.xlu0 %v2210_v42, %s5731_s24  ;;  %3281 = vmatpush.bf16.msrb.mxu3 %v2956_v28  ;;  %v2950_v42 = vsel %vm1174_vm2, %v7313_v5, %v7416_v35  ;;  %v10214_v35 = vld [vmem:[#allocation53_spill] sm:$0xff] }
 0x57d   : > { %2732 = vrot.lane.b32.xlu2 %v7199_v4, %s5731_s24  ;;  %2730 = vrot.lane.b32.xlu1 %v2211_v57, %s5731_s24  ;;  %v5450_v4 = vld [vmem:[%s9928_s5 + $0x1c] sm:$0xf0] }
 0x57e   : > { %v7570_v40 = vpop.permute.xlu0 %2632  ;;  %v7588_v28 = vor.u32 %v5517_v34, %v5450_v4  ;;  %v10202_v57 = vld [vmem:[#allocation15_spill] sm:$0xff]  ;;  %v10207_v4 = vld [vmem:[#allocation36_spill] sm:$0xff] }
 0x57f   : > { %10199 = vst [vmem:[#allocation65_spill] sm:$0xff] %v7570_v40  ;;  %v7572_v58 = vpop.permute.xlu2 %2666  ;;  %v7574_v41 = vpop.permute.xlu1 %2586  ;;  %v2248_v60 = vsel %vm1018_vm14, %v10202_v57, %v10204_v20 }
 0x580   : > { %10200 = vst [vmem:[#allocation71_spill] sm:$0xff] %v7572_v58  ;;  %3282 = vmatpush.bf16.msrb.mxu3 %v2953_v30  ;;  %v2249_v30 = vsel %vm1018_vm14, %v10204_v20, %v10203_v24 }
 0x581   : > { %10201 = vst [vmem:[#allocation67_spill] sm:$0xff] %v7588_v28 }
 0x584   : > { %2734 = vrot.lane.b32.xlu0 %v10202_v57, %s5731_s24  ;;  %3283 = vmatpush.bf16.msrb.mxu3 %v2950_v42  ;;  %v10208_v42 = vld [vmem:[#allocation31_spill] sm:$0xff] }
 0x585   : > { %2738 = vrot.lane.b32.xlu2 %v2249_v30, %s5731_s24  ;;  %2736 = vrot.lane.b32.xlu1 %v2248_v60, %s5731_s24  ;;  %v2250_v43 = vsel %vm1018_vm14, %v10208_v42, %v10207_v4  ;;  %v5524_v30 = vld [vmem:[%s9928_s5 + $0x3c] sm:$0xf] }
 0x586   : > { %v7600_v45 = vpop.permute.xlu0 %2650 }
 0x587   : > { %10205 = vst [vmem:[#allocation81_spill] sm:$0xff] %v7600_v45  ;;  %v7602_v5 = vpop.permute.xlu2 %2672  ;;  %3284 = vmatmul.bf16.vlgmr.msrb.gmra.mxu3 %v7588_v28  ;;  %v7605_v34 = vpop.permute.xlu1 %2634 }
 0x588   : > { %10206 = vst [vmem:[#allocation15_spill] sm:$0xff] %v7605_v34  ;;  %v10210_v34 = vld [vmem:[#allocation38_spill] sm:$0xff] }
 0x58c   : > { %2740 = vrot.lane.b32.xlu0 %v10203_v24, %s5731_s24  ;;  %v5478_v24 = vld [vmem:[%s9928_s5 + $0x54] sm:$0xf0] }
 0x58d   : > { %2744 = vrot.lane.b32.xlu2 %v2250_v43, %s5731_s24  ;;  %2742 = vrot.lane.b32.xlu1 %v10208_v42, %s5731_s24  ;;  %v2251_v43 = vsel %vm1018_vm14, %v10207_v4, %v10210_v34  ;;  %v7628_v45 = vor.u32 %v5524_v30, %v5478_v24  ;;  %v10212_v42 = vld [vmem:[#allocation49_spill] sm:$0xff]  ;;  %v10215_v30 = vld [vmem:[#allocation58_spill] sm:$0xff] }
 0x58e   : > { %v7615_v60 = vpop.permute.xlu0 %2656  ;;  %v2252_v4 = vsel %vm1018_vm14, %v10212_v42, %v10214_v35  ;;  %v2253_v24 = vsel %vm1018_vm14, %v10214_v35, %v10215_v30 }
 0x58f   : > { %v2679_v57 = vpop.permute.xlu2 %2678  ;;  %v7617_v20 = vpop.permute.xlu1 %2658  ;;  %10211 = vst [vmem:[#allocation18_spill] sm:$0xff] %v7628_v45 }
 0x590   : > { %10209 = vst [vmem:[#allocation23_spill] sm:$0xff] %v7617_v20 }
 0x594   : > { %2746 = vrot.lane.b32.xlu0 %v2251_v43, %s5731_s24 }
 0x595   : > { %2750 = vrot.lane.b32.xlu2 %v10212_v42, %s5731_s24  ;;  %2748 = vrot.lane.b32.xlu1 %v10210_v34, %s5731_s24  ;;  %v10219_v42 = vld [vmem:[#allocation74_spill] sm:$0xff] }
 0x596   : > { %v2663_v20 = vpop.permute.xlu0 %2662 }
 0x597   : > { %v7635_v58 = vpop.permute.xlu2 %2684  ;;  %3289 = vmatmul.bf16.gmra.mxu3 %v7628_v45  ;;  %v7638_v28 = vpop.permute.xlu1 %2664  ;;  %v10218_v45 = vld [vmem:[#allocation66_spill] sm:$0xff] }
 0x598   : > { %10213 = vst [vmem:[#allocation36_spill] sm:$0xff] %v7635_v58  ;;  %v2254_v35 = vsel %vm1018_vm14, %v10218_v45, %v10220_v11 }
 0x59c   : > { %2752 = vrot.lane.b32.xlu0 %v2252_v4, %s5731_s24  ;;  %v2255_v4 = vsel %vm1018_vm14, %v10220_v11, %v10219_v42 }
 0x59d   : > { %2756 = vrot.lane.b32.xlu2 %v10215_v30, %s5731_s24  ;;  %2754 = vrot.lane.b32.xlu1 %v2253_v24, %s5731_s24 }
 0x59e   : > { %v7650_v34 = vpop.permute.xlu0 %2668 }
 0x59f   : > { %10216 = vst [vmem:[#allocation31_spill] sm:$0xff] %v7650_v34  ;;  %v7652_v43 = vpop.permute.xlu2 %2690  ;;  %v2671_v58 = vpop.permute.xlu1 %2670  ;;  %v10222_v34 = vld [vmem:[#allocation82_spill] sm:$0xff] }
 0x5a0   : > { %10217 = vst [vmem:[#allocation38_spill] sm:$0xff] %v7652_v43  ;;  %v2256_v61 = vsel %vm1018_vm14, %v10222_v34, %v7061_v55 }
 0x5a4   : > { %2758 = vrot.lane.b32.xlu0 %v10218_v45, %s5731_s24 }
 0x5a5   : > { %2762 = vrot.lane.b32.xlu2 %v2255_v4, %s5731_s24  ;;  %2760 = vrot.lane.b32.xlu1 %v2254_v35, %s5731_s24 }
 0x5a6   : > { %v7664_v30 = vpop.permute.xlu0 %2674 }
 0x5a7   : > { %v7666_v24 = vpop.permute.xlu2 %2696  ;;  %v7668_v43 = vpop.permute.xlu1 %2676 }
 0x5a8   : > { %10221 = vst [vmem:[#allocation49_spill] sm:$0xff] %v7666_v24 }
 0x5ac   : > { %2764 = vrot.lane.b32.xlu0 %v10219_v42, %s5731_s24  ;;  %v2257_v42 = vsel %vm1018_vm14, %v7061_v55, %v7065_v21  ;;  %v2989_v55 = vsel %vm1174_vm2, %v2663_v20, %v7638_v28 }
 0x5ad   : > { %2768 = vrot.lane.b32.xlu2 %v2256_v61, %s5731_s24  ;;  %2766 = vrot.lane.b32.xlu1 %v10222_v34, %s5731_s24  ;;  %v2992_v61 = vsel %vm1174_vm2, %v2671_v58, %v7602_v5  ;;  %v2258_v58 = vsel %vm1018_vm14, %v7151_v54, %v7195_v29 }
 0x5ae   : > { %v7678_v11 = vpop.permute.xlu0 %2680 }
 0x5af   : > { %v7680_v45 = vpop.permute.xlu2 %2702  ;;  %v7682_v4 = vpop.permute.xlu1 %2682  ;;  %v2995_v35 = vsel %vm1174_vm2, %v2679_v57, %v7678_v11 }
 0x5b0   : > { %3295 = vmatpush.bf16.msra.mxu3 %v2995_v35 }
 0x5b4   : > { %2770 = vrot.lane.b32.xlu0 %v2257_v42, %s5731_s24  ;;  %3296 = vmatpush.bf16.msra.mxu3 %v2992_v61  ;;  %v2986_v42 = vsel %vm1174_vm2, %v7508_v37, %v7615_v60  ;;  %v2983_v37 = vsel %vm1174_vm2, %v7355_v46, %v7297_v13 }
 0x5b5   : > { %2774 = vrot.lane.b32.xlu2 %v7151_v54, %s5731_s24  ;;  %2772 = vrot.lane.b32.xlu1 %v7065_v21, %s5731_s24  ;;  %v2259_v21 = vsel %vm1018_vm14, %v7195_v29, %v7215_v6  ;;  %v2980_v29 = vsel %vm1174_vm2, %v7295_v56, %v7299_v31  ;;  %vm3865_vm14 = vcmask 31744  }
 0x5b6   : > { %v7696_v34 = vpop.permute.xlu0 %2686 }
 0x5b7   : > { %v7698_v57 = vpop.permute.xlu2 %2708  ;;  %v7700_v35 = vpop.permute.xlu1 %2688 }
 0x5b8   : > { %10223 = vst [vmem:[#allocation53_spill] sm:$0xff] %v7698_v57  ;;  %3297 = vmatpush.bf16.msra.mxu3 %v2989_v55  ;;  %v10226_v55 = vld [vmem:[#allocation17_spill] sm:$0xff] }
 0x5bc   : > { %2776 = vrot.lane.b32.xlu0 %v2258_v58, %s5731_s24  ;;  %3298 = vmatpush.bf16.msra.mxu3 %v2986_v42  ;;  %v10228_v58 = vld [vmem:[#allocation21_spill] sm:$0xff] }
 0x5bd   : > { %2780 = vrot.lane.b32.xlu2 %v7215_v6, %s5731_s24  ;;  %2778 = vrot.lane.b32.xlu1 %v2259_v21, %s5731_s24  ;;  %v10227_v6 = vld [vmem:[#allocation25_spill] sm:$0xff]  ;;  %v2296_v21 = vsel %vm1252_vm6, %v10226_v55, %v10228_v58 }
 0x5be   : > { %v7717_v20 = vpop.permute.xlu0 %2692  ;;  %v2297_v42 = vsel %vm1252_vm6, %v10228_v58, %v10227_v6  ;;  %v2974_v58 = vsel %vm1174_vm2, %v7510_v33, %v7459_v32 }
 0x5bf   : > { %10224 = vst [vmem:[#allocation58_spill] sm:$0xff] %v7717_v20  ;;  %v7719_v61 = vpop.permute.xlu2 %2714  ;;  %v7721_v54 = vpop.permute.xlu1 %2694  ;;  %v2977_v20 = vsel %vm1174_vm2, %v7488_v52, %v7570_v40  ;;  %v10233_v52 = vld [vmem:[#allocation32_spill] sm:$0xff] }
 0x5c0   : > { %10225 = vst [vmem:[#allocation66_spill] sm:$0xff] %v7719_v61  ;;  %3299 = vmatpush.bf16.msra.mxu3 %v2983_v37 }
 0x5c4   : > { %2782 = vrot.lane.b32.xlu0 %v10226_v55, %s5731_s24  ;;  %3300 = vmatpush.bf16.msra.mxu3 %v2980_v29  ;;  %v5456_v29 = vld [vmem:[%s9928_s5 + $0x8] sm:$0xf]  ;;  %v5521_v55 = vld [vmem:[%s9928_s5 + $0x20] sm:$0xf0] }
 0x5c5   : > { %2786 = vrot.lane.b32.xlu2 %v2297_v42, %s5731_s24  ;;  %2784 = vrot.lane.b32.xlu1 %v2296_v21, %s5731_s24  ;;  %v7757_v42 = vor.u32 %v5521_v55, %v5456_v29  ;;  %v10232_v21 = vld [vmem:[#allocation39_spill] sm:$0xff]  ;;  %v10236_v29 = vld [vmem:[#allocation40_spill] sm:$0xff]  ;;  %v10237_v55 = vld [vmem:[#allocation50_spill] sm:$0xff] }
 0x5c6   : > { %v7739_v46 = vpop.permute.xlu0 %2698 }
 0x5c7   : > { %10229 = vst [vmem:[#allocation74_spill] sm:$0xff] %v7739_v46  ;;  %v7741_v37 = vpop.permute.xlu2 %2720  ;;  %v7743_v56 = vpop.permute.xlu1 %2700  ;;  %v5484_v46 = vld [vmem:[%s9928_s5 + $0x40] sm:$0xf] }
 0x5c8   : > { %10230 = vst [vmem:[#allocation69_spill] sm:$0xff] %v7743_v56  ;;  %3301 = vmatpush.bf16.msra.mxu3 %v2977_v20  ;;  %v2298_v20 = vsel %vm1252_vm6, %v10233_v52, %v10232_v21 }
 0x5c9   : > { %10231 = vst [vmem:[#allocation82_spill] sm:$0xff] %v7757_v42 }
 0x5cc   : > { %2788 = vrot.lane.b32.xlu0 %v10227_v6, %s5731_s24  ;;  %3302 = vmatpush.bf16.msra.mxu3 %v2974_v58  ;;  %v2299_v6 = vsel %vm1252_vm6, %v10232_v21, %v10236_v29  ;;  %v5528_v21 = vld [vmem:[%s9928_s5 + $0x58] sm:$0xf0] }
 0x5cd   : > { %2792 = vrot.lane.b32.xlu2 %v2298_v20, %s5731_s24  ;;  %2790 = vrot.lane.b32.xlu1 %v10233_v52, %s5731_s24  ;;  %v7797_v61 = vor.u32 %v5528_v21, %v5484_v46  ;;  %v10244_v46 = vld [vmem:[#allocation68_spill] sm:$0xff] }
 0x5ce   : > { %v7767_v56 = vpop.permute.xlu0 %2704  ;;  %v10246_v21 = vld [vmem:[#allocation72_spill] sm:$0xff] }
 0x5cf   : > { %10234 = vst [vmem:[#allocation17_spill] sm:$0xff] %v7767_v56  ;;  %v7769_v57 = vpop.permute.xlu2 %2726  ;;  %3303 = vmatmul.bf16.vlgmr.msra.gmra.mxu3 %v7757_v42  ;;  %v7772_v33 = vpop.permute.xlu1 %2706 }
 0x5d0   : > { %10235 = vst [vmem:[#allocation25_spill] sm:$0xff] %v7772_v33 }
 0x5d1   : > { %10240 = vst [vmem:[#allocation39_spill] sm:$0xff] %v7797_v61 }
 0x5d4   : > { %2794 = vrot.lane.b32.xlu0 %v2299_v6, %s5731_s24  ;;  %v10239_v6 = vld [vmem:[#allocation56_spill] sm:$0xff] }
 0x5d5   : > { %2798 = vrot.lane.b32.xlu2 %v10237_v55, %s5731_s24  ;;  %2796 = vrot.lane.b32.xlu1 %v10236_v29, %s5731_s24  ;;  %v2300_v33 = vsel %vm1252_vm6, %v10237_v55, %v10239_v6  ;;  %v10241_v29 = vld [vmem:[#allocation61_spill] sm:$0xff] }
 0x5d6   : > { %v7782_v58 = vpop.permute.xlu0 %2710 }
 0x5d7   : > { %v7784_v52 = vpop.permute.xlu2 %2732  ;;  %v7786_v20 = vpop.permute.xlu1 %2712 }
 0x5d8   : > { %10238 = vst [vmem:[#allocation21_spill] sm:$0xff] %v7784_v52  ;;  %v2301_v52 = vsel %vm1252_vm6, %v10239_v6, %v10241_v29  ;;  %v2302_v6 = vsel %vm1252_vm6, %v10244_v46, %v10246_v21 }
 0x5dc   : > { %2800 = vrot.lane.b32.xlu0 %v2300_v33, %s5731_s24  ;;  %v10245_v33 = vld [vmem:[#allocation76_spill] sm:$0xff] }
 0x5dd   : > { %2804 = vrot.lane.b32.xlu2 %v10241_v29, %s5731_s24  ;;  %2802 = vrot.lane.b32.xlu1 %v2301_v52, %s5731_s24  ;;  %v2303_v40 = vsel %vm1252_vm6, %v10246_v21, %v10245_v33 }
 0x5de   : > { %v7806_v42 = vpop.permute.xlu0 %2716 }
 0x5df   : > { %10242 = vst [vmem:[#allocation32_spill] sm:$0xff] %v7806_v42  ;;  %v7808_v32 = vpop.permute.xlu2 %2738  ;;  %3308 = vmatmul.bf16.gmra.mxu3 %v7797_v61  ;;  %v2719_v55 = vpop.permute.xlu1 %2718  ;;  %v2304_v61 = vsel %vm1252_vm6, %v7038_v62, %v7077_v19 }
 0x5e0   : > { %10243 = vst [vmem:[#allocation40_spill] sm:$0xff] %v7808_v32 }
 0x5e4   : > { %2806 = vrot.lane.b32.xlu0 %v10244_v46, %s5731_s24 }
 0x5e5   : > { %2810 = vrot.lane.b32.xlu2 %v2303_v40, %s5731_s24  ;;  %2808 = vrot.lane.b32.xlu1 %v2302_v6, %s5731_s24  ;;  %v2305_v6 = vsel %vm1252_vm6, %v7077_v19, %v7081_v26  ;;  %v2307_v19 = vsel %vm1252_vm6, %v7211_v10, %v7231_v22 }
 0x5e6   : > { %v7821_v52 = vpop.permute.xlu0 %2722 }
 0x5e7   : > { %10247 = vst [vmem:[#allocation50_spill] sm:$0xff] %v7821_v52  ;;  %v7823_v29 = vpop.permute.xlu2 %2744  ;;  %v7825_v42 = vpop.permute.xlu1 %2724 }
 0x5e8   : > { %10248 = vst [vmem:[#allocation56_spill] sm:$0xff] %v7825_v42  ;;  %v2306_v42 = vsel %vm1252_vm6, %v7165_v59, %v7211_v10 }
 0x5ec   : > { %2812 = vrot.lane.b32.xlu0 %v10245_v33, %s5731_s24 }
 0x5ed   : > { %2816 = vrot.lane.b32.xlu2 %v2304_v61, %s5731_s24  ;;  %2814 = vrot.lane.b32.xlu1 %v7038_v62, %s5731_s24 }
 0x5ee   : > { %v7835_v40 = vpop.permute.xlu0 %2728 }
 0x5ef   : > { %v7837_v46 = vpop.permute.xlu2 %2750  ;;  %v7839_v21 = vpop.permute.xlu1 %2730  ;;  %v3013_v32 = vsel %vm1174_vm2, %v7769_v57, %v7835_v40 }
 0x5f0   : > { %10249 = vst [vmem:[#allocation61_spill] sm:$0xff] %v7839_v21  ;;  %v10255_v21 = vld [vmem:[#allocation24_spill] sm:$0xff] }
 0x5f4   : > { %2818 = vrot.lane.b32.xlu0 %v2305_v6, %s5731_s24 }
 0x5f5   : > { %2822 = vrot.lane.b32.xlu2 %v7165_v59, %s5731_s24  ;;  %2820 = vrot.lane.b32.xlu1 %v7081_v26, %s5731_s24  ;;  %v10253_v59 = vld [vmem:[#allocation19_spill] sm:$0xff] }
 0x5f6   : > { %v2735_v61 = vpop.permute.xlu0 %2734 }
 0x5f7   : > { %v7849_v62 = vpop.permute.xlu2 %2756  ;;  %v7851_v33 = vpop.permute.xlu1 %2736 }
 0x5f8   : > { %10250 = vst [vmem:[#allocation68_spill] sm:$0xff] %v7849_v62 }
 0x5fc   : > { %2824 = vrot.lane.b32.xlu0 %v2306_v42, %s5731_s24  ;;  %v10254_v42 = vld [vmem:[#allocation27_spill] sm:$0xff] }
 0x5fd   : > { %2828 = vrot.lane.b32.xlu2 %v7231_v22, %s5731_s24  ;;  %2826 = vrot.lane.b32.xlu1 %v2307_v19, %s5731_s24  ;;  %v2345_v10 = vsel %vm1261_vm7, %v10255_v21, %v10254_v42  ;;  %v2344_v22 = vsel %vm1261_vm7, %v10253_v59, %v10255_v21  ;;  %v3016_v19 = vsel %vm1174_vm2, %v2735_v61, %v7851_v33  ;;  %v10256_v21 = vld [vmem:[#allocation41_spill] sm:$0xff] }
 0x5fe   : > { %v7863_v26 = vpop.permute.xlu0 %2740  ;;  %v3010_v61 = vsel %vm1174_vm2, %v2719_v55, %v7741_v37  ;;  %v10260_v55 = vld [vmem:[#allocation52_spill] sm:$0xff] }
 0x5ff   : > { %10251 = vst [vmem:[#allocation76_spill] sm:$0xff] %v7863_v26  ;;  %v7865_v6 = vpop.permute.xlu2 %2762  ;;  %v2743_v62 = vpop.permute.xlu1 %2742 }
 0x600   : > { %10252 = vst [vmem:[#allocation72_spill] sm:$0xff] %v7865_v6  ;;  %v3019_v52 = vsel %vm1174_vm2, %v2743_v62, %v7823_v29 }
 0x601   : > { %3314 = vmatpush.bf16.msrb.mxu0 %v3019_v52 }
 0x604   : > { %2830 = vrot.lane.b32.xlu0 %v10253_v59, %s5731_s24  ;;  %v10257_v59 = vld [vmem:[#allocation34_spill] sm:$0xff] }
 0x605   : > { %2834 = vrot.lane.b32.xlu2 %v2345_v10, %s5731_s24  ;;  %2832 = vrot.lane.b32.xlu1 %v2344_v22, %s5731_s24  ;;  %v2346_v10 = vsel %vm1261_vm7, %v10257_v59, %v10256_v21 }
 0x606   : > { %3315 = vmatpush.bf16.msrb.mxu0 %v3016_v19  ;;  %v7881_v52 = vpop.permute.xlu0 %2746  ;;  %v10259_v19 = vld [vmem:[#allocation42_spill] sm:$0xff] }
 0x607   : > { %v7883_v62 = vpop.permute.xlu2 %2768  ;;  %v7885_v26 = vpop.permute.xlu1 %2748 }
 0x60a   : > { %3316 = vmatpush.bf16.msrb.mxu0 %v3013_v32 }
 0x60c   : > { %2836 = vrot.lane.b32.xlu0 %v10254_v42, %s5731_s24  ;;  %v3007_v42 = vsel %vm1174_vm2, %v7782_v58, %v7786_v20 }
 0x60d   : > { %2840 = vrot.lane.b32.xlu2 %v2346_v10, %s5731_s24  ;;  %2838 = vrot.lane.b32.xlu1 %v10257_v59, %s5731_s24  ;;  %v2347_v10 = vsel %vm1261_vm7, %v10256_v21, %v10259_v19  ;;  %v3004_v59 = vsel %vm1174_vm2, %v7680_v45, %v7767_v56  ;;  %v3001_v21 = vsel %vm1174_vm2, %v7721_v54, %v7666_v24  ;;  %v5458_v45 = vld [vmem:[%s9928_s5 + $0x24] sm:$0xf0] }
 0x60e   : > { %3317 = vmatpush.bf16.msrb.mxu0 %v3010_v61  ;;  %v7900_v22 = vpop.permute.xlu0 %2752  ;;  %v2998_v54 = vsel %vm1174_vm2, %v7696_v34, %v7700_v35  ;;  %v2945_v34 = vsel %vm1174_vm2, %v7271_v38, %v7229_v44  ;;  %v2942_v38 = vsel %vm1174_vm2, %v7255_v51, %v7139_v27  ;;  %v10270_v51 = vld [vmem:[#allocation83_spill] sm:$0xff] }
 0x60f   : > { %v7902_v57 = vpop.permute.xlu2 %2774  ;;  %v7904_v32 = vpop.permute.xlu1 %2754 }
 0x610   : > { %10258 = vst [vmem:[#allocation19_spill] sm:$0xff] %v7904_v32 }
 0x612   : > { %3318 = vmatpush.bf16.msrb.mxu0 %v3007_v42 }
 0x614   : > { %2842 = vrot.lane.b32.xlu0 %v2347_v10, %s5731_s24  ;;  %v10262_v10 = vld [vmem:[#allocation59_spill] sm:$0xff] }
 0x615   : > { %2846 = vrot.lane.b32.xlu2 %v10260_v55, %s5731_s24  ;;  %2844 = vrot.lane.b32.xlu1 %v10259_v19, %s5731_s24  ;;  %v5518_v19 = vld [vmem:[%s9928_s5 + $0xc] sm:$0xf] }
 0x616   : > { %3319 = vmatpush.bf16.msrb.mxu0 %v3004_v59  ;;  %v7920_v61 = vpop.permute.xlu0 %2758  ;;  %v2348_v59 = vsel %vm1261_vm7, %v10260_v55, %v10262_v10  ;;  %v2948_v55 = vsel %vm1174_vm2, %v7269_v1, %v7373_v39  ;;  %v10291_v39 = vld [vmem:[#allocation64_spill] sm:$0xff] }
 0x617   : > { %v7922_v58 = vpop.permute.xlu2 %2780  ;;  %v7924_v42 = vpop.permute.xlu1 %2760 }
 0x618   : > { %10261 = vst [vmem:[#allocation27_spill] sm:$0xff] %v7922_v58  ;;  %v10263_v58 = vld [vmem:[#allocation63_spill] sm:$0xff] }
 0x619   : > { %v2349_v56 = vsel %vm1261_vm7, %v10262_v10, %v10263_v58 }
 0x61a   : > { %3320 = vmatpush.bf16.msrb.mxu0 %v3001_v21  ;;  %v7948_v21 = vor.u32 %v5518_v19, %v5458_v45  ;;  %v10268_v19 = vld [vmem:[#allocation75_spill] sm:$0xff] }
 0x61c   : > { %2848 = vrot.lane.b32.xlu0 %v2348_v59, %s5731_s24  ;;  %10264 = vst [vmem:[#allocation24_spill] sm:$0xff] %v7948_v21 }
 0x61d   : > { %2852 = vrot.lane.b32.xlu2 %v10263_v58, %s5731_s24  ;;  %2850 = vrot.lane.b32.xlu1 %v2349_v56, %s5731_s24  ;;  %v10266_v56 = vld [vmem:[#allocation70_spill] sm:$0xff] }
 0x61e   : > { %3321 = vmatpush.bf16.msrb.mxu0 %v2998_v54  ;;  %v7950_v24 = vpop.permute.xlu0 %2764  ;;  %v10267_v58 = vld [vmem:[#allocation78_spill] sm:$0xff]  ;;  %v2350_v1 = vsel %vm1261_vm7, %v10266_v56, %v10268_v19 }
 0x61f   : > { %10265 = vst [vmem:[#allocation41_spill] sm:$0xff] %v7950_v24  ;;  %v7955_v59 = vpop.permute.xlu2 %2786  ;;  %v7957_v10 = vpop.permute.xlu1 %2766  ;;  %v2351_v45 = vsel %vm1261_vm7, %v10268_v19, %v10267_v58  ;;  %v2939_v24 = vsel %vm1174_vm2, %v7079_v9, %v7121_v2  ;;  %v5486_v19 = vld [vmem:[%s9928_s5 + $0x5c] sm:$0xf0]  ;;  %v10273_v2 = vld [vmem:[#allocation48_spill] sm:$0xff] }
 0x621   : > { %3322 = vmatmul.bf16.vlgmr.msrb.gmra.mxu0 %v7948_v21 }
 0x622   : > { %3390 = vmatpush.bf16.msra.mxu0 %v2948_v55 }
 0x624   : > { %2854 = vrot.lane.b32.xlu0 %v10266_v56, %s5731_s24  ;;  %v5525_v56 = vld [vmem:[%s9928_s5 + $0x44] sm:$0xf] }
 0x625   : > { %2858 = vrot.lane.b32.xlu2 %v2351_v45, %s5731_s24  ;;  %2856 = vrot.lane.b32.xlu1 %v2350_v1, %s5731_s24  ;;  %v2352_v45 = vsel %vm1261_vm7, %v10270_v51, %v7093_v50  ;;  %v7999_v9 = vor.u32 %v5525_v56, %v5486_v19  ;;  %v10275_v19 = vld [vmem:[#allocation91_spill] sm:$0xff] }
 0x626   : > { %3391 = vmatpush.bf16.msra.mxu0 %v2945_v34  ;;  %v7973_v54 = vpop.permute.xlu0 %2770 }
 0x627   : > { %v7978_v55 = vpop.permute.xlu2 %2792  ;;  %v7980_v34 = vpop.permute.xlu1 %2772  ;;  %10271 = vst [vmem:[#allocation42_spill] sm:$0xff] %v7999_v9 }
 0x628   : > { %10269 = vst [vmem:[#allocation34_spill] sm:$0xff] %v7980_v34 }
 0x62a   : > { %3392 = vmatpush.bf16.msra.mxu0 %v2942_v38  ;;  %v10272_v38 = vld [vmem:[#allocation60_spill] sm:$0xff] }
 0x62c   : > { %2860 = vrot.lane.b32.xlu0 %v10267_v58, %s5731_s24 }
 0x62d   : > { %2864 = vrot.lane.b32.xlu2 %v2352_v45, %s5731_s24  ;;  %2862 = vrot.lane.b32.xlu1 %v10270_v51, %s5731_s24  ;;  %v2933_v45 = vsel %vm1174_vm2, %v6928_v47, %v10273_v2  ;;  %v10274_v51 = vld [vmem:[#allocation85_spill] sm:$0xff]  ;;  %v10278_v2 = vld [vmem:[#allocation12_spill] sm:$0xff] }
 0x62e   : > { %3393 = vmatpush.bf16.msra.mxu0 %v2939_v24  ;;  %v8001_v1 = vpop.permute.xlu0 %2776  ;;  %v2936_v24 = vsel %vm1174_vm2, %v6941_v12, %v10272_v38  ;;  %v2353_v56 = vsel %vm1261_vm7, %v7093_v50, %v10274_v51  ;;  %v2927_v50 = vsel %vm1174_vm2, %v10169_v0, %v10278_v2  ;;  %v10287_v2 = vld [vmem:[#allocation37_spill] sm:$0xff] }
 0x62f   : > { %v2799_v34 = vpop.permute.xlu2 %2798  ;;  %v8006_v58 = vpop.permute.xlu1 %2778 }
 0x631   : > { %3327 = vmatmul.bf16.gmra.mxu0 %v7999_v9 }
 0x632   : > { %3394 = vmatpush.bf16.msra.mxu0 %v2936_v24  ;;  %v10276_v24 = vld [vmem:[#allocation45_spill] sm:$0xff] }
 0x633   : > { %v2930_v9 = vsel %vm1174_vm2, %v6822_v8, %v10276_v24 }
 0x634   : > { %2866 = vrot.lane.b32.xlu0 %v2353_v56, %s5731_s24  ;;  %v10279_v56 = vld [vmem:[#allocation94_spill] sm:$0xff] }
 0x635   : > { %2870 = vrot.lane.b32.xlu2 %v10275_v19, %s5731_s24  ;;  %2868 = vrot.lane.b32.xlu1 %v10274_v51, %s5731_s24  ;;  %v2354_v38 = vsel %vm1261_vm7, %v10275_v19, %v10279_v56  ;;  %v10280_v51 = vld [vmem:[#allocation98_spill] sm:$0xff] }
 0x636   : > { %3395 = vmatpush.bf16.msra.mxu0 %v2933_v45  ;;  %v8020_v12 = vpop.permute.xlu0 %2782  ;;  %v2355_v27 = vsel %vm1261_vm7, %v10279_v56, %v10280_v51  ;;  %v10282_v19 = vld [vmem:[#allocation22_spill] sm:$0xff] }
 0x637   : > { %v8025_v47 = vpop.permute.xlu2 %2804  ;;  %v2785_v45 = vpop.permute.xlu1 %2784 }
 0x638   : > { %10277 = vst [vmem:[#allocation52_spill] sm:$0xff] %v8025_v47 }
 0x63a   : > { %3396 = vmatpush.bf16.msra.mxu0 %v2930_v9 }
 0x63c   : > { %2872 = vrot.lane.b32.xlu0 %v2354_v38, %s5731_s24  ;;  %v10283_v38 = vld [vmem:[#allocation29_spill] sm:$0xff] }
 0x63d   : > { %2876 = vrot.lane.b32.xlu2 %v10280_v51, %s5731_s24  ;;  %2874 = vrot.lane.b32.xlu1 %v2355_v27, %s5731_s24 }
 0x63e   : > { %3397 = vmatpush.bf16.msra.mxu0 %v2927_v50  ;;  %v8040_v8 = vpop.permute.xlu0 %2788  ;;  %v10284_v50 = vld [vmem:[#allocation26_spill] sm:$0xff] }
 0x63f   : > { %10281 = vst [vmem:[#allocation59_spill] sm:$0xff] %v8040_v8  ;;  %v8042_v9 = vpop.permute.xlu2 %2810  ;;  %v2791_v0 = vpop.permute.xlu1 %2790  ;;  %v2393_v47 = vsel %vm1015_vm13, %v10284_v50, %v10283_v38  ;;  %v2392_v56 = vsel %vm1015_vm13, %v10282_v19, %v10284_v50 }
 0x641   : > { %3398 = vmatmul.bf16.vlgmr.msra.gmra.mxu0 %v7399_v15  ;;  %v10286_v15 = vld [vmem:[#allocation43_spill] sm:$0xff] }
 0x642   : > { %v2394_v24 = vsel %vm1015_vm13, %v10287_v2, %v10286_v15 }
 0x644   : > { %2878 = vrot.lane.b32.xlu0 %v10282_v19, %s5731_s24 }
 0x645   : > { %2882 = vrot.lane.b32.xlu2 %v2393_v47, %s5731_s24  ;;  %2880 = vrot.lane.b32.xlu1 %v2392_v56, %s5731_s24  ;;  %v10288_v56 = vld [vmem:[#allocation44_spill] sm:$0xff] }
 0x646   : > { %v8055_v27 = vpop.permute.xlu0 %2794 }
 0x647   : > { %v8057_v51 = vpop.permute.xlu2 %2816  ;;  %v8059_v8 = vpop.permute.xlu1 %2796 }
 0x648   : > { %10285 = vst [vmem:[#allocation63_spill] sm:$0xff] %v8059_v8  ;;  %v10289_v8 = vld [vmem:[#allocation54_spill] sm:$0xff] }
 0x64c   : > { %2884 = vrot.lane.b32.xlu0 %v10283_v38, %s5731_s24  ;;  %v2395_v38 = vsel %vm1015_vm13, %v10286_v15, %v10288_v56  ;;  %v10290_v15 = vld [vmem:[#allocation62_spill] sm:$0xff] }
 0x64d   : > { %2888 = vrot.lane.b32.xlu2 %v2394_v24, %s5731_s24  ;;  %2886 = vrot.lane.b32.xlu1 %v10287_v2, %s5731_s24 }
 0x64e   : > { %v2801_v47 = vpop.permute.xlu0 %2800 }
 0x64f   : > { %v8069_v19 = vpop.permute.xlu2 %2822  ;;  %v8071_v50 = vpop.permute.xlu1 %2802 }
 0x651   : > { %3403 = vmatmul.bf16.gmra.mxu0 %v7438_v17 }
 0x654   : > { %2890 = vrot.lane.b32.xlu0 %v2395_v38, %s5731_s24  ;;  %v2396_v38 = vsel %vm1015_vm13, %v10289_v8, %v10290_v15 }
 0x655   : > { %2894 = vrot.lane.b32.xlu2 %v10289_v8, %s5731_s24  ;;  %2892 = vrot.lane.b32.xlu1 %v10288_v56, %s5731_s24  ;;  %v2397_v56 = vsel %vm1015_vm13, %v10290_v15, %v10291_v39  ;;  %v3037_v15 = vsel %vm1174_vm2, %v2791_v0, %v7978_v55  ;;  %v3034_v0 = vsel %vm1174_vm2, %v8020_v12, %v2785_v45  ;;  %v10295_v12 = vld [vmem:[#allocation96_spill] sm:$0xff] }
 0x656   : > { %v2807_v2 = vpop.permute.xlu0 %2806 }
 0x657   : > { %v8082_v24 = vpop.permute.xlu2 %2828  ;;  %v2809_v21 = vpop.permute.xlu1 %2808 }
 0x658   : > { %v3043_v44 = vsel %vm1174_vm2, %v2807_v2, %v2809_v21  ;;  %v3044_v17 = vsel %vm1174_vm2, %v2809_v21, %v8042_v9  ;;  %v3040_v2 = vsel %vm1174_vm2, %v2799_v34, %v2801_v47  ;;  %v10292_v34 = vld [vmem:[#allocation73_spill] sm:$0xff] }
 0x659   : > { %3333 = vmatpush.bf16.msrb.mxu1 %v3043_v44  ;;  %3466 = vmatpush.bf16.msrb.mxu0 %v3044_v17  ;;  %v3041_v44 = vsel %vm1174_vm2, %v2801_v47, %v8071_v50  ;;  %v10293_v47 = vld [vmem:[#allocation77_spill] sm:$0xff] }
 0x65c   : > { %2896 = vrot.lane.b32.xlu0 %v2396_v38, %s5731_s24  ;;  %v2398_v38 = vsel %vm1015_vm13, %v10292_v34, %v10293_v47 }
 0x65d   : > { %2900 = vrot.lane.b32.xlu2 %v10291_v39, %s5731_s24  ;;  %2898 = vrot.lane.b32.xlu1 %v2397_v56, %s5731_s24  ;;  %v3038_v39 = vsel %vm1174_vm2, %v7978_v55, %v8055_v27  ;;  %v10294_v56 = vld [vmem:[#allocation92_spill] sm:$0xff]  ;;  %v3035_v55 = vsel %vm1174_vm2, %v2785_v45, %v7955_v59 }
 0x65e   : > { %3334 = vmatpush.bf16.msrb.mxu1 %v3040_v2  ;;  %3467 = vmatpush.bf16.msrb.mxu0 %v3041_v44  ;;  %v8100_v17 = vpop.permute.xlu0 %2812  ;;  %v2402_v45 = vsel %vm1015_vm13, %v10294_v56, %v10295_v12 }
 0x65f   : > { %v8102_v21 = vpop.permute.xlu2 %2834  ;;  %v8104_v8 = vpop.permute.xlu1 %2814 }
 0x662   : > { %3335 = vmatpush.bf16.msrb.mxu1 %v3037_v15  ;;  %3468 = vmatpush.bf16.msrb.mxu0 %v3038_v39  ;;  %v3031_v39 = vsel %vm1174_vm2, %v7902_v57, %v8001_v1  ;;  %v3028_v57 = vsel %vm1174_vm2, %v7957_v10, %v7883_v62  ;;  %v3026_v10 = vsel %vm1174_vm2, %v7924_v42, %v7865_v6 }
 0x664   : > { %2902 = vrot.lane.b32.xlu0 %v10292_v34, %s5731_s24  ;;  %v3032_v34 = vsel %vm1174_vm2, %v8001_v1, %v8006_v58  ;;  %v3029_v1 = vsel %vm1174_vm2, %v7883_v62, %v7973_v54  ;;  %v5464_v62 = vld [vmem:[%s9928_s5 + $0x10] sm:$0xf] }
 0x665   : > { %2918 = vrot.lane.b32.xlu2 %v10294_v56, %s5731_s24  ;;  %2904 = vrot.lane.b32.xlu1 %v2398_v38, %s5731_s24  ;;  %v10296_v38 = vld [vmem:[#allocation86_spill] sm:$0xff] }
 0x666   : > { %3336 = vmatpush.bf16.msrb.mxu1 %v3034_v0  ;;  %3469 = vmatpush.bf16.msrb.mxu0 %v3035_v55  ;;  %v8123_v2 = vpop.permute.xlu0 %2818  ;;  %v10297_v0 = vld [vmem:[#allocation84_spill] sm:$0xff] }
 0x667   : > { %v8125_v44 = vpop.permute.xlu2 %2840  ;;  %v8127_v15 = vpop.permute.xlu1 %2820  ;;  %v2400_v55 = vsel %vm1015_vm13, %v10297_v0, %v10296_v38 }
 0x66a   : > { %3337 = vmatpush.bf16.msrb.mxu1 %v3031_v39  ;;  %3470 = vmatpush.bf16.msrb.mxu0 %v3032_v34 }
 0x66c   : > { %2920 = vrot.lane.b32.xlu0 %v2402_v45, %s5731_s24  ;;  %v3025_v45 = vsel %vm1174_vm2, %v7920_v61, %v7924_v42  ;;  %v10299_v61 = vld [vmem:[#allocation87_spill] sm:$0xff] }
 0x66d   : > { %2912 = vrot.lane.b32.xlu2 %v2400_v55, %s5731_s24  ;;  %2910 = vrot.lane.b32.xlu1 %v10297_v0, %s5731_s24  ;;  %v5522_v0 = vld [vmem:[%s9928_s5 + $0x28] sm:$0xf0]  ;;  %v2401_v42 = vsel %vm1015_vm13, %v10296_v38, %v10299_v61 }
 0x66e   : > { %3338 = vmatpush.bf16.msrb.mxu1 %v3028_v57  ;;  %3471 = vmatpush.bf16.msrb.mxu0 %v3029_v1  ;;  %v8151_v56 = vpop.permute.xlu0 %2824  ;;  %v10298_v55 = vld [vmem:[#allocation80_spill] sm:$0xff]  ;;  %v3022_v1 = vsel %vm1174_vm2, %v7837_v46, %v7900_v22 }
 0x66f   : > { %v8153_v39 = vpop.permute.xlu2 %2846  ;;  %v8155_v34 = vpop.permute.xlu1 %2826  ;;  %v2399_v57 = vsel %vm1015_vm13, %v10293_v47, %v10298_v55  ;;  %v8185_v47 = vor.u32 %v5522_v0, %v5464_v62 }
 0x671   : > { %10300 = vst [vmem:[#allocation70_spill] sm:$0xff] %v8185_v47 }
 0x672   : > { %3339 = vmatpush.bf16.msrb.mxu1 %v3025_v45  ;;  %3472 = vmatpush.bf16.msrb.mxu0 %v3026_v10  ;;  %v3023_v45 = vsel %vm1174_vm2, %v7900_v22, %v7904_v32  ;;  %v2973_v10 = vsel %vm1174_vm2, %v7418_v18, %v7506_v3  ;;  %v2969_v3 = vsel %vm1174_vm2, %v7440_v48, %v7444_v49  ;;  %v10302_v48 = vld [vmem:[#allocation108_spill] sm:$0xff] }
 0x673   : > { %v2970_v22 = vsel %vm1174_vm2, %v7444_v49, %v7375_v23  ;;  %v2966_v23 = vsel %vm1174_vm2, %v7283_v7, %v7401_v63  ;;  %v2967_v49 = vsel %vm1174_vm2, %v7401_v63, %v10302_v48  ;;  %v5492_v7 = vld [vmem:[%s9928_s5 + $0x48] sm:$0xf]  ;;  %v5529_v63 = vld [vmem:[%s9928_s5 + $0x60] sm:$0xf0]  ;;  %v10307_v48 = vld [vmem:[#allocation33_spill] sm:$0xff] }
 0x674   : > { %2906 = vrot.lane.b32.xlu0 %v2399_v57, %s5731_s24 }
 0x675   : > { %2914 = vrot.lane.b32.xlu2 %v2401_v42, %s5731_s24  ;;  %2908 = vrot.lane.b32.xlu1 %v10298_v55, %s5731_s24  ;;  %v2972_v55 = vsel %vm1174_vm2, %v7471_v14, %v7418_v18  ;;  %v10301_v18 = vld [vmem:[#allocation100_spill] sm:$0xff]  ;;  %v10304_v42 = vld [vmem:[#allocation101_spill] sm:$0xff] }
 0x676   : > { %3340 = vmatpush.bf16.msrb.mxu1 %v3022_v1  ;;  %3473 = vmatpush.bf16.msrb.mxu0 %v3023_v45  ;;  %v8190_v38 = vpop.permute.xlu0 %2830  ;;  %v2403_v14 = vsel %vm1015_vm13, %v10295_v12, %v10301_v18  ;;  %v10305_v45 = vld [vmem:[#allocation103_spill] sm:$0xff]  ;;  %vm3764_vm13 = vcmask 15360  }
 0x677   : > { %v8195_v57 = vpop.permute.xlu2 %2852  ;;  %v8197_v46 = vpop.permute.xlu1 %2832 }
 0x679   : > { %3341 = vmatmul.bf16.vlgmr.msrb.gmra.mxu1 %v8185_v47  ;;  %3474 = vmatmul.bf16.vlgmr.msrb.gmra.mxu0 %v8185_v47 }
 0x67a   : > { %3409 = vmatpush.bf16.msra.mxu1 %v2972_v55  ;;  %3542 = vmatpush.bf16.msra.mxu0 %v2973_v10  ;;  %v8239_v55 = vor.u32 %v5529_v63, %v5492_v7  ;;  %v10312_v7 = vld [vmem:[#allocation109_spill] sm:$0xff] }
 0x67c   : > { %2916 = vrot.lane.b32.xlu0 %v10299_v61, %s5731_s24  ;;  %v10303_v61 = vld [vmem:[#allocation97_spill] sm:$0xff]  ;;  %10306 = vst [vmem:[#allocation78_spill] sm:$0xff] %v8239_v55 }
 0x67d   : > { %2924 = vrot.lane.b32.xlu2 %v10301_v18, %s5731_s24  ;;  %2922 = vrot.lane.b32.xlu1 %v2403_v14, %s5731_s24  ;;  %v2963_v1 = vsel %vm1174_vm2, %v10304_v42, %v10303_v61  ;;  %v2964_v10 = vsel %vm1174_vm2, %v10303_v61, %v10305_v45  ;;  %v2961_v18 = vsel %vm1174_vm2, %v7574_v41, %v7524_v53  ;;  %v10309_v61 = vld [vmem:[#allocation20_spill] sm:$0xff]  ;;  %s5748_s24 = smov 22  }
 0x67e   : > { %3410 = vmatpush.bf16.msra.mxu1 %v2969_v3  ;;  %3543 = vmatpush.bf16.msra.mxu0 %v2970_v22  ;;  %v8215_v62 = vpop.permute.xlu0 %2836  ;;  %v2960_v22 = vsel %vm1174_vm2, %v7550_v36, %v7574_v41  ;;  %v2958_v36 = vsel %vm1174_vm2, %v7522_v25, %v10307_v48  ;;  %v10308_v41 = vld [vmem:[#allocation11_spill] sm:$0xff] }
 0x67f   : > { %v8223_v0 = vpop.permute.xlu1 %2838  ;;  %v8225_v12 = vpop.permute.xlu2 %2858  ;;  %v2954_v42 = vsel %vm1174_vm2, %v10309_v61, %v10308_v41 }
 0x682   : > { %3411 = vmatpush.bf16.msra.mxu1 %v2966_v23  ;;  %3544 = vmatpush.bf16.msra.mxu0 %v2967_v49  ;;  %v2957_v23 = vsel %vm1174_vm2, %v7442_v16, %v7522_v25  ;;  %v10311_v16 = vld [vmem:[#allocation110_spill] sm:$0xff]  ;;  %v10313_v25 = vld [vmem:[#allocation105_spill] sm:$0xff] }
 0x683   : > { %v2951_v63 = vsel %vm1174_vm2, %v10312_v7, %v10311_v16  ;;  %v10315_v7 = vld [vmem:[#allocation18_spill] sm:$0xff] }
 0x686   : > { %3412 = vmatpush.bf16.msra.mxu1 %v2963_v1  ;;  %3545 = vmatpush.bf16.msra.mxu0 %v2964_v10  ;;  %v8241_v3 = vpop.permute.xlu0 %2842  ;;  %v10310_v1 = vld [vmem:[#allocation16_spill] sm:$0xff] }
 0x687   : > { %v8249_v14 = vpop.permute.xlu1 %2844  ;;  %v2865_v49 = vpop.permute.xlu2 %2864  ;;  %v2955_v45 = vsel %vm1174_vm2, %v10308_v41, %v10310_v1 }
 0x689   : > { %3346 = vmatmul.bf16.gmra.mxu1 %v8239_v55  ;;  %3479 = vmatmul.bf16.gmra.mxu0 %v8239_v55 }
 0x68a   : > { %3413 = vmatpush.bf16.msra.mxu1 %v2960_v22  ;;  %3546 = vmatpush.bf16.msra.mxu0 %v2961_v18  ;;  %v2952_v22 = vsel %vm1174_vm2, %v10311_v16, %v10313_v25 }
 0x68e   : > { %3414 = vmatpush.bf16.msra.mxu1 %v2957_v23  ;;  %3547 = vmatpush.bf16.msra.mxu0 %v2958_v36  ;;  %v2849_v53 = vpop.permute.xlu0 %2848  ;;  %v10314_v36 = vld [vmem:[#allocation67_spill] sm:$0xff] }
 0x68f   : > { %v2851_v10 = vpop.permute.xlu1 %2850  ;;  %v2871_v18 = vpop.permute.xlu2 %2870 }
 0x692   : > { %3415 = vmatpush.bf16.msra.mxu1 %v2954_v42  ;;  %3548 = vmatpush.bf16.msra.mxu0 %v2955_v45 }
 0x696   : > { %3416 = vmatpush.bf16.msra.mxu1 %v2951_v63  ;;  %3549 = vmatpush.bf16.msra.mxu0 %v2952_v22  ;;  %v2855_v23 = vpop.permute.xlu0 %2854 }
 0x697   : > { %v2857_v48 = vpop.permute.xlu1 %2856  ;;  %v2877_v61 = vpop.permute.xlu2 %2876 }
 0x699   : > { %3417 = vmatmul.bf16.vlgmr.msra.gmra.mxu1 %v10314_v36  ;;  %3550 = vmatmul.bf16.vlgmr.msra.gmra.mxu0 %v10314_v36 }
 0x69e   : > { %v2861_v41 = vpop.permute.xlu0 %2860 }
 0x69f   : > { %v2863_v42 = vpop.permute.xlu1 %2862  ;;  %v8273_v55 = vpop.permute.xlu2 %2882 }
 0x6a0   : > { %v3064_v32 = vsel %vm1174_vm2, %v2863_v42, %v2865_v49  ;;  %v3059_v42 = vsel %vm1174_vm2, %v2849_v53, %v2851_v10 }
 0x6a6   : > { %v2867_v1 = vpop.permute.xlu0 %2866 }
 0x6a7   : > { %v2869_v45 = vpop.permute.xlu1 %2868  ;;  %v8283_v47 = vpop.permute.xlu2 %2888 }
 0x6a8   : > { %v8288_v6 = vsel %vm1174_vm2, %v2867_v1, %v2869_v45  ;;  %v5466_v45 = vld [vmem:[%s9928_s5 + $0x2c] sm:$0xf0] }
 0x6a9   : > { %3422 = vmatmul.bf16.gmra.mxu1 %v10315_v7  ;;  %3555 = vmatmul.bf16.gmra.mxu0 %v10315_v7  ;;  %v3065_v7 = vsel %vm1174_vm2, %v2865_v49, %v2867_v1  ;;  %v3058_v49 = vsel %vm1174_vm2, %v8153_v39, %v2849_v53  ;;  %v3055_v39 = vsel %vm1174_vm2, %v8223_v0, %v8125_v44 }
 0x6aa   : > { %v3056_v53 = vsel %vm1174_vm2, %v8125_v44, %v8241_v3  ;;  %v3053_v0 = vsel %vm1174_vm2, %v8197_v46, %v8102_v21  ;;  %v8338_v44 = vsel %vm1174_vm2, %v8102_v21, %v8215_v62  ;;  %v8356_v21 = vsel %vm1174_vm2, %v8155_v34, %v8082_v24  ;;  %v5519_v62 = vld [vmem:[%s9928_s5 + $0x14] sm:$0xf] }
 0x6ab   : > { %v2996_v24 = vsel %vm1174_vm2, %v7678_v11, %v7682_v4 }
 0x6ae   : > { %v2873_v16 = vpop.permute.xlu0 %2872 }
 0x6af   : > { %v2875_v63 = vpop.permute.xlu1 %2874  ;;  %v3067_v25 = vsel %vm1174_vm2, %v2871_v18, %v2873_v16  ;;  %v8310_v1 = vpop.permute.xlu2 %2894 }
 0x6b0   : > { %3352 = vmatpush.bf16.msrb.mxu2 %v3067_v25  ;;  %v3068_v22 = vsel %vm1174_vm2, %v2873_v16, %v2875_v63  ;;  %v8280_v36 = vsel %vm1174_vm2, %v2875_v63, %v2877_v61  ;;  %v3061_v16 = vsel %vm1174_vm2, %v2855_v23, %v2857_v48  ;;  %v3062_v63 = vsel %vm1174_vm2, %v2857_v48, %v8225_v12 }
 0x6b1   : > { %3485 = vmatpush.bf16.msrb.mxu1 %v3068_v22  ;;  %3618 = vmatpush.bf16.msrb.mxu0 %v8280_v36  ;;  %v8308_v23 = vsel %vm1174_vm2, %v2851_v10, %v8195_v57  ;;  %v8326_v57 = vsel %vm1174_vm2, %v8241_v3, %v8249_v14  ;;  %v3052_v10 = vsel %vm1174_vm2, %v8190_v38, %v8197_v46  ;;  %v10316_v22 = vld [vmem:[#allocation36_spill] sm:$0xff] }
 0x6b2   : > { %v3049_v38 = vsel %vm1174_vm2, %v8069_v19, %v8151_v56  ;;  %v3050_v46 = vsel %vm1174_vm2, %v8151_v56, %v8155_v34  ;;  %v3046_v19 = vsel %vm1174_vm2, %v8104_v8, %v8057_v51  ;;  %v5469_v56 = vor.u32 %v5519_v62, %v5466_v45  ;;  %v10322_v62 = vld [vmem:[#allocation55_spill] sm:$0xff] }
 0x6b3   : > { %v3047_v34 = vsel %vm1174_vm2, %v8057_v51, %v8123_v2  ;;  %v8377_v25 = vsel %vm1174_vm2, %v8123_v2, %v8127_v15  ;;  %v2997_v8 = vsel %vm1174_vm2, %v7682_v4, %v10316_v22  ;;  %v2993_v51 = vsel %vm1174_vm2, %v7602_v5, %v7664_v30  ;;  %v10317_v4 = vld [vmem:[#allocation71_spill] sm:$0xff] }
 0x6b4   : > { %3353 = vmatpush.bf16.msrb.mxu2 %v3064_v32  ;;  %v8300_v32 = vsel %vm1174_vm2, %v8225_v12, %v2861_v41  ;;  %v2994_v2 = vsel %vm1174_vm2, %v7664_v30, %v7668_v43  ;;  %v2990_v15 = vsel %vm1174_vm2, %v7638_v28, %v10317_v4  ;;  %v5526_v43 = vld [vmem:[%s9928_s5 + $0x4c] sm:$0xf]  ;;  %v5494_v28 = vld [vmem:[%s9928_s5 + $0x64] sm:$0xf0]  ;;  %v10320_v30 = vld [vmem:[#allocation51_spill] sm:$0xff] }
 0x6b5   : > { %3486 = vmatpush.bf16.msrb.mxu1 %v3065_v7  ;;  %3619 = vmatpush.bf16.msrb.mxu0 %v8288_v6 }
 0x6b6   : > { %v8291_v18 = vpop.permute.xlu0 %2878 }
 0x6b7   : > { %v8293_v61 = vpop.permute.xlu1 %2880  ;;  %v8343_v14 = vpop.permute.xlu2 %2900 }
 0x6b8   : > { %3354 = vmatpush.bf16.msrb.mxu2 %v3061_v16 }
 0x6b9   : > { %3487 = vmatpush.bf16.msrb.mxu1 %v3062_v63  ;;  %3620 = vmatpush.bf16.msrb.mxu0 %v8300_v32  ;;  %v10318_v63 = vld [vmem:[#allocation31_spill] sm:$0xff] }
 0x6bc   : > { %3355 = vmatpush.bf16.msrb.mxu2 %v3058_v49  ;;  %v2991_v49 = vsel %vm1174_vm2, %v10317_v4, %v10318_v63  ;;  %v10327_v63 = vld [vmem:[#allocation35_spill] sm:$0xff] }
 0x6bd   : > { %3488 = vmatpush.bf16.msrb.mxu1 %v3059_v42  ;;  %3621 = vmatpush.bf16.msrb.mxu0 %v8308_v23 }
 0x6be   : > { %v8313_v12 = vpop.permute.xlu0 %2884 }
 0x6bf   : > { %v8315_v48 = vpop.permute.xlu1 %2886  ;;  %v2919_v16 = vpop.permute.xlu2 %2918 }
 0x6c0   : > { %3356 = vmatpush.bf16.msrb.mxu2 %v3055_v39  ;;  %v10319_v39 = vld [vmem:[#allocation23_spill] sm:$0xff] }
 0x6c1   : > { %3489 = vmatpush.bf16.msrb.mxu1 %v3056_v53  ;;  %3622 = vmatpush.bf16.msrb.mxu0 %v8326_v57  ;;  %v2987_v53 = vsel %vm1174_vm2, %v7615_v60, %v10319_v39 }
 0x6c4   : > { %3357 = vmatpush.bf16.msrb.mxu2 %v3052_v10  ;;  %v2988_v10 = vsel %vm1174_vm2, %v10319_v39, %v10320_v30 }
 0x6c5   : > { %3490 = vmatpush.bf16.msrb.mxu1 %v3053_v0  ;;  %3623 = vmatpush.bf16.msrb.mxu0 %v8338_v44 }
 0x6c6   : > { %v8341_v3 = vpop.permute.xlu0 %2890 }
 0x6c7   : > { %v8345_v41 = vpop.permute.xlu1 %2892  ;;  %v2913_v0 = vpop.permute.xlu2 %2912 }
 0x6c8   : > { %3358 = vmatpush.bf16.msrb.mxu2 %v3049_v38  ;;  %v8413_v38 = vor.u32 %v5526_v43, %v5494_v28  ;;  %v10328_v43 = vld [vmem:[#allocation30_spill] sm:$0xff] }
 0x6c9   : > { %3491 = vmatpush.bf16.msrb.mxu1 %v3050_v46  ;;  %3624 = vmatpush.bf16.msrb.mxu0 %v8356_v21  ;;  %v10321_v46 = vld [vmem:[#allocation81_spill] sm:$0xff]  ;;  %v10329_v28 = vld [vmem:[#allocation14_spill] sm:$0xff] }
 0x6ca   : > { %v2984_v60 = vsel %vm1174_vm2, %v7297_v13, %v10321_v46  ;;  %v2985_v45 = vsel %vm1174_vm2, %v10321_v46, %v10322_v62  ;;  %v10324_v13 = vld [vmem:[#allocation104_spill] sm:$0xff]  ;;  %v2975_v30 = vsel %vm1174_vm2, %v10329_v28, %v10328_v43 }
 0x6cc   : > { %3359 = vmatpush.bf16.msrb.mxu2 %v3046_v19 }
 0x6cd   : > { %3492 = vmatpush.bf16.msrb.mxu1 %v3047_v34  ;;  %3625 = vmatpush.bf16.msrb.mxu0 %v8377_v25  ;;  %v10323_v34 = vld [vmem:[#allocation99_spill] sm:$0xff] }
 0x6ce   : > { %v8383_v7 = vpop.permute.xlu0 %2896  ;;  %v2981_v22 = vsel %vm1174_vm2, %v7299_v31, %v10323_v34 }
 0x6cf   : > { %3360 = vmatmul.bf16.vlgmr.msrb.gmra.mxu2 %v5469_v56  ;;  %v8385_v11 = vpop.permute.xlu1 %2898 }
 0x6d0   : > { %3428 = vmatpush.bf16.msra.mxu2 %v2996_v24  ;;  %3493 = vmatmul.bf16.vlgmr.msrb.gmra.mxu1 %v5469_v56 }
 0x6d1   : > { %3561 = vmatpush.bf16.msra.mxu1 %v2997_v8  ;;  %3626 = vmatmul.bf16.vlgmr.msrb.gmra.mxu0 %v5469_v56  ;;  %v2982_v8 = vsel %vm1174_vm2, %v10323_v34, %v10324_v13 }
 0x6d4   : > { %3429 = vmatpush.bf16.msra.mxu2 %v2993_v51 }
 0x6d5   : > { %3562 = vmatpush.bf16.msra.mxu1 %v2994_v2  ;;  %v10326_v2 = vld [vmem:[#allocation65_spill] sm:$0xff] }
 0x6d6   : > { %v2903_v42 = vpop.permute.xlu0 %2902 }
 0x6d7   : > { %v8399_v5 = vpop.permute.xlu1 %2904 }
 0x6d8   : > { %3430 = vmatpush.bf16.msra.mxu2 %v2990_v15  ;;  %v2915_v15 = vpop.permute.xlu2 %2914  ;;  %v3079_v39 = vsel %vm1174_vm2, %v2903_v42, %v8399_v5 }
 0x6d9   : > { %3563 = vmatpush.bf16.msra.mxu1 %v2991_v49 }
 0x6dc   : > { %3431 = vmatpush.bf16.msra.mxu2 %v2987_v53 }
 0x6dd   : > { %3564 = vmatpush.bf16.msra.mxu1 %v2988_v10  ;;  %v10330_v10 = vld [vmem:[#allocation47_spill] sm:$0xff] }
 0x6de   : > { %v2921_v19 = vpop.permute.xlu0 %2920  ;;  %v2976_v46 = vsel %vm1174_vm2, %v10328_v43, %v10330_v10  ;;  %v3021_v43 = vsel %vm1174_vm2, %v7881_v52, %v7885_v26  ;;  %v10339_v26 = vld [vmem:[#allocation76_spill] sm:$0xff]  ;;  %v10342_v10 = vld [vmem:[#allocation21_spill] sm:$0xff] }
 0x6df   : > { %v3085_v56 = vsel %vm1174_vm2, %v2919_v16, %v2921_v19  ;;  %3365 = vmatmul.bf16.gmra.mxu2 %v8413_v38  ;;  %v2911_v24 = vpop.permute.xlu1 %2910  ;;  %v10325_v16 = vld [vmem:[#allocation15_spill] sm:$0xff] }
 0x6e0   : > { %3432 = vmatpush.bf16.msra.mxu2 %v2984_v60  ;;  %3373 = vmatpush.bf16.msrb.mxu3 %v3085_v56  ;;  %v3082_v51 = vsel %vm1174_vm2, %v2911_v24, %v2913_v0  ;;  %v2978_v4 = vsel %vm1174_vm2, %v10326_v2, %v10325_v16  ;;  %v2979_v31 = vsel %vm1174_vm2, %v10325_v16, %v10327_v63  ;;  %v2925_v62 = vpop.permute.xlu2 %2924  ;;  %v10332_v2 = vld [vmem:[#allocation40_spill] sm:$0xff] }
 0x6e1   : > { %3565 = vmatpush.bf16.msra.mxu1 %v2985_v45  ;;  %v3076_v60 = vsel %vm1174_vm2, %v8310_v1, %v8383_v7  ;;  %v10331_v45 = vld [vmem:[#allocation82_spill] sm:$0xff]  ;;  %v3073_v56 = vsel %vm1174_vm2, %v8315_v48, %v8283_v47  ;;  %v5523_v1 = vld [vmem:[%s9928_s5 + $0x30] sm:$0xf0]  ;;  %v3077_v63 = vsel %vm1174_vm2, %v8383_v7, %v8385_v11  ;;  %v5500_v7 = vld [vmem:[%s9928_s5 + $0x50] sm:$0xf] }
 0x6e2   : > { %3498 = vmatmul.bf16.gmra.mxu1 %v8413_v38 }
 0x6e4   : > { %3433 = vmatpush.bf16.msra.mxu2 %v2981_v22  ;;  %3374 = vmatpush.bf16.msrb.mxu3 %v3082_v51  ;;  %v5472_v22 = vld [vmem:[%s9928_s5 + $0x18] sm:$0xf]  ;;  %v3083_v51 = vsel %vm1174_vm2, %v2913_v0, %v2915_v15  ;;  %v10333_v0 = vld [vmem:[#allocation61_spill] sm:$0xff] }
 0x6e5   : > { %3566 = vmatpush.bf16.msra.mxu1 %v2982_v8  ;;  %v5473_v13 = vor.u32 %v5523_v1, %v5472_v22  ;;  %v3020_v8 = vsel %vm1174_vm2, %v7823_v29, %v7881_v52  ;;  %v3018_v52 = vsel %vm1174_vm2, %v10332_v2, %v10339_v26 }
 0x6e6   : > { %v2907_v53 = vpop.permute.xlu0 %2906 }
 0x6e7   : > { %v2909_v49 = vpop.permute.xlu1 %2908 }
 0x6e8   : > { %3434 = vmatpush.bf16.msra.mxu2 %v2978_v4  ;;  %3375 = vmatpush.bf16.msrb.mxu3 %v3079_v39  ;;  %v3080_v4 = vsel %vm1174_vm2, %v8399_v5, %v2907_v53  ;;  %v8482_v29 = vsel %vm1174_vm2, %v2907_v53, %v2909_v49  ;;  %v10334_v5 = vld [vmem:[#allocation39_spill] sm:$0xff]  ;;  %v3071_v53 = vsel %vm1174_vm2, %v8293_v61, %v8273_v55 }
 0x6e9   : > { %3567 = vmatpush.bf16.msra.mxu1 %v2979_v31  ;;  %v10335_v31 = vld [vmem:[#allocation50_spill] sm:$0xff] }
 0x6ea   : > { %v3011_v49 = vsel %vm1174_vm2, %v7741_v37, %v10335_v31  ;;  %v8514_v37 = vsel %vm1174_vm2, %v8341_v3, %v8345_v41  ;;  %v10338_v41 = vld [vmem:[#allocation17_spill] sm:$0xff] }
 0x6ec   : > { %3435 = vmatpush.bf16.msra.mxu2 %v2975_v30  ;;  %3376 = vmatpush.bf16.msrb.mxu3 %v3076_v60  ;;  %v10343_v60 = vld [vmem:[#allocation38_spill] sm:$0xff] }
 0x6ed   : > { %3568 = vmatpush.bf16.msra.mxu1 %v2976_v46  ;;  %v3015_v46 = vsel %vm1174_vm2, %v10333_v0, %v10342_v10  ;;  %v10365_v10 = vld [vmem:[#allocation28_spill] sm:$0xff] }
 0x6ee   : > { %v2917_v48 = vpop.permute.xlu0 %2916 }
 0x6ef   : > { %3436 = vmatmul.bf16.vlgmr.msra.gmra.mxu2 %v10331_v45  ;;  %v2923_v42 = vpop.permute.xlu1 %2922  ;;  %v8472_v16 = vsel %vm1174_vm2, %v2915_v15, %v2917_v48  ;;  %v3014_v15 = vsel %vm1174_vm2, %v7835_v40, %v10333_v0  ;;  %v3074_v40 = vsel %vm1174_vm2, %v8283_v47, %v8341_v3  ;;  %v8531_v3 = vsel %vm1174_vm2, %v8273_v55, %v8313_v12  ;;  %v10340_v55 = vld [vmem:[#allocation74_spill] sm:$0xff]  ;;  %v10341_v12 = vld [vmem:[#allocation49_spill] sm:$0xff] }
 0x6f0   : > { %v3086_v24 = vsel %vm1174_vm2, %v2921_v19, %v2923_v42  ;;  %v8454_v34 = vsel %vm1174_vm2, %v2923_v42, %v2925_v62  ;;  %3377 = vmatpush.bf16.msrb.mxu3 %v3073_v56  ;;  %v3070_v19 = vsel %vm1174_vm2, %v8291_v18, %v8293_v61  ;;  %v3017_v18 = vsel %vm1174_vm2, %v7851_v33, %v10332_v2  ;;  %v10337_v61 = vld [vmem:[#allocation25_spill] sm:$0xff]  ;;  %v10345_v42 = vld [vmem:[#allocation106_spill] sm:$0xff] }
 0x6f1   : > { %3506 = vmatpush.bf16.msrb.mxu2 %v3086_v24  ;;  %3639 = vmatpush.bf16.msrb.mxu1 %v8454_v34  ;;  %v8494_v33 = vsel %vm1174_vm2, %v8385_v11, %v8343_v14  ;;  %v5530_v14 = vld [vmem:[%s9928_s5 + $0x68] sm:$0xf0]  ;;  %v10336_v11 = vld [vmem:[#allocation66_spill] sm:$0xff]  ;;  %v3005_v28 = vsel %vm1174_vm2, %v10338_v41, %v10337_v61  ;;  %v3002_v30 = vsel %vm1174_vm2, %v10341_v12, %v10340_v55  ;;  %v10351_v2 = vld [vmem:[#allocation93_spill] sm:$0xff] }
 0x6f2   : > { %3569 = vmatmul.bf16.vlgmr.msra.gmra.mxu1 %v10331_v45  ;;  %v8517_v47 = vor.u32 %v5530_v14, %v5500_v7  ;;  %v3008_v39 = vsel %vm1174_vm2, %v7786_v20, %v10336_v11  ;;  %v8536_v20 = vpop.f32.mrf.mxu3  ;;  %v2999_v62 = vsel %vm1174_vm2, %v7700_v35, %v10343_v60  ;;  %v10344_v45 = vld [vmem:[#allocation107_spill] sm:$0xff]  ;;  %v10346_v24 = vld [vmem:[#allocation56_spill] sm:$0xff]  ;;  %v10347_v48 = vld [vmem:[#allocation102_spill] sm:$0xff] }
 0x6f3   : > { %v2949_v56 = vsel %vm1174_vm2, %v10345_v42, %v10344_v45  ;;  %v3012_v22 = vsel %vm1174_vm2, %v10335_v31, %v10346_v24  ;;  %v10349_v35 = vld [vmem:[#allocation32_spill] sm:$0xff]  ;;  %v10353_v0 = vld [vmem:[#allocation53_spill] sm:$0xff]  ;;  %v10357_v14 = vld [vmem:[#allocation79_spill] sm:$0xff] }
 0x6f4   : > { %3378 = vmatpush.bf16.msrb.mxu3 %v3070_v19  ;;  %v10348_v19 = vld [vmem:[#allocation95_spill] sm:$0xff]  ;;  %v10355_v31 = vld [vmem:[#allocation88_spill] sm:$0xff]  ;;  %v10364_v12 = vld [vmem:[#allocation45_spill] sm:$0xff] }
 0x6f5   : > { %3507 = vmatpush.bf16.msrb.mxu2 %v3083_v51  ;;  %3640 = vmatpush.bf16.msrb.mxu1 %v8472_v16  ;;  %v10350_v51 = vld [vmem:[#allocation24_spill] sm:$0xff]  ;;  %v10369_v42 = vld [vmem:[#allocation63_spill] sm:$0xff] }
 0x6f6   : > { %v10361_v41 = vld [vmem:[#allocation48_spill] sm:$0xff] }
 0x6f7   : > { %5502 = vmatmul.msk.bf16.vlgmr.msrb.gmra.mxu3 %vm3250_vm1, %v5473_v13 }
 0x6f8   : > { %3447 = vmatpush.bf16.msra.mxu3 %v3020_v8  ;;  %v2946_v8 = vsel %vm1174_vm2, %v10348_v19, %v10347_v48  ;;  %v10376_v19 = vld [vmem:[#allocation68_spill] sm:$0xff] }
 0x6f9   : > { %3508 = vmatpush.bf16.msrb.mxu2 %v3080_v4  ;;  %3641 = vmatpush.bf16.msrb.mxu1 %v8482_v29 }
 0x6fa   : > { %v8561_v1 = vpop.f32.mrf.mxu3 }
 0x6fc   : > { %3448 = vmatpush.bf16.msra.mxu3 %v3017_v18  ;;  %v10352_v18 = vld [vmem:[#allocation90_spill] sm:$0xff] }
 0x6fd   : > { %3509 = vmatpush.bf16.msrb.mxu2 %v3077_v63  ;;  %3642 = vmatpush.bf16.msrb.mxu1 %v8494_v33  ;;  %v2943_v4 = vsel %vm1174_vm2, %v10352_v18, %v10351_v2  ;;  %v3342_v2 = vpop.f32.mrf.mxu1 }
 0x6ff   : > { %3441 = vmatmul.bf16.gmra.mxu2 %v10334_v5 }
 0x700   : > { %3449 = vmatpush.bf16.msra.mxu3 %v3014_v15  ;;  %v3006_v15 = vsel %vm1174_vm2, %v10337_v61, %v10353_v0  ;;  %v10360_v61 = vld [vmem:[#allocation57_spill] sm:$0xff] }
 0x701   : > { %3510 = vmatpush.bf16.msrb.mxu2 %v3074_v40  ;;  %3643 = vmatpush.bf16.msrb.mxu1 %v8514_v37  ;;  %v10356_v40 = vld [vmem:[#allocation69_spill] sm:$0xff] }
 0x702   : > { %3574 = vmatmul.bf16.gmra.mxu1 %v10334_v5  ;;  %v8576_v63 = vpop.f32.mrf.mxu3  ;;  %v10354_v5 = vld [vmem:[#allocation89_spill] sm:$0xff]  ;;  %v3003_v7 = vsel %vm1174_vm2, %v10340_v55, %v10356_v40  ;;  %v10363_v55 = vld [vmem:[#allocation46_spill] sm:$0xff] }
 0x704   : > { %3450 = vmatpush.bf16.msra.mxu3 %v3011_v49  ;;  %v2940_v49 = vsel %vm1174_vm2, %v10355_v31, %v10354_v5 }
 0x705   : > { %3511 = vmatpush.bf16.msrb.mxu2 %v3071_v53  ;;  %3644 = vmatpush.bf16.msrb.mxu1 %v8531_v3  ;;  %v10359_v53 = vld [vmem:[#allocation58_spill] sm:$0xff] }
 0x707   : > { %5503 = vmatmul.msk.bf16.gmra.mxu3 %vm3250_vm1, %v8517_v47 }
 0x708   : > { %3451 = vmatpush.bf16.msra.mxu3 %v3008_v39 }
 0x709   : > { %3580 = vmatpush.bf16.msra.mxu2 %v3021_v43  ;;  %v3000_v43 = vsel %vm1174_vm2, %v10343_v60, %v10359_v53 }
 0x70a   : > { %v8596_v26 = vpop.f32.mrf.mxu3 }
 0x70c   : > { %3452 = vmatpush.bf16.msra.mxu3 %v3005_v28  ;;  %v2934_v28 = vsel %vm1174_vm2, %v10361_v41, %v10360_v61 }
 0x70d   : > { %3581 = vmatpush.bf16.msra.mxu2 %v3018_v52  ;;  %v10362_v52 = vld [vmem:[#allocation42_spill] sm:$0xff] }
 0x70f   : > { %5504 = vmatmul.msk.bf16.vlgmr.msrb.gmra.mxu2 %vm3250_vm1, %v5473_v13 }
 0x710   : > { %3453 = vmatpush.bf16.msra.mxu3 %v3002_v30  ;;  %v2931_v30 = vsel %vm1174_vm2, %v10364_v12, %v10363_v55  ;;  %v10382_v12 = vld [vmem:[#allocation8_spill] sm:$0xff] }
 0x711   : > { %3582 = vmatpush.bf16.msra.mxu2 %v3015_v46 }
 0x712   : > { %5506 = vmatmul.msk.bf16.vlgmr.msrb.gmra.mxu1 %vm3250_vm1, %v5473_v13  ;;  %v3009_v13 = vsel %vm1174_vm2, %v10336_v11, %v10349_v35  ;;  %v10358_v11 = vld [vmem:[#allocation60_spill] sm:$0xff]  ;;  %v3285_v60 = vpop.f32.mrf.mxu3  ;;  %v10378_v35 = vld [vmem:[#allocation70_spill] sm:$0xff] }
 0x713   : > { %v2937_v39 = vsel %vm1174_vm2, %v10358_v11, %v10357_v14  ;;  %v10381_v14 = vld [vmem:[#allocation10_spill] sm:$0xff] }
 0x714   : > { %3454 = vmatpush.bf16.msra.mxu3 %v2999_v62  ;;  %v3045_v62 = vsel %vm1174_vm2, %v8042_v9, %v8100_v17  ;;  %v10370_v17 = vld [vmem:[#allocation59_spill] sm:$0xff] }
 0x715   : > { %3583 = vmatpush.bf16.msra.mxu2 %v3012_v22  ;;  %v10373_v22 = vld [vmem:[#allocation111_spill] sm:$0xff] }
 0x717   : > { %3455 = vmatmul.bf16.vlgmr.msra.gmra.mxu3 %v10350_v51 }
 0x718   : > { %3523 = vmatpush.bf16.msrb.mxu3 %v2949_v56  ;;  %v3039_v56 = vsel %vm1174_vm2, %v8055_v27, %v10369_v42 }
 0x719   : > { %3584 = vmatpush.bf16.msra.mxu2 %v3009_v13  ;;  %v3323_v13 = vpop.f32.mrf.mxu0 }
 0x71a   : > { %v3287_v9 = vpop.f32.mrf.mxu3 }
 0x71c   : > { %3524 = vmatpush.bf16.msrb.mxu3 %v2946_v8 }
 0x71d   : > { %3585 = vmatpush.bf16.msra.mxu2 %v3006_v15 }
 0x71f   : > { %5505 = vmatmul.msk.bf16.gmra.mxu2 %vm3250_vm1, %v8517_v47 }
 0x720   : > { %3525 = vmatpush.bf16.msrb.mxu3 %v2943_v4  ;;  %v10379_v4 = vld [vmem:[#allocation78_spill] sm:$0xff] }
 0x721   : > { %3586 = vmatpush.bf16.msra.mxu2 %v3003_v7 }
 0x722   : > { %v3290_v27 = vpop.f32.mrf.mxu3 }
 0x724   : > { %3526 = vmatpush.bf16.msrb.mxu3 %v2940_v49 }
 0x725   : > { %3587 = vmatpush.bf16.msra.mxu2 %v3000_v43 }
 0x727   : > { %3460 = vmatmul.bf16.gmra.mxu3 %v10362_v52 }
 0x728   : > { %3527 = vmatpush.bf16.msrb.mxu3 %v2937_v39 }
 0x729   : > { %5573 = vmatpush.bf16.msrb.mxu2 %v8280_v36  ;;  %v10366_v36 = vld [vmem:[#allocation12_spill] sm:$0xff] }
 0x72a   : > { %v2928_v46 = vsel %vm1174_vm2, %v10366_v36, %v10365_v10  ;;  %v3292_v8 = vpop.f32.mrf.mxu3 }
 0x72c   : > { %3528 = vmatpush.bf16.msrb.mxu3 %v2934_v28 }
 0x72d   : > { %5574 = vmatpush.bf16.msrb.mxu2 %v8288_v6  ;;  %v10367_v6 = vld [vmem:[#allocation52_spill] sm:$0xff] }
 0x72e   : > { %v3042_v45 = vsel %vm1174_vm2, %v8071_v50, %v10367_v6  ;;  %v10371_v50 = vld [vmem:[#allocation27_spill] sm:$0xff] }
 0x72f   : > { %3588 = vmatmul.bf16.vlgmr.msra.gmra.mxu2 %v10350_v51 }
 0x730   : > { %3529 = vmatpush.bf16.msrb.mxu3 %v2931_v30  ;;  %v3272_v30 = vadd.f32 %v8576_v63, %v10382_v12 }
 0x731   : > { %5575 = vmatpush.bf16.msrb.mxu2 %v8300_v32  ;;  %v10368_v32 = vld [vmem:[#allocation13_spill] sm:$0xff] }
 0x732   : > { %v3291_v36 = vadd.f32 %v3290_v27, %v3272_v30 }
 0x734   : > { %3530 = vmatpush.bf16.msrb.mxu3 %v2928_v46 }
 0x735   : > { %5576 = vmatpush.bf16.msrb.mxu2 %v8308_v23  ;;  %v3036_v23 = vsel %vm1174_vm2, %v7955_v59, %v10370_v17  ;;  %v10374_v59 = vld [vmem:[#allocation41_spill] sm:$0xff] }
 0x737   : > { %3531 = vmatmul.bf16.vlgmr.msrb.gmra.mxu3 %v10368_v32 }
 0x738   : > { %3599 = vmatpush.bf16.msra.mxu3 %v3045_v62 }
 0x739   : > { %5577 = vmatpush.bf16.msrb.mxu2 %v8326_v57  ;;  %v3033_v57 = vsel %vm1174_vm2, %v8006_v58, %v10371_v50  ;;  %v10377_v58 = vld [vmem:[#allocation19_spill] sm:$0xff] }
 0x73c   : > { %3600 = vmatpush.bf16.msra.mxu3 %v3042_v45 }
 0x73d   : > { %5578 = vmatpush.bf16.msrb.mxu2 %v8338_v44  ;;  %v10372_v44 = vld [vmem:[#allocation34_spill] sm:$0xff] }
 0x73e   : > { %v3030_v24 = vsel %vm1174_vm2, %v7973_v54, %v10372_v44  ;;  %v3304_v54 = vpop.f32.mrf.mxu3 }
 0x73f   : > { %3593 = vmatmul.bf16.gmra.mxu2 %v10362_v52 }
 0x740   : > { %3601 = vmatpush.bf16.msra.mxu3 %v3039_v56  ;;  %v10383_v56 = vld [vmem:[#allocation9_spill] sm:$0xff] }
 0x741   : > { %5579 = vmatpush.bf16.msrb.mxu2 %v8356_v21  ;;  %v10375_v21 = vld [vmem:[#allocation72_spill] sm:$0xff] }
 0x742   : > { %v3027_v48 = vsel %vm1174_vm2, %v10375_v21, %v10374_v59 }
 0x744   : > { %3602 = vmatpush.bf16.msra.mxu3 %v3036_v23 }
 0x745   : > { %5580 = vmatpush.bf16.msrb.mxu2 %v8377_v25  ;;  %v3024_v25 = vsel %vm1174_vm2, %v10377_v58, %v10376_v19  ;;  %vm10415_vm2 = vmmov %vm10408_vm15 }
 0x746   : > { %v3306_v51 = vpop.f32.mrf.mxu3 }
 0x747   : > { %3536 = vmatmul.bf16.gmra.mxu3 %v10373_v22 }
 0x748   : > { %3603 = vmatpush.bf16.msra.mxu3 %v3033_v57 }
 0x74c   : > { %3604 = vmatpush.bf16.msra.mxu3 %v3030_v24 }
 0x74f   : > { %3631 = vmatmul.bf16.vlgmr.msrb.gmra.mxu2 %v8413_v38  ;;  %v3309_v38 = vpop.f32.mrf.mxu3 }
 0x750   : > { %3605 = vmatpush.bf16.msra.mxu3 %v3027_v48  ;;  %v3310_v62 = vadd.f32 %v3309_v38, %v3291_v36 }
 0x752   : > { %v3361_v18 = vpop.f32.mrf.mxu2 }
 0x754   : > { %3606 = vmatpush.bf16.msra.mxu3 %v3024_v25 }
 0x757   : > { %3607 = vmatmul.bf16.vlgmr.msra.gmra.mxu3 %v10378_v35 }
 0x758   : > { %5581 = vmatpush.bf16.msrb.mxu3 %v8454_v34  ;;  %v3325_v34 = vpop.f32.mrf.mxu0 }
 0x75a   : > { %v3363_v0 = vpop.f32.mrf.mxu2 }
 0x75c   : > { %5582 = vmatpush.bf16.msrb.mxu3 %v8472_v16  ;;  %v3344_v16 = vpop.f32.mrf.mxu1 }
 0x760   : > { %5583 = vmatpush.bf16.msrb.mxu3 %v8482_v29  ;;  %v3328_v15 = vpop.f32.mrf.mxu0  ;;  %v10380_v29 = vld [vmem:[#allocation7_spill] sm:$0xff] }
 0x761   : > { %v3267_v5 = vadd.f32 %v8536_v20, %v10380_v29  ;;  %v3329_v45 = vadd.f32 %v3328_v15, %v3310_v62 }
 0x762   : > { %v3366_v7 = vpop.f32.mrf.mxu2 }
 0x763   : > { %v3286_v31 = vadd.f32 %v3285_v60, %v3267_v5 }
 0x764   : > { %5584 = vmatpush.bf16.msrb.mxu3 %v8494_v33  ;;  %v3311_v33 = vpop.f32.mrf.mxu3  ;;  %v3347_v49 = vpop.f32.mrf.mxu1 }
 0x765   : > { %v3305_v40 = vadd.f32 %v3304_v54, %v3286_v31  ;;  %v3348_v17 = vadd.f32 %v3347_v49, %v3329_v45 }
 0x767   : > { %3612 = vmatmul.bf16.gmra.mxu3 %v10379_v4  ;;  %v3367_v23 = vadd.f32 %v3366_v7, %v3348_v17 }
 0x768   : > { %5585 = vmatpush.bf16.msrb.mxu3 %v8514_v37  ;;  %v3324_v37 = vadd.f32 %v3323_v13, %v3305_v40  ;;  %v3330_v39 = vpop.f32.mrf.mxu0 }
 0x76a   : > { %v3343_v11 = vadd.f32 %v3342_v2, %v3324_v37 }
 0x76c   : > { %5586 = vmatpush.bf16.msrb.mxu3 %v8531_v3  ;;  %v3269_v3 = vadd.f32 %v8561_v1, %v10381_v14  ;;  %v3362_v43 = vadd.f32 %v3361_v18, %v3343_v11  ;;  %v3349_v20 = vpop.f32.mrf.mxu1  ;;  %v3368_v1 = vpop.f32.mrf.mxu2 }
 0x76e   : > { %v3288_v53 = vadd.f32 %v3287_v9, %v3269_v3  ;;  %v3274_v9 = vadd.f32 %v8596_v26, %v10383_v56 }
 0x770   : > { %v3307_v41 = vadd.f32 %v3306_v51, %v3288_v53  ;;  %v3399_v46 = vpop.f32.mrf.mxu0  ;;  %v3293_v63 = vadd.f32 %v3292_v8, %v3274_v9 }
 0x772   : > { %v3326_v52 = vadd.f32 %v3325_v34, %v3307_v41  ;;  %v3312_v27 = vadd.f32 %v3311_v33, %v3293_v63 }
 0x774   : > { %v3345_v10 = vadd.f32 %v3344_v16, %v3326_v52  ;;  %v3418_v42 = vpop.f32.mrf.mxu1  ;;  %v3437_v50 = vpop.f32.mrf.mxu2  ;;  %v3331_v22 = vadd.f32 %v3330_v39, %v3312_v27 }
 0x776   : > { %v3350_v21 = vadd.f32 %v3349_v20, %v3331_v22 }
 0x777   : > { %5507 = vmatmul.msk.bf16.vlgmr.msrb.gmra.mxu3 %vm3250_vm1, %v8517_v47  ;;  %v3364_v47 = vadd.f32 %v3363_v0, %v3345_v10  ;;  %v3400_v0 = vadd.f32 %v3399_v46, %v10380_v29 }
 0x778   : > { %v3401_v24 = vpop.f32.mrf.mxu0  ;;  %v3369_v48 = vadd.f32 %v3368_v1, %v3350_v21 }
 0x779   : > { %v3419_v5 = vadd.f32 %v3418_v42, %v3400_v0 }
 0x77a   : > { %v3380_v61 = vpop.f32.mrf.mxu3 }
 0x77b   : > { %v3381_v28 = vadd.f32 %v3380_v61, %v3362_v43  ;;  %v3438_v33 = vadd.f32 %v3437_v50, %v3419_v5  ;;  %v3402_v61 = vadd.f32 %v3401_v24, %v10381_v14 }
 0x77c   : > { %v3420_v26 = vpop.f32.mrf.mxu1  ;;  %v3439_v25 = vpop.f32.mrf.mxu2 }
 0x77d   : > { %v8655_v55 = vmax.f32 %v3381_v28, 0.0  ;;  %v3421_v30 = vadd.f32 %v3420_v26, %v3402_v61 }
 0x77f   : > { %3672 = vrot.lane.b32.xlu0 %v8655_v55, %s5735_s14 }
 0x780   : > { %v3404_v54 = vpop.f32.mrf.mxu0 }
 0x781   : > { %v3405_v53 = vadd.f32 %v3404_v54, %v10382_v12 }
 0x782   : > { %v3382_v60 = vpop.f32.mrf.mxu3 }
 0x783   : > { %v3383_v6 = vadd.f32 %v3382_v60, %v3364_v47  ;;  %v3440_v47 = vadd.f32 %v3439_v25, %v3421_v30 }
 0x784   : > { %v3423_v35 = vpop.f32.mrf.mxu1  ;;  %v3442_v13 = vpop.f32.mrf.mxu2 }
 0x785   : > { %v8661_v32 = vmax.f32 %v3383_v6, 0.0  ;;  %v3424_v28 = vadd.f32 %v3423_v35, %v3405_v53 }
 0x787   : > { %3674 = vrot.lane.b32.xlu1 %v8661_v32, %s5735_s14  ;;  %v3443_v1 = vadd.f32 %v3442_v13, %v3424_v28 }
 0x788   : > { %v3406_v51 = vpop.f32.mrf.mxu0 }
 0x789   : > { %v3407_v43 = vadd.f32 %v3406_v51, %v10383_v56 }
 0x78a   : > { %v3385_v57 = vpop.f32.mrf.mxu3 }
 0x78b   : > { %v3386_v44 = vadd.f32 %v3385_v57, %v3367_v23 }
 0x78c   : > { %v3425_v2 = vpop.f32.mrf.mxu1  ;;  %v3444_v34 = vpop.f32.mrf.mxu2 }
 0x78d   : > { %v8667_v59 = vmax.f32 %v3386_v44, 0.0  ;;  %v3426_v20 = vadd.f32 %v3425_v2, %v3407_v43  ;;  %v3889_v43 = vrot.slane %v8655_v55, 4 }
 0x78f   : > { %3676 = vrot.lane.b32.xlu2 %v8667_v59, %s5735_s14  ;;  %3684 = vrot.lane.b32.xlu1 %v8655_v55, %s5736_s23  ;;  %v3445_v36 = vadd.f32 %v3444_v34, %v3426_v20 }
 0x790   : > { %v3475_v4 = vpop.f32.mrf.mxu0 }
 0x792   : > { %v3387_v19 = vpop.f32.mrf.mxu3 }
 0x793   : > { %v3388_v58 = vadd.f32 %v3387_v19, %v3369_v48 }
 0x794   : > { %v3494_v38 = vpop.f32.mrf.mxu1  ;;  %v3513_v15 = vpop.f32.mrf.mxu2 }
 0x795   : > { %v8673_v8 = vmax.f32 %v3388_v58, 0.0 }
 0x797   : > { %3686 = vrot.lane.b32.xlu2 %v8661_v32, %s5736_s23  ;;  %3690 = vrot.lane.b32.xlu1 %v8673_v8, %s5736_s23 }
 0x798   : > { %3678 = vrot.lane.b32.xlu0 %v8673_v8, %s5735_s14  ;;  %s5740_s14 = smov 38   ;;  %v3477_v31 = vpop.f32.mrf.mxu0 }
 0x79a   : > { %v3456_v18 = vpop.f32.mrf.mxu3 }
 0x79b   : > { %v3457_v49 = vadd.f32 %v3456_v18, %v3438_v33 }
 0x79c   : > { %v3496_v40 = vpop.f32.mrf.mxu1  ;;  %v3515_v3 = vpop.f32.mrf.mxu2 }
 0x79d   : > { %v3476_v7 = vadd.f32 %v3475_v4, %v3457_v49 }
 0x79f   : > { %3696 = vrot.lane.b32.xlu2 %v8655_v55, %s5738_s30  ;;  %3700 = vrot.lane.b32.xlu1 %v8667_v59, %s5738_s30  ;;  %v3495_v39 = vadd.f32 %v3494_v38, %v3476_v7 }
 0x7a0   : > { %3688 = vrot.lane.b32.xlu0 %v8667_v59, %s5736_s23  ;;  %v3480_v11 = vpop.f32.mrf.mxu0  ;;  %s5741_s23 = smov 20  }
 0x7a1   : > { %v3514_v52 = vadd.f32 %v3513_v15, %v3495_v39 }
 0x7a2   : > { %v3458_v16 = vpop.f32.mrf.mxu3 }
 0x7a3   : > { %v8701_v60 = vmax.f32 %v3514_v52, 0.0  ;;  %v3459_v45 = vadd.f32 %v3458_v16, %v3440_v47 }
 0x7a4   : > { %v3499_v41 = vpop.f32.mrf.mxu1  ;;  %v3518_v46 = vpop.f32.mrf.mxu2 }
 0x7a5   : > { %v3478_v63 = vadd.f32 %v3477_v31, %v3459_v45 }
 0x7a7   : > { %3702 = vrot.lane.b32.xlu2 %v8673_v8, %s5738_s30  ;;  %3710 = vrot.lane.b32.xlu1 %v8661_v32, %s5739_s18  ;;  %v3497_v27 = vadd.f32 %v3496_v40, %v3478_v63  ;;  %v4561_v63 = vrot.slane %v8673_v8, 4 }
 0x7a8   : > { %3698 = vrot.lane.b32.xlu0 %v8661_v32, %s5738_s30  ;;  %v3482_v42 = vpop.f32.mrf.mxu0 }
 0x7a9   : > { %v3516_v26 = vadd.f32 %v3515_v3, %v3497_v27 }
 0x7aa   : > { %v3461_v37 = vpop.f32.mrf.mxu3 }
 0x7ab   : > { %v3462_v62 = vadd.f32 %v3461_v37, %v3443_v1  ;;  %v8715_v58 = vmax.f32 %v3516_v26, 0.0 }
 0x7ac   : > { %v3501_v23 = vpop.f32.mrf.mxu1  ;;  %v3520_v44 = vpop.f32.mrf.mxu2 }
 0x7ad   : > { %v3481_v9 = vadd.f32 %v3480_v11, %v3462_v62  ;;  %v10384_v11 = vld [vmem:[#allocation5_spill] sm:$0xff] }
 0x7af   : > { %3712 = vrot.lane.b32.xlu2 %v8667_v59, %s5739_s18  ;;  %3720 = vrot.lane.b32.xlu1 %v8655_v55, %s5740_s14  ;;  %v3500_v50 = vadd.f32 %v3499_v41, %v3481_v9 }
 0x7b0   : > { %3708 = vrot.lane.b32.xlu0 %v8655_v55, %s5739_s18  ;;  %v8729_v35 = vpop.f32.mrf.mxu0 }
 0x7b1   : > { %v3519_v22 = vadd.f32 %v3518_v46, %v3500_v50 }
 0x7b2   : > { %v3463_v10 = vpop.f32.mrf.mxu3 }
 0x7b3   : > { %v3464_v6 = vadd.f32 %v3463_v10, %v3445_v36  ;;  %v8711_v48 = vmax.f32 %v3519_v22, 0.0 }
 0x7b4   : > { %v8734_v51 = vpop.f32.mrf.mxu1  ;;  %v8745_v4 = vpop.f32.mrf.mxu2 }
 0x7b5   : > { %v3483_v17 = vadd.f32 %v3482_v42, %v3464_v6 }
 0x7b7   : > { %3722 = vrot.lane.b32.xlu2 %v8661_v32, %s5740_s14  ;;  %3726 = vrot.lane.b32.xlu1 %v8673_v8, %s5740_s14  ;;  %v3502_v57 = vadd.f32 %v3501_v23, %v3483_v17 }
 0x7b8   : > { %3714 = vrot.lane.b32.xlu0 %v8673_v8, %s5739_s18  ;;  %v8743_v34 = vpop.f32.mrf.mxu0 }
 0x7b9   : > { %v3521_v21 = vadd.f32 %v3520_v44, %v3502_v57 }
 0x7ba   : > { %v8706_v24 = vpop.f32.mrf.mxu3 }
 0x7bb   : > { %v8713_v19 = vmax.f32 %v3521_v21, 0.0  ;;  %v3533_v23 = vadd.f32 %v8706_v24, %v10380_v29 }
 0x7bc   : > { %v8747_v38 = vpop.f32.mrf.mxu1  ;;  %v8757_v37 = vpop.f32.mrf.mxu2 }
 0x7bf   : > { %3732 = vrot.lane.b32.xlu2 %v8655_v55, %s5741_s23  ;;  %3736 = vrot.lane.b32.xlu1 %v8667_v59, %s5741_s23 }
 0x7c0   : > { %3724 = vrot.lane.b32.xlu0 %v8667_v59, %s5740_s14  ;;  %v3556_v40 = vpop.f32.mrf.mxu0 }
 0x7c2   : > { %v8719_v25 = vpop.f32.mrf.mxu3 }
 0x7c3   : > { %v3535_v22 = vadd.f32 %v8719_v25, %v10381_v14  ;;  %v3552_v14 = vadd.f32 %v8729_v35, %v3533_v23 }
 0x7c4   : > { %v8759_v7 = vpop.f32.mrf.mxu1  ;;  %v8789_v9 = vpop.f32.mrf.mxu2 }
 0x7c7   : > { %3738 = vrot.lane.b32.xlu2 %v8673_v8, %s5741_s23  ;;  %3750 = vrot.lane.b32.xlu1 %v8701_v60, %s5742_s8 }
 0x7c8   : > { %3734 = vrot.lane.b32.xlu0 %v8661_v32, %s5741_s23  ;;  %v8778_v6 = vpop.f32.mrf.mxu0 }
 0x7ca   : > { %v8725_v54 = vpop.f32.mrf.mxu3 }
 0x7cc   : > { %v8791_v17 = vpop.f32.mrf.mxu1 }
 0x7cf   : > { %3752 = vrot.lane.b32.xlu2 %v8661_v32, %s5742_s8  ;;  %3756 = vrot.lane.b32.xlu1 %v8667_v59, %s5742_s8 }
 0x7d0   : > { %3748 = vrot.lane.b32.xlu0 %v8655_v55, %s5742_s8 }
 0x7d2   : > { %v8736_v2 = vpop.f32.mrf.mxu3 }
 0x7d7   : > { %3758 = vrot.lane.b32.xlu2 %v8711_v48, %s5742_s8  ;;  %3762 = vrot.lane.b32.xlu1 %v8713_v19, %s5742_s8 }
 0x7d8   : > { %3754 = vrot.lane.b32.xlu0 %v8715_v58, %s5742_s8 }
 0x7da   : > { %v8749_v0 = vpop.f32.mrf.mxu3 }
 0x7df   : > { %3773 = vrot.lane.b32.xlu2 %v8701_v60, %s5743_s16  ;;  %3777 = vrot.lane.b32.xlu1 %v8711_v48, %s5743_s16 }
 0x7e0   : > { %3760 = vrot.lane.b32.xlu0 %v8673_v8, %s5742_s8 }
 0x7e2   : > { %v8765_v53 = vpop.f32.mrf.mxu3 }
 0x7e7   : > { %3779 = vrot.lane.b32.xlu2 %v8713_v19, %s5743_s16  ;;  %3787 = vrot.lane.b32.xlu1 %v8715_v58, %s5744_s17 }
 0x7e8   : > { %3775 = vrot.lane.b32.xlu0 %v8715_v58, %s5743_s16 }
 0x7e9   : > { %v8732_v13 = vpop.permute.xlu2 %3676 }
 0x7ea   : > { %v8804_v21 = vpop.f32.mrf.mxu3  ;;  %v4349_v35 = vrot.slane %v8732_v13, 4 }
 0x7ef   : > { %3789 = vrot.lane.b32.xlu2 %v8711_v48, %s5744_s17  ;;  %3797 = vrot.lane.b32.xlu1 %v8701_v60, %s5745_s9 }
 0x7f0   : > { %3785 = vrot.lane.b32.xlu0 %v8701_v60, %s5744_s17 }
 0x7f1   : > { %v8741_v18 = vpop.permute.xlu2 %3686  ;;  %v3673_v16 = vpop.permute.xlu0 %3672 }
 0x7f2   : > { %v3901_v15 = vrot.slane %v3673_v16, 4 }
 0x7f7   : > { %3799 = vrot.lane.b32.xlu2 %v8715_v58, %s5745_s9  ;;  %3803 = vrot.lane.b32.xlu1 %v8713_v19, %s5745_s9 }
 0x7f8   : > { %3791 = vrot.lane.b32.xlu0 %v8713_v19, %s5744_s17 }
 0x7f9   : > { %v3697_v5 = vpop.permute.xlu2 %3696  ;;  %v8754_v31 = vpop.permute.xlu1 %3674 }
 0x7fa   : > { %v3899_v33 = vrot.slane %v3697_v5, 4  ;;  %v3902_v49 = vsel %vm676_vm0, %v3697_v5, %v3901_v15  ;;  %v3538_v5 = vadd.f32 %v8725_v54, %v10382_v12 }
 0x7fb   : > { %v3910_v39 = vperm.slane %v3902_v49, %v10384_v11 }
 0x7fc   : > { %v3900_v3 = vsel %vm676_vm0, %v3899_v33, %v3673_v16 }
 0x7fd   : > { %v3906_v61 = vperm.slane %v3900_v3, %v10384_v11  ;;  %v3947_v30 = vrot.slane %v3910_v39, 4 }
 0x7ff   : > { %3809 = vrot.lane.b32.xlu2 %v8701_v60, %s5746_s19  ;;  %3813 = vrot.lane.b32.xlu1 %v8711_v48, %s5746_s19  ;;  %v3935_v36 = vrot.slane %v3906_v61, 4 }
 0x800   : > { %3801 = vrot.lane.b32.xlu0 %v8711_v48, %s5745_s9 }
 0x801   : > { %v3703_v41 = vpop.permute.xlu2 %3702  ;;  %v3685_v28 = vpop.permute.xlu1 %3684 }
 0x802   : > { %v3886_v20 = vrot.slane %v3685_v28, 4  ;;  %v3890_v52 = vsel %vm676_vm0, %v3685_v28, %v3889_v43  ;;  %v4571_v50 = vrot.slane %v3703_v41, 4  ;;  %v3557_v28 = vadd.f32 %v3556_v40, %v3538_v5  ;;  %v8851_v5 = vpop.f32.mrf.mxu2 }
 0x803   : > { %v3898_v10 = vperm.slane %v3890_v52, %v10384_v11  ;;  %v3571_v40 = vadd.f32 %v8734_v51, %v3552_v14  ;;  %v8845_v51 = vpop.f32.mrf.mxu1 }
 0x804   : > { %v3888_v1 = vsel %vm676_vm0, %v3886_v20, %v8655_v55 }
 0x805   : > { %v3894_v47 = vperm.slane %v3888_v1, %v10384_v11  ;;  %v8776_v46 = vsel %vm676_vm0, %v3947_v30, %v3898_v10  ;;  %v3949_v62 = vrot.slane %v3898_v10, 4  ;;  %v4113_v30 = vrot.slane %v8661_v32, 4 }
 0x806   : > { %v4337_v1 = vrot.slane %v8667_v59, 4 }
 0x807   : > { %v3937_v45 = vrot.slane %v3894_v47, 4  ;;  %v8781_v42 = vsel %vm676_vm0, %v3910_v39, %v3949_v62  ;;  %3815 = vrot.lane.b32.xlu2 %v8713_v19, %s5746_s19  ;;  %3823 = vrot.lane.b32.xlu1 %v8715_v58, %s5747_s11  ;;  %v8787_v55 = vsel %vm676_vm0, %v3935_v36, %v3894_v47 }
 0x808   : > { %3811 = vrot.lane.b32.xlu0 %v8715_v58, %s5746_s19 }
 0x809   : > { %v8797_v57 = vpop.permute.xlu2 %3712  ;;  %v3691_v27 = vpop.permute.xlu1 %3690  ;;  %v8800_v44 = vsel %vm676_vm0, %v3906_v61, %v3937_v45  ;;  %v3554_v61 = vadd.f32 %v8743_v34, %v3535_v22 }
 0x80a   : > { %v3679_v26 = vpop.permute.xlu0 %3678  ;;  %v4559_v16 = vrot.slane %v3691_v27, 4  ;;  %v4562_v15 = vsel %vm676_vm0, %v3691_v27, %v4561_v63  ;;  %v4111_v27 = vrot.slane %v8741_v18, 4 }
 0x80b   : > { %v4572_v29 = vsel %vm676_vm0, %v4571_v50, %v3679_v26  ;;  %v4573_v24 = vrot.slane %v3679_v26, 4  ;;  %v4570_v33 = vperm.slane %v4562_v15, %v10384_v11  ;;  %v3573_v62 = vadd.f32 %v8747_v38, %v3554_v61  ;;  %v8853_v38 = vpop.f32.mrf.mxu3 }
 0x80c   : > { %v4578_v49 = vperm.slane %v4572_v29, %v10384_v11  ;;  %v4560_v3 = vsel %vm676_vm0, %v4559_v16, %v8673_v8  ;;  %v3627_v8 = vpop.f32.mrf.mxu0  ;;  %v3576_v15 = vadd.f32 %v8759_v7, %v3557_v28  ;;  %v3590_v7 = vadd.f32 %v8745_v4, %v3571_v40 }
 0x80d   : > { %v4574_v25 = vsel %vm676_vm0, %v3703_v41, %v4573_v24  ;;  %v4566_v39 = vperm.slane %v4560_v3, %v10384_v11  ;;  %v4621_v43 = vrot.slane %v4570_v33, 4  ;;  %v4112_v61 = vsel %vm676_vm0, %v4111_v27, %v8661_v32 }
 0x80e   : > { %v4582_v12 = vperm.slane %v4574_v25, %v10384_v11  ;;  %v4607_v54 = vrot.slane %v4578_v49, 4  ;;  %v3609_v32 = vadd.f32 %v8749_v0, %v3590_v7  ;;  %v4125_v28 = vrot.slane %v8754_v31, 4 }
 0x80f   : > { %v4609_v20 = vrot.slane %v4566_v39, 4  ;;  %3825 = vrot.lane.b32.xlu2 %v8711_v48, %s5747_s11  ;;  %3833 = vrot.lane.b32.xlu1 %v8701_v60, %s5748_s24  ;;  %v4118_v40 = vperm.slane %v4112_v61, %v10384_v11 }
 0x810   : > { %v4619_v41 = vrot.slane %v4582_v12, 4  ;;  %v8825_v52 = vsel %vm676_vm0, %v4582_v12, %v4621_v43  ;;  %3821 = vrot.lane.b32.xlu0 %v8701_v60, %s5747_s11  ;;  %v8830_v34 = vsel %vm676_vm0, %v4607_v54, %v4566_v39  ;;  %v3592_v43 = vadd.f32 %v8757_v37, %v3573_v62  ;;  %v3632_v62 = vpop.f32.mrf.mxu2 }
 0x811   : > { %v8834_v10 = vpop.permute.xlu2 %3722  ;;  %v3701_v36 = vpop.permute.xlu1 %3700  ;;  %v8838_v47 = vsel %vm676_vm0, %v4578_v49, %v4609_v20  ;;  %v3628_v27 = vadd.f32 %v3627_v8, %v3609_v32 }
 0x812   : > { %v8842_v45 = vsel %vm676_vm0, %v4619_v41, %v4570_v33  ;;  %v3689_v63 = vpop.permute.xlu0 %3688  ;;  %v4347_v23 = vrot.slane %v3701_v36, 4  ;;  %v4350_v50 = vsel %vm676_vm0, %v3701_v36, %v4349_v35  ;;  %v4114_v33 = vsel %vm676_vm0, %v8741_v18, %v4113_v30 }
 0x813   : > { %v4335_v22 = vrot.slane %v3689_v63, 4  ;;  %v4338_v26 = vsel %vm676_vm0, %v3689_v63, %v4337_v1  ;;  %v4358_v16 = vperm.slane %v4350_v50, %v10384_v11  ;;  %v4122_v18 = vperm.slane %v4114_v33, %v10384_v11 }
 0x814   : > { %v4346_v29 = vperm.slane %v4338_v26, %v10384_v11  ;;  %v4348_v24 = vsel %vm676_vm0, %v4347_v23, %v8732_v13  ;;  %v3611_v54 = vadd.f32 %v8765_v53, %v3592_v43  ;;  %v3629_v41 = vpop.f32.mrf.mxu0  ;;  %v3540_v50 = vadd.f32 %v8736_v2, %v10383_v56 }
 0x815   : > { %v4336_v49 = vsel %vm676_vm0, %v4335_v22, %v8667_v59  ;;  %v4354_v3 = vperm.slane %v4348_v24, %v10384_v11  ;;  %v4395_v14 = vrot.slane %v4358_v16, 4  ;;  %v3595_v59 = vadd.f32 %v8789_v9, %v3576_v15 }
 0x816   : > { %v4342_v25 = vperm.slane %v4336_v49, %v10384_v11  ;;  %v4397_v39 = vrot.slane %v4346_v29, 4  ;;  %v4173_v63 = vrot.slane %v4122_v18, 4  ;;  %v3630_v22 = vadd.f32 %v3629_v41, %v3611_v54 }
 0x817   : > { %v4383_v13 = vrot.slane %v4354_v3, 4  ;;  %v8869_v12 = vsel %vm676_vm0, %v4395_v14, %v4346_v29  ;;  %3835 = vrot.lane.b32.xlu2 %v8715_v58, %s5748_s24  ;;  %3839 = vrot.lane.b32.xlu1 %v8713_v19, %s5748_s24  ;;  %v3614_v0 = vadd.f32 %v8804_v21, %v3595_v59  ;;  %v4161_v15 = vrot.slane %v4118_v40, 4  ;;  %v3651_v29 = vpop.f32.mrf.mxu3 }
 0x818   : > { %v4385_v4 = vrot.slane %v4342_v25, 4  ;;  %v8878_v37 = vsel %vm676_vm0, %v4358_v16, %v4397_v39  ;;  %3827 = vrot.lane.b32.xlu0 %v8713_v19, %s5747_s11  ;;  %v3648_v16 = vpop.f32.mrf.mxu1  ;;  %v3559_v8 = vadd.f32 %v8778_v6, %v3540_v50 }
 0x819   : > { %v8885_v20 = vpop.permute.xlu2 %3732  ;;  %v8887_v35 = vpop.permute.xlu1 %3710  ;;  %v8890_v9 = vsel %vm676_vm0, %v4383_v13, %v4342_v25  ;;  %v3633_v49 = vadd.f32 %v3632_v62, %v3614_v0 }
 0x81a   : > { %v3699_v30 = vpop.permute.xlu0 %3698  ;;  %v8894_v1 = vsel %vm676_vm0, %v4354_v3, %v4385_v4  ;;  %v3649_v3 = vadd.f32 %v3648_v16, %v3630_v22  ;;  %v3578_v61 = vadd.f32 %v8791_v17, %v3559_v8  ;;  %v10385_v22 = vld [vmem:[#allocation6_spill] sm:$0xff] }
 0x81b   : > { %v4123_v36 = vrot.slane %v3699_v30, 4  ;;  %v4126_v53 = vsel %vm676_vm0, %v3699_v30, %v4125_v28  ;;  %v8920_v14 = vadd.f32 %v3651_v29, %v3633_v49  ;;  %v3634_v30 = vpop.f32.mrf.mxu2  ;;  %v8968_v16 = vperm.slane %v8776_v46, %v10385_v22 }
 0x81c   : > { %v4134_v23 = vperm.slane %v4126_v53, %v10384_v11  ;;  %v3661_v13 = vmax.f32 %v3649_v3, 0.0  ;;  %v8976_v29 = vperm.slane %v8800_v44, %v10385_v22 }
 0x81d   : > { %v4124_v26 = vsel %vm676_vm0, %v4123_v36, %v8754_v31  ;;  %v3664_v59 = vmax.f32 %v8920_v14, 0.0 }
 0x81e   : > { %v4130_v21 = vperm.slane %v4124_v26, %v10384_v11  ;;  %v4171_v24 = vrot.slane %v4134_v23, 4  ;;  %v8905_v33 = vsel %vm676_vm0, %v4134_v23, %v4173_v63  ;;  %v8964_v26 = vperm.slane %v8787_v55, %v10385_v22 }
 0x81f   : > { %3849 = vrot.lane.b32.xlu2 %v8701_v60, %s5749_s12  ;;  %3853 = vrot.lane.b32.xlu1 %v8715_v58, %s5749_s12  ;;  %v3647_v58 = vadd.f32 %v8845_v51, %v3628_v27  ;;  %v3597_v51 = vadd.f32 %v8851_v5, %v3578_v61  ;;  %v3653_v36 = vpop.f32.mrf.mxu3  ;;  %v4361_v5 = vrot.slane %v8797_v57, 4  ;;  %v3911_v55 = vrot.slane %v8885_v20, 4 }
 0x820   : > { %v4159_v56 = vrot.slane %v4130_v21, 4  ;;  %v8912_v2 = vsel %vm676_vm0, %v4171_v24, %v4122_v18  ;;  %3837 = vrot.lane.b32.xlu0 %v8711_v48, %s5748_s24  ;;  %v8917_v31 = vsel %vm676_vm0, %v4130_v21, %v4161_v15  ;;  %v3985_v46 = vrot.slane %v8964_v26, 4 }
 0x821   : > { %v3739_v7 = vpop.permute.xlu2 %3738  ;;  %v8922_v60 = vpop.permute.xlu1 %3720  ;;  %v3658_v18 = vmax.f32 %v3647_v58, 0.0  ;;  %v3616_v28 = vadd.f32 %v8853_v38, %v3597_v51  ;;  %v4137_v21 = vrot.slane %v8887_v35, 4  ;;  %v3989_v49 = vrot.slane %v8976_v29, 4 }
 0x822   : > { %v3709_v25 = vpop.permute.xlu0 %3708  ;;  %v8926_v39 = vsel %vm676_vm0, %v4159_v56, %v4118_v40  ;;  %v4583_v4 = vrot.slane %v3739_v7, 4  ;;  %v8991_v56 = vperm.slane %v8830_v34, %v10385_v22  ;;  %v9004_v58 = vperm.slane %v8878_v37, %v10385_v22 }
 0x823   : > { %v3913_v43 = vrot.slane %v3709_v25, 4  ;;  %v3635_v53 = vadd.f32 %v3634_v30, %v3616_v28  ;;  %v3912_v8 = vsel %vm676_vm0, %v3911_v55, %v3709_v25  ;;  %v9012_v34 = vperm.slane %v8905_v33, %v10385_v22 }
 0x824   : > { %v9017_v61 = vperm.slane %v8894_v1, %v10385_v22  ;;  %v9022_v37 = vperm.slane %v8917_v31, %v10385_v22  ;;  %v9030_v33 = vperm.slane %v8912_v2, %v10385_v22  ;;  %v9044_v2 = vperm.slane %v8842_v45, %v10385_v22 }
 0x825   : > { %v3914_v6 = vsel %vm676_vm0, %v8885_v20, %v3913_v43  ;;  %v3654_v38 = vadd.f32 %v3653_v36, %v3635_v53  ;;  %v8995_v20 = vperm.slane %v8825_v52, %v10385_v22  ;;  %v9008_v43 = vperm.slane %v8869_v12, %v10385_v22 }
 0x826   : > { %v9026_v12 = vperm.slane %v8926_v39, %v10385_v22  ;;  %v3922_v1 = vperm.slane %v3914_v6, %v10384_v11  ;;  %v4221_v6 = vrot.slane %v9012_v34, 4  ;;  %v4437_v28 = vrot.slane %v9017_v61, 4 }
 0x827   : > { %3855 = vrot.lane.b32.xlu2 %v3661_v13, %s5749_s12  ;;  %3859 = vrot.lane.b32.xlu1 %v3664_v59, %s5749_s12  ;;  %v3667_v15 = vmax.f32 %v3654_v38, 0.0  ;;  %v4217_v30 = vrot.slane %v9030_v33, 4  ;;  %v4213_v45 = vrot.slane %v9022_v37, 4 }
 0x828   : > { %3851 = vrot.lane.b32.xlu0 %v3658_v18, %s5749_s12  ;;  %v3973_v53 = vrot.slane %v3922_v1, 4 }
 0x829   : > { %v8938_v32 = vpop.permute.xlu2 %3752  ;;  %v8940_v17 = vpop.permute.xlu1 %3726 }
 0x82a   : > { %v3715_v54 = vpop.permute.xlu0 %3714 }
 0x82b   : > { %v8944_v41 = vsel %vm676_vm0, %v4583_v4, %v3715_v54  ;;  %v4585_v40 = vrot.slane %v3715_v54, 4  ;;  %v3925_v54 = vrot.slane %v8922_v60, 4 }
 0x82c   : > { %v9063_v14 = vperm.slane %v8944_v41, %v10384_v11 }
 0x82d   : > { %v8947_v0 = vsel %vm676_vm0, %v3739_v7, %v4585_v40  ;;  %v9000_v7 = vperm.slane %v8890_v9, %v10385_v22  ;;  %v4149_v9 = vrot.slane %v8834_v10, 4  ;;  %v4209_v40 = vrot.slane %v9026_v12, 4 }
 0x82f   : > { %3861 = vrot.lane.b32.xlu2 %v8713_v19, %s5749_s12  ;;  %3874 = vrot.lane.b32.xlu1 %v3658_v18, %s5750_s15 }
 0x830   : > { %3857 = vrot.lane.b32.xlu0 %v8711_v48, %s5749_s12  ;;  %v8972_v48 = vperm.slane %v8781_v42, %v10385_v22  ;;  %v3993_v42 = vrot.slane %v8968_v16, 4 }
 0x831   : > { %v8955_v62 = vpop.permute.xlu2 %3758  ;;  %v3737_v63 = vpop.permute.xlu1 %3736 }
 0x832   : > { %v8957_v23 = vpop.permute.xlu0 %3724  ;;  %v4359_v50 = vrot.slane %v3737_v63, 4  ;;  %v4362_v27 = vsel %vm676_vm0, %v3737_v63, %v4361_v5 }
 0x833   : > { %v4373_v5 = vrot.slane %v8957_v23, 4 }
 0x834   : > { %v4360_v19 = vsel %vm676_vm0, %v4359_v50, %v8797_v57  ;;  %v3997_v57 = vrot.slane %v8972_v48, 4 }
 0x835   : > { %v4366_v38 = vperm.slane %v4360_v19, %v10384_v11 }
 0x837   : > { %3876 = vrot.lane.b32.xlu2 %v3661_v13, %s5750_s15  ;;  %3880 = vrot.lane.b32.xlu1 %v3667_v15, %s5750_s15  ;;  %v9033_v13 = vperm.slane %v3912_v8, %v10384_v11  ;;  %v4409_v4 = vrot.slane %v4366_v38, 4 }
 0x838   : > { %3863 = vrot.lane.b32.xlu0 %v3667_v15, %s5749_s12 }
 0x839   : > { %v8986_v24 = vpop.permute.xlu2 %3773  ;;  %v3751_v44 = vpop.permute.xlu1 %3750  ;;  %v3961_v36 = vrot.slane %v9033_v13, 4 }
 0x83a   : > { %v3735_v3 = vpop.permute.xlu0 %3734 }
 0x83b   : > { %v4135_v52 = vrot.slane %v3735_v3, 4  ;;  %v4138_v25 = vsel %vm676_vm0, %v3735_v3, %v4137_v21 }
 0x83c   : > { %v9073_v21 = vperm.slane %v4138_v25, %v10384_v11 }
 0x83d   : > { %v4136_v18 = vsel %vm676_vm0, %v4135_v52, %v8887_v35  ;;  %v4370_v35 = vperm.slane %v4362_v27, %v10384_v11  ;;  %v4597_v27 = vrot.slane %v8940_v17, 4 }
 0x83e   : > { %v9080_v39 = vperm.slane %v4136_v18, %v10384_v11 }
 0x83f   : > { %v4421_v41 = vrot.slane %v4370_v35, 4 }
 0x840   : > { %3878 = vrot.lane.b32.xlu0 %v3664_v59, %s5750_s15  ;;  %v9067_v59 = vperm.slane %v8947_v0, %v10384_v11 }
 0x841   : > { %v9059_v63 = vpop.permute.xlu2 %3779  ;;  %v3757_v50 = vpop.permute.xlu1 %3756 }
 0x842   : > { %v3749_v15 = vpop.permute.xlu0 %3748  ;;  %v3767_v55 = vsel %vm3764_vm13, %v3757_v50, %v8955_v62 }
 0x843   : > { %v3765_v19 = vsel %vm3764_vm13, %v3749_v15, %v3751_v44  ;;  %v4371_v8 = vrot.slane %v3767_v55, 4  ;;  %v4374_v3 = vsel %vm676_vm0, %v3767_v55, %v4373_v5 }
 0x844   : > { %v3923_v52 = vrot.slane %v3765_v19, 4  ;;  %v3926_v51 = vsel %vm676_vm0, %v3765_v19, %v3925_v54  ;;  %v4382_v0 = vperm.slane %v4374_v3, %v10384_v11  ;;  %v4197_v54 = vrot.slane %v9073_v21, 4 }
 0x845   : > { %v3934_v62 = vperm.slane %v3926_v51, %v10384_v11  ;;  %v4372_v25 = vsel %vm676_vm0, %v4371_v8, %v8957_v23 }
 0x846   : > { %v3924_v44 = vsel %vm676_vm0, %v3923_v52, %v8922_v60  ;;  %v4378_v5 = vperm.slane %v4372_v25, %v10384_v11  ;;  %v4419_v50 = vrot.slane %v4382_v0, 4  ;;  %v4422_v15 = vsel %vm676_vm0, %v4382_v0, %v4421_v41 }
 0x847   : > { %v3930_v55 = vperm.slane %v3924_v44, %v10384_v11  ;;  %v3971_v19 = vrot.slane %v3934_v62, 4  ;;  %v3974_v18 = vsel %vm676_vm0, %v3934_v62, %v3973_v53  ;;  %v4185_v60 = vrot.slane %v9080_v39, 4 }
 0x848   : > { %v4407_v3 = vrot.slane %v4378_v5, 4  ;;  %v3982_v51 = vperm.slane %v3974_v18, %v10385_v22  ;;  %v4410_v23 = vsel %vm676_vm0, %v4378_v5, %v4409_v4  ;;  %v9095_v8 = vsel %vm676_vm0, %v4419_v50, %v4370_v35 }
 0x849   : > { %v3959_v52 = vrot.slane %v3930_v55, 4  ;;  %v9098_v25 = vpop.permute.xlu2 %3789  ;;  %v3763_v41 = vpop.permute.xlu1 %3762  ;;  %v3972_v0 = vsel %vm676_vm0, %v3971_v19, %v3922_v1  ;;  %v3962_v44 = vsel %vm676_vm0, %v3930_v55, %v3961_v36  ;;  %v9110_v35 = vperm.slane %v4410_v23, %v10385_v22 }
 0x84a   : > { %v3755_v31 = vpop.permute.xlu0 %3754  ;;  %v3978_v53 = vperm.slane %v3972_v0, %v10385_v22  ;;  %v3970_v62 = vperm.slane %v3962_v44, %v10385_v22  ;;  %v9107_v4 = vsel %vm676_vm0, %v3982_v51, %v3997_v57  ;;  %v3995_v36 = vrot.slane %v3982_v51, 4 }
 0x84b   : > { %v3766_v5 = vsel %vm3764_vm13, %v8938_v32, %v3755_v31  ;;  %v3960_v1 = vsel %vm676_vm0, %v3959_v52, %v9033_v13  ;;  %v4408_v50 = vsel %vm676_vm0, %v4407_v3, %v4366_v38 }
 0x84c   : > { %v4147_v55 = vrot.slane %v3766_v5, 4  ;;  %v4150_v19 = vsel %vm676_vm0, %v3766_v5, %v4149_v9  ;;  %v3966_v57 = vperm.slane %v3960_v1, %v10385_v22  ;;  %v3991_v18 = vrot.slane %v3978_v53, 4 }
 0x84d   : > { %v4158_v23 = vperm.slane %v4150_v19, %v10384_v11  ;;  %v9125_v32 = vsel %vm676_vm0, %v3970_v62, %v3989_v49  ;;  %v3987_v31 = vrot.slane %v3970_v62, 4  ;;  %v9129_v13 = vsel %vm676_vm0, %v3995_v36, %v8972_v48 }
 0x84e   : > { %v4148_v38 = vsel %vm676_vm0, %v4147_v55, %v8834_v10  ;;  %v3986_v9 = vsel %vm676_vm0, %v3966_v57, %v3985_v46  ;;  %v3983_v3 = vrot.slane %v3966_v57, 4  ;;  %v9138_v51 = vsel %vm676_vm0, %v3991_v18, %v8968_v16 }
 0x84f   : > { %v4154_v49 = vperm.slane %v4148_v38, %v10384_v11  ;;  %v4195_v52 = vrot.slane %v4158_v23, 4  ;;  %4851 = vrot.lane.b32.xlu1 %v3986_v9, %s5734_s22  ;;  %v9144_v48 = vsel %vm676_vm0, %v3987_v31, %v8976_v29  ;;  %v9149_v10 = vsel %vm676_vm0, %v3978_v53, %v3993_v42 }
 0x850   : > { %v3984_v46 = vsel %vm676_vm0, %v3983_v3, %v8964_v26  ;;  %v4414_v0 = vperm.slane %v4408_v50, %v10385_v22  ;;  %v4198_v44 = vsel %vm676_vm0, %v4158_v23, %v4197_v54  ;;  %v9159_v62 = vsel %vm676_vm0, %v9110_v35, %v4437_v28 }
 0x851   : > { %10386 = vst [vmem:[#allocation75_spill] sm:$0xff] %v9159_v62  ;;  %v4183_v29 = vrot.slane %v4154_v49, 4  ;;  %4847 = vrot.lane.b32.xlu2 %v3984_v46, %s5734_s22  ;;  %v3800_v16 = vpop.permute.xlu2 %3799  ;;  %v9162_v5 = vpop.permute.xlu1 %3777  ;;  %v4186_v42 = vsel %vm676_vm0, %v4154_v49, %v4185_v60  ;;  %v4196_v26 = vsel %vm676_vm0, %v4195_v52, %v9073_v21  ;;  %v4206_v53 = vperm.slane %v4198_v44, %v10385_v22 }
 0x852   : > { %v3761_v54 = vpop.permute.xlu0 %3760  ;;  %v4223_v1 = vrot.slane %v3800_v16, 4  ;;  %v4194_v36 = vperm.slane %v4186_v42, %v10385_v22  ;;  %v4202_v28 = vperm.slane %v4196_v26, %v10385_v22  ;;  %v4430_v50 = vperm.slane %v4422_v15, %v10385_v22 }
 0x853   : > { %v3768_v55 = vsel %vm3764_vm13, %v3761_v54, %v3763_v41  ;;  %v4184_v19 = vsel %vm676_vm0, %v4183_v29, %v9080_v39  ;;  %v4431_v57 = vrot.slane %v4414_v0, 4  ;;  %v9177_v21 = vsel %vm676_vm0, %v4206_v53, %v4221_v6 }
 0x854   : > { %10387 = vst [vmem:[#allocation83_spill] sm:$0xff] %v9177_v21  ;;  %v4595_v60 = vrot.slane %v3768_v55, 4  ;;  %v4598_v18 = vsel %vm676_vm0, %v3768_v55, %v4597_v27  ;;  %v4211_v23 = vrot.slane %v4194_v36, 4  ;;  %v4190_v31 = vperm.slane %v4184_v19, %v10385_v22 }
 0x855   : > { %v4606_v15 = vperm.slane %v4598_v18, %v10384_v11  ;;  %v9187_v39 = vsel %vm676_vm0, %v4202_v28, %v4217_v30  ;;  %v4215_v41 = vrot.slane %v4202_v28, 4  ;;  %v9192_v6 = vsel %vm676_vm0, %v4194_v36, %v4213_v45 }
 0x856   : > { %v4596_v38 = vsel %vm676_vm0, %v4595_v60, %v8940_v17  ;;  %v9198_v27 = vsel %vm676_vm0, %v4211_v23, %v9022_v37  ;;  %v9203_v9 = vsel %vm676_vm0, %v4190_v31, %v4209_v40  ;;  %v4207_v30 = vrot.slane %v4190_v31, 4 }
 0x857   : > { %v4602_v3 = vperm.slane %v4596_v38, %v10384_v11  ;;  %v4643_v49 = vrot.slane %v4606_v15, 4  ;;  %v9208_v45 = vsel %vm676_vm0, %v4215_v41, %v9030_v33  ;;  %v9212_v17 = vsel %vm676_vm0, %v4431_v57, %v9000_v7 }
 0x858   : > { %v9216_v37 = vsel %vm676_vm0, %v4207_v30, %v9026_v12  ;;  %v4219_v52 = vrot.slane %v4206_v53, 4  ;;  %v4435_v40 = vrot.slane %v9110_v35, 4  ;;  %v10388_v46 = vrot.slane %v9000_v7, 4 }
 0x859   : > { %v4631_v29 = vrot.slane %v4602_v3, 4  ;;  %v9224_v42 = vpop.permute.xlu2 %3809  ;;  %v9226_v33 = vpop.permute.xlu1 %3787  ;;  %v4443_v26 = vrot.slane %v4430_v50, 4  ;;  %v4426_v54 = vperm.slane %v9095_v8, %v10385_v22  ;;  %v10390_v12 = vrot.slane %v9004_v58, 4 }
 0x85a   : > { %v9222_v44 = vsel %vm676_vm0, %v4414_v0, %v10388_v46  ;;  %v4633_v35 = vrot.slane %v9063_v14, 4  ;;  %v3776_v7 = vpop.permute.xlu0 %3775  ;;  %v9238_v0 = vsel %vm676_vm0, %v4219_v52, %v9012_v34  ;;  %v9242_v36 = vsel %vm676_vm0, %v4435_v40, %v9017_v61 }
 0x85b   : > { %10389 = vst [vmem:[#allocation85_spill] sm:$0xff] %v9222_v44  ;;  %v9233_v53 = vsel %vm676_vm0, %v4430_v50, %v10390_v12  ;;  %v4618_v28 = vperm.slane %v8838_v47, %v10385_v22  ;;  %v9247_v8 = vsel %vm676_vm0, %v4223_v1, %v3776_v7  ;;  %v4225_v55 = vrot.slane %v3776_v7, 4 }
 0x85c   : > { %10391 = vst [vmem:[#allocation91_spill] sm:$0xff] %v9233_v53  ;;  %v9251_v50 = vsel %vm676_vm0, %v4443_v26, %v9004_v58  ;;  %v10395_v19 = vrot.slane %v9008_v43, 4  ;;  %v4645_v57 = vrot.slane %v9067_v59, 4  ;;  %v4439_v61 = vrot.slane %v4426_v54, 4 }
 0x85d   : > { %10392 = vst [vmem:[#allocation94_spill] sm:$0xff] %v9238_v0  ;;  %v4632_v60 = vsel %vm676_vm0, %v4631_v29, %v9063_v14  ;;  %v4644_v47 = vsel %vm676_vm0, %v4643_v49, %v9067_v59  ;;  %v9264_v1 = vsel %vm676_vm0, %v3800_v16, %v4225_v55  ;;  %v4634_v23 = vsel %vm676_vm0, %v4602_v3, %v4633_v35 }
 0x85e   : > { %10393 = vst [vmem:[#allocation98_spill] sm:$0xff] %v9242_v36  ;;  %v9256_v34 = vsel %vm676_vm0, %v4426_v54, %v10395_v19  ;;  %v4638_v58 = vperm.slane %v4632_v60, %v10385_v22  ;;  %v4650_v18 = vperm.slane %v4644_v47, %v10385_v22  ;;  %v9271_v31 = vsel %vm676_vm0, %v4439_v61, %v9008_v43 }
 0x85f   : > { %10394 = vst [vmem:[#allocation22_spill] sm:$0xff] %v9251_v50  ;;  %v4642_v41 = vperm.slane %v4634_v23, %v10385_v22  ;;  %v4661_v38 = vrot.slane %v4618_v28, 4  ;;  %v4665_v14 = vrot.slane %v9044_v2, 4  ;;  %v10398_v59 = vrot.slane %v8991_v56, 4 }
 0x860   : > { %10396 = vst [vmem:[#allocation29_spill] sm:$0xff] %v9256_v34  ;;  %v4655_v30 = vrot.slane %v4638_v58, 4  ;;  %v4663_v49 = vrot.slane %v4650_v18, 4  ;;  %v4646_v52 = vsel %vm676_vm0, %v4606_v15, %v4645_v57  ;;  %v4001_v3 = vrot.slane %v8986_v24, 4 }
 0x861   : > { %10397 = vst [vmem:[#allocation26_spill] sm:$0xff] %v9271_v31  ;;  %v9278_v16 = vsel %vm676_vm0, %v4638_v58, %v10398_v59  ;;  %v9283_v40 = vsel %vm676_vm0, %v4642_v41, %v4661_v38  ;;  %v4659_v43 = vrot.slane %v4642_v41, 4  ;;  %v4654_v46 = vperm.slane %v4646_v52, %v10385_v22  ;;  %v3816_v29 = vpop.permute.xlu2 %3815  ;;  %v3798_v26 = vpop.permute.xlu1 %3797 }
 0x862   : > { %10399 = vst [vmem:[#allocation43_spill] sm:$0xff] %v9278_v16  ;;  %v9288_v54 = vsel %vm676_vm0, %v4655_v30, %v8991_v56  ;;  %v9292_v12 = vsel %vm676_vm0, %v4663_v49, %v9044_v2  ;;  %v4669_v15 = vrot.slane %v8995_v20, 4  ;;  %v9296_v35 = vsel %vm676_vm0, %v4650_v18, %v4665_v14  ;;  %v9298_v7 = vpop.permute.xlu0 %3785 }
 0x863   : > { %10400 = vst [vmem:[#allocation37_spill] sm:$0xff] %v9283_v40  ;;  %v3999_v55 = vrot.slane %v3798_v26, 4  ;;  %v4002_v19 = vsel %vm676_vm0, %v3798_v26, %v4001_v3  ;;  %v9302_v57 = vsel %vm676_vm0, %v4659_v43, %v4618_v28  ;;  %v4013_v56 = vrot.slane %v9298_v7, 4 }
 0x864   : > { %10401 = vst [vmem:[#allocation44_spill] sm:$0xff] %v9288_v54  ;;  %v4010_v61 = vperm.slane %v4002_v19, %v10384_v11  ;;  %v9307_v2 = vsel %vm676_vm0, %v4654_v46, %v4669_v15  ;;  %v4667_v47 = vrot.slane %v4654_v46, 4  ;;  %v4673_v41 = vrot.slane %v9059_v63, 4 }
 0x865   : > { %10402 = vst [vmem:[#allocation54_spill] sm:$0xff] %v9292_v12  ;;  %v9311_v60 = vsel %vm676_vm0, %v3999_v55, %v8986_v24  ;;  %v4014_v58 = vsel %vm676_vm0, %v9224_v42, %v4013_v56  ;;  %v4683_v59 = vrot.slane %v3816_v29, 4 }
 0x866   : > { %10403 = vst [vmem:[#allocation62_spill] sm:$0xff] %v9296_v35  ;;  %v4061_v18 = vrot.slane %v4010_v61, 4  ;;  %v4022_v23 = vperm.slane %v4014_v58, %v10384_v11  ;;  %v9318_v28 = vsel %vm676_vm0, %v4667_v47, %v8995_v20 }
 0x867   : > { %10404 = vst [vmem:[#allocation64_spill] sm:$0xff] %v9302_v57 }
 0x868   : > { %10405 = vst [vmem:[#allocation73_spill] sm:$0xff] %v9307_v2  ;;  %v4059_v38 = vrot.slane %v4022_v23, 4  ;;  %v9322_v14 = vsel %vm676_vm0, %v4022_v23, %v4061_v18  ;;  %v4461_v23 = vrot.slane %v9098_v25, 4 }
 0x869   : > { %10406 = vst [vmem:[#allocation77_spill] sm:$0xff] %v9318_v28  ;;  %v9324_v24 = vpop.permute.xlu2 %3825  ;;  %v3804_v30 = vpop.permute.xlu1 %3803 }
 0x86a   : > { %v9327_v49 = vsel %vm676_vm0, %v4059_v38, %v4010_v61  ;;  %v3792_v52 = vpop.permute.xlu0 %3791  ;;  %v4671_v3 = vrot.slane %v3804_v30, 4  ;;  %v4674_v43 = vsel %vm676_vm0, %v3804_v30, %v4673_v41 }
 0x86b   : > { %v4684_v20 = vsel %vm676_vm0, %v4683_v59, %v3792_v52  ;;  %v4685_v46 = vrot.slane %v3792_v52, 4  ;;  %v4682_v26 = vperm.slane %v4674_v43, %v10384_v11 }
 0x86c   : > { %v4690_v15 = vperm.slane %v4684_v20, %v10384_v11  ;;  %v4672_v55 = vsel %vm676_vm0, %v4671_v3, %v9059_v63  ;;  %v4449_v63 = vrot.slane %v9162_v5, 4 }
 0x86d   : > { %v4686_v19 = vsel %vm676_vm0, %v3816_v29, %v4685_v46  ;;  %v4678_v56 = vperm.slane %v4672_v55, %v10384_v11  ;;  %v4733_v61 = vrot.slane %v4682_v26, 4 }
 0x86e   : > { %v4694_v47 = vperm.slane %v4686_v19, %v10384_v11  ;;  %v4719_v58 = vrot.slane %v4690_v15, 4 }
 0x86f   : > { %v4721_v18 = vrot.slane %v4678_v56, 4 }
 0x870   : > { %v4731_v41 = vrot.slane %v4694_v47, 4  ;;  %v9340_v38 = vsel %vm676_vm0, %v4694_v47, %v4733_v61  ;;  %v9343_v59 = vsel %vm676_vm0, %v4719_v58, %v4678_v56 }
 0x871   : > { %v9346_v30 = vpop.permute.xlu2 %3835  ;;  %v3814_v29 = vpop.permute.xlu1 %3813  ;;  %v9349_v52 = vsel %vm676_vm0, %v4690_v15, %v4721_v18 }
 0x872   : > { %v9352_v3 = vsel %vm676_vm0, %v4731_v41, %v4682_v26  ;;  %v3802_v43 = vpop.permute.xlu0 %3801  ;;  %v4459_v20 = vrot.slane %v3814_v29, 4  ;;  %v4462_v46 = vsel %vm676_vm0, %v3814_v29, %v4461_v23 }
 0x873   : > { %v4447_v55 = vrot.slane %v3802_v43, 4  ;;  %v4450_v19 = vsel %vm676_vm0, %v3802_v43, %v4449_v63  ;;  %v4470_v56 = vperm.slane %v4462_v46, %v10384_v11  ;;  %v4234_v63 = vperm.slane %v9264_v1, %v10384_v11 }
 0x874   : > { %v4458_v61 = vperm.slane %v4450_v19, %v10384_v11  ;;  %v4460_v47 = vsel %vm676_vm0, %v4459_v20, %v9098_v25  ;;  %v4237_v25 = vrot.slane %v9226_v33, 4  ;;  %v4230_v19 = vperm.slane %v9247_v8, %v10384_v11 }
 0x875   : > { %v4448_v15 = vsel %vm676_vm0, %v4447_v55, %v9162_v5  ;;  %v4466_v26 = vperm.slane %v4460_v47, %v10384_v11  ;;  %v4507_v58 = vrot.slane %v4470_v56, 4 }
 0x876   : > { %v4454_v18 = vperm.slane %v4448_v15, %v10384_v11  ;;  %v4509_v41 = vrot.slane %v4458_v61, 4  ;;  %v4273_v35 = vrot.slane %v4230_v19, 4 }
 0x877   : > { %v4495_v23 = vrot.slane %v4466_v26, 4  ;;  %v9365_v29 = vsel %vm676_vm0, %v4507_v58, %v4458_v61 }
 0x878   : > { %v4497_v43 = vrot.slane %v4454_v18, 4  ;;  %v9370_v46 = vsel %vm676_vm0, %v4470_v56, %v4509_v41  ;;  %v4285_v56 = vrot.slane %v4234_v63, 4 }
 0x879   : > { %v9373_v5 = vpop.permute.xlu2 %3849  ;;  %v3824_v20 = vpop.permute.xlu1 %3823  ;;  %v9376_v55 = vsel %vm676_vm0, %v4495_v23, %v4454_v18 }
 0x87a   : > { %v3812_v61 = vpop.permute.xlu0 %3811  ;;  %v9381_v47 = vsel %vm676_vm0, %v4466_v26, %v4497_v43 }
 0x87b   : > { %v4235_v1 = vrot.slane %v3812_v61, 4  ;;  %v4238_v15 = vsel %vm676_vm0, %v3812_v61, %v4237_v25 }
 0x87c   : > { %v4246_v58 = vperm.slane %v4238_v15, %v10384_v11 }
 0x87d   : > { %v4236_v41 = vsel %vm676_vm0, %v4235_v1, %v9226_v33  ;;  %v4011_v33 = vrot.slane %v9224_v42, 4 }
 0x87e   : > { %v4242_v18 = vperm.slane %v4236_v41, %v10384_v11  ;;  %v4283_v23 = vrot.slane %v4246_v58, 4  ;;  %v4286_v28 = vsel %vm676_vm0, %v4246_v58, %v4285_v56  ;;  %v4261_v56 = vrot.slane %v9346_v30, 4 }
 0x87f   : > { %v4006_v58 = vperm.slane %v9311_v60, %v10384_v11  ;;  %v4294_v54 = vperm.slane %v4286_v28, %v10385_v22 }
 0x880   : > { %v4271_v8 = vrot.slane %v4242_v18, 4  ;;  %v4284_v2 = vsel %vm676_vm0, %v4283_v23, %v4234_v63  ;;  %v4274_v26 = vsel %vm676_vm0, %v4242_v18, %v4273_v35  ;;  %v4012_v63 = vsel %vm676_vm0, %v4011_v33, %v9298_v7 }
 0x881   : > { %v3856_v43 = vpop.permute.xlu2 %3855  ;;  %v9391_v57 = vpop.permute.xlu1 %3833  ;;  %v4018_v35 = vperm.slane %v4012_v63, %v10384_v11  ;;  %v4282_v31 = vperm.slane %v4274_v26, %v10385_v22  ;;  %v4290_v34 = vperm.slane %v4284_v2, %v10385_v22 }
 0x882   : > { %v9393_v25 = vpop.permute.xlu0 %3821  ;;  %v4272_v61 = vsel %vm676_vm0, %v4271_v8, %v4230_v19  ;;  %v4249_v19 = vrot.slane %v3824_v20, 4 }
 0x883   : > { %v4047_v23 = vrot.slane %v4018_v35, 4  ;;  %v4329_v50 = vrot.slane %v4290_v34, 4 }
 0x889   : > { %v9397_v1 = vpop.permute.xlu2 %3861  ;;  %v9399_v15 = vpop.permute.xlu1 %3839 }
 0x88a   : > { %v9401_v41 = vpop.permute.xlu0 %3827 }
 0x891   : > { %v3877_v18 = vpop.permute.xlu2 %3876  ;;  %v3854_v42 = vpop.permute.xlu1 %3853 }
 0x892   : > { %v9409_v8 = vpop.permute.xlu0 %3837  ;;  %v4259_v40 = vrot.slane %v3877_v18, 4  ;;  %v4262_v12 = vsel %vm676_vm0, %v3877_v18, %v4261_v56  ;;  %v3867_v53 = vsel %vm3865_vm14, %v3854_v42, %v3856_v43  ;;  %v4049_v42 = vrot.slane %v4006_v58, 4 }
 0x893   : > { %v4270_v7 = vperm.slane %v4262_v12, %v10384_v11  ;;  %v4247_v33 = vrot.slane %v3867_v53, 4  ;;  %v4250_v63 = vsel %vm676_vm0, %v3867_v53, %v4249_v19  ;;  %v4278_v12 = vperm.slane %v4272_v61, %v10385_v22 }
 0x894   : > { %v4260_v60 = vsel %vm676_vm0, %v4259_v40, %v9346_v30  ;;  %v4258_v16 = vperm.slane %v4250_v63, %v10384_v11  ;;  %v4048_v40 = vsel %vm676_vm0, %v4047_v23, %v4006_v58  ;;  %v4333_v63 = vrot.slane %v4294_v54, 4 }
 0x895   : > { %v4266_v56 = vperm.slane %v4260_v60, %v10384_v11  ;;  %v4307_v18 = vrot.slane %v4270_v7, 4  ;;  %v4248_v43 = vsel %vm676_vm0, %v4247_v33, %v3824_v20  ;;  %v4325_v61 = vrot.slane %v4282_v31, 4 }
 0x896   : > { %v4254_v53 = vperm.slane %v4248_v43, %v10384_v11  ;;  %v4309_v28 = vrot.slane %v4258_v16, 4  ;;  %v4321_v33 = vrot.slane %v4278_v12, 4 }
 0x897   : > { %v4295_v19 = vrot.slane %v4266_v56, 4  ;;  %v4308_v30 = vsel %vm676_vm0, %v4307_v18, %v4258_v16 }
 0x898   : > { %v4297_v26 = vrot.slane %v4254_v53, 4  ;;  %v4310_v2 = vsel %vm676_vm0, %v4270_v7, %v4309_v28  ;;  %v4314_v60 = vperm.slane %v4308_v30, %v10385_v22 }
 0x899   : > { %v3860_v44 = vpop.permute.xlu1 %3859  ;;  %v4296_v20 = vsel %vm676_vm0, %v4295_v19, %v4254_v53  ;;  %v4318_v43 = vperm.slane %v4310_v2, %v10385_v22 }
 0x89a   : > { %v3852_v36 = vpop.permute.xlu0 %3851  ;;  %v4302_v62 = vperm.slane %v4296_v20, %v10385_v22  ;;  %v4298_v16 = vsel %vm676_vm0, %v4266_v56, %v4297_v26  ;;  %v9434_v58 = vsel %vm676_vm0, %v4314_v60, %v4329_v50  ;;  %v4327_v23 = vrot.slane %v4314_v60, 4 }
 0x89b   : > { %v3866_v7 = vsel %vm3865_vm14, %v9373_v5, %v3852_v36  ;;  %v4306_v18 = vperm.slane %v4298_v16, %v10385_v22  ;;  %v4331_v53 = vrot.slane %v4318_v43, 4  ;;  %v9440_v28 = vsel %vm676_vm0, %v4318_v43, %v4333_v63 }
 0x89c   : > { %10407 = vst [vmem:[#allocation92_spill] sm:$0xff] %v9440_v28  ;;  %v4023_v19 = vrot.slane %v3866_v7, 4  ;;  %v4319_v30 = vrot.slane %v4302_v62, 4  ;;  %v9443_v2 = vsel %vm676_vm0, %v4302_v62, %v4321_v33  ;;  %v9446_v56 = vperm.slane %v4048_v40, %v10385_v22 }
 0x89d   : > { %v9449_v50 = vsel %vm676_vm0, %v4306_v18, %v4325_v61  ;;  %v4323_v26 = vrot.slane %v4306_v18, 4  ;;  %v9452_v36 = vsel %vm676_vm0, %v4331_v53, %v4294_v54  ;;  %v4050_v63 = vsel %vm676_vm0, %v4018_v35, %v4049_v42 }
 0x89e   : > { %v4024_v5 = vsel %vm676_vm0, %v4023_v19, %v9393_v25  ;;  %v9459_v62 = vsel %vm676_vm0, %v4319_v30, %v4278_v12  ;;  %v9462_v40 = vsel %vm676_vm0, %v4327_v23, %v4290_v34  ;;  %v9466_v60 = vperm.slane %v9327_v49, %v10385_v22 }
 0x89f   : > { %v9469_v54 = vsel %vm676_vm0, %v4323_v26, %v4282_v31  ;;  %v9473_v20 = vperm.slane %v9343_v59, %v10385_v22  ;;  %v4473_v35 = vrot.slane %v9324_v24, 4  ;;  %v4037_v42 = vrot.slane %v9391_v57, 4 }
 0x8a0   : > { %v9479_v12 = vperm.slane %v9352_v3, %v10385_v22  ;;  %v4030_v34 = vperm.slane %v4024_v5, %v10384_v11  ;;  %v9483_v49 = vperm.slane %v4050_v63, %v10385_v22  ;;  %v4097_v31 = vrot.slane %v9446_v56, 4 }
 0x8a1   : > { %v3875_v61 = vpop.permute.xlu1 %3874  ;;  %v9494_v16 = vperm.slane %v9349_v52, %v10385_v22  ;;  %v9498_v3 = vperm.slane %v9340_v38, %v10385_v22  ;;  %v4025_v30 = vrot.slane %v9393_v25, 4  ;;  %v9512_v38 = vperm.slane %v9370_v46, %v10385_v22 }
 0x8a2   : > { %v3858_v33 = vpop.permute.xlu0 %3857  ;;  %v4035_v43 = vrot.slane %v3875_v61, 4  ;;  %v4038_v59 = vsel %vm676_vm0, %v3875_v61, %v4037_v42 }
 0x8a3   : > { %v3868_v23 = vsel %vm3865_vm14, %v3858_v33, %v3860_v44  ;;  %v9502_v18 = vperm.slane %v4038_v59, %v10384_v11  ;;  %v4073_v44 = vrot.slane %v4030_v34, 4  ;;  %v4026_v61 = vsel %vm676_vm0, %v3866_v7, %v4025_v30 }
 0x8a4   : > { %v4471_v26 = vrot.slane %v3868_v23, 4  ;;  %v4474_v52 = vsel %vm676_vm0, %v3868_v23, %v4473_v35  ;;  %v4036_v5 = vsel %vm676_vm0, %v4035_v43, %v9391_v57  ;;  %v9526_v59 = vperm.slane %v9365_v29, %v10385_v22 }
 0x8a5   : > { %v4042_v63 = vperm.slane %v4036_v5, %v10384_v11  ;;  %v4083_v43 = vrot.slane %v9502_v18, 4  ;;  %v4709_v23 = vrot.slane %v9399_v15, 4  ;;  %v9538_v30 = vperm.slane %v9381_v47, %v10385_v22 }
 0x8a6   : > { %v4472_v25 = vsel %vm676_vm0, %v4471_v26, %v9324_v24  ;;  %v9534_v24 = vperm.slane %v9376_v55, %v10385_v22  ;;  %v4697_v26 = vrot.slane %v9401_v41, 4  ;;  %v9542_v5 = vperm.slane %v4026_v61, %v10384_v11 }
 0x8a7   : > { %v4071_v57 = vrot.slane %v4042_v63, 4  ;;  %v4074_v46 = vsel %vm676_vm0, %v4042_v63, %v4073_v44  ;;  %v4482_v35 = vperm.slane %v4474_v52, %v10384_v11 }
 0x8a8   : > { %v9530_v7 = vperm.slane %v4074_v46, %v10385_v22 }
 0x8a9   : > { %v3881_v29 = vpop.permute.xlu1 %3880  ;;  %v4072_v44 = vsel %vm676_vm0, %v4071_v57, %v4030_v34  ;;  %v4084_v34 = vsel %vm676_vm0, %v4083_v43, %v9542_v5 }
 0x8aa   : > { %v3864_v63 = vpop.permute.xlu0 %3863  ;;  %v4707_v46 = vrot.slane %v3881_v29, 4  ;;  %v4710_v47 = vsel %vm676_vm0, %v3881_v29, %v4709_v23  ;;  %v4099_v53 = vrot.slane %v9530_v7, 4  ;;  %v4078_v61 = vperm.slane %v4072_v44, %v10385_v22 }
 0x8ab   : > { %v3869_v33 = vsel %vm3865_vm14, %v9397_v1, %v3864_v63  ;;  %v4718_v19 = vperm.slane %v4710_v47, %v10384_v11  ;;  %v4848_v42 = vpop.permute.xlu2 %4847  ;;  %v4478_v63 = vperm.slane %v4472_v25, %v10384_v11  ;;  %v4485_v47 = vrot.slane %v9409_v8, 4 }
 0x8ac   : > { %v4695_v57 = vrot.slane %v3869_v33, 4  ;;  %v4698_v55 = vsel %vm676_vm0, %v3869_v33, %v4697_v26  ;;  %v4708_v23 = vsel %vm676_vm0, %v4707_v46, %v9399_v15  ;;  %5039 = vst.msk [vmem:[%s9547_s21] sm:$0xff] %vm10408_vm15, %v4848_v42  ;;  %v4100_v52 = vsel %vm676_vm0, %v4099_v53, %v9483_v49 }
 0x8ad   : > { %v4706_v29 = vperm.slane %v4698_v55, %v10384_v11  ;;  %v4714_v1 = vperm.slane %v4708_v23, %v10384_v11  ;;  %v4755_v44 = vrot.slane %v4718_v19, 4  ;;  %4857 = vrot.lane.b32.xlu1 %v4100_v52, %s5734_s22  ;;  %v4098_v43 = vsel %vm676_vm0, %v4078_v61, %v4097_v31 }
 0x8ae   : > { %v4696_v33 = vsel %vm676_vm0, %v4695_v57, %v9401_v41  ;;  %4853 = vrot.lane.b32.xlu2 %v4098_v43, %s5734_s22  ;;  %v4095_v15 = vrot.slane %v4078_v61, 4  ;;  %v4090_v42 = vperm.slane %v4084_v34, %v10385_v22  ;;  %v4549_v46 = vrot.slane %v9538_v30, 4 }
 0x8af   : > { %v4702_v53 = vperm.slane %v4696_v33, %v10384_v11  ;;  %v4757_v26 = vrot.slane %v4706_v29, 4  ;;  %v4743_v55 = vrot.slane %v4714_v1, 4  ;;  %v4533_v23 = vrot.slane %v4482_v35, 4 }
 0x8b0   : > { %v4096_v31 = vsel %vm676_vm0, %v4095_v15, %v9446_v56  ;;  %v4756_v25 = vsel %vm676_vm0, %v4755_v44, %v4706_v29  ;;  %v4521_v52 = vrot.slane %v4478_v63, 4  ;;  %v4103_v33 = vrot.slane %v4090_v42, 4 }
 0x8b1   : > { %v4745_v41 = vrot.slane %v4702_v53, 4  ;;  %v4758_v57 = vsel %vm676_vm0, %v4718_v19, %v4757_v26  ;;  %4849 = vrot.lane.b32.xlu0 %v4096_v31, %s5734_s22  ;;  %v4744_v61 = vsel %vm676_vm0, %v4743_v55, %v4702_v53  ;;  %v4762_v34 = vperm.slane %v4756_v25, %v10385_v22 }
 0x8b2   : > { %v3879_v43 = vpop.permute.xlu0 %3878  ;;  %v4750_v28 = vperm.slane %v4744_v61, %v10385_v22  ;;  %v4766_v0 = vperm.slane %v4758_v57, %v10385_v22  ;;  %v10409_v19 = vrot.slane %v9479_v12, 4  ;;  %v10410_v26 = vrot.slane %v9473_v20, 4 }
 0x8b3   : > { %v4483_v21 = vrot.slane %v3879_v43, 4  ;;  %v4486_v56 = vsel %vm676_vm0, %v3879_v43, %v4485_v47  ;;  %v4746_v29 = vsel %vm676_vm0, %v4714_v1, %v4745_v41  ;;  %v4775_v1 = vrot.slane %v4762_v34, 4 }
 0x8b4   : > { %v9593_v44 = vsel %vm676_vm0, %v4762_v34, %v10409_v19  ;;  %v4494_v15 = vperm.slane %v4486_v56, %v10384_v11  ;;  %v4754_v53 = vperm.slane %v4746_v29, %v10385_v22  ;;  %v9600_v55 = vsel %vm676_vm0, %v4750_v28, %v10410_v26 }
 0x8b5   : > { %v4767_v31 = vrot.slane %v4750_v28, 4  ;;  %v4484_v47 = vsel %vm676_vm0, %v4483_v21, %v9409_v8  ;;  %4863 = vrot.lane.b32.xlu1 %v9138_v51, %s5734_s22  ;;  %v10411_v25 = vrot.slane %v9498_v3, 4  ;;  %v4779_v57 = vrot.slane %v4766_v0, 4 }
 0x8b6   : > { %v4490_v61 = vperm.slane %v4484_v47, %v10384_v11  ;;  %v4531_v43 = vrot.slane %v4494_v15, 4  ;;  %v4534_v56 = vsel %vm676_vm0, %v4494_v15, %v4533_v23  ;;  %4859 = vrot.lane.b32.xlu2 %v9125_v32, %s5734_s22  ;;  %v4771_v28 = vrot.slane %v4754_v53, 4 }
 0x8b7   : > { %v9609_v41 = vsel %vm676_vm0, %v4766_v0, %v10411_v25  ;;  %v4542_v21 = vperm.slane %v4534_v56, %v10385_v22  ;;  %v9618_v51 = vsel %vm676_vm0, %v4767_v31, %v9473_v20  ;;  %v9622_v8 = vsel %vm676_vm0, %v4775_v1, %v9479_v12 }
 0x8b8   : > { %v10412_v0 = vrot.slane %v9494_v16, 4  ;;  %v4519_v23 = vrot.slane %v4490_v61, 4  ;;  %v4532_v34 = vsel %vm676_vm0, %v4531_v43, %v4482_v35  ;;  %v4522_v32 = vsel %vm676_vm0, %v4490_v61, %v4521_v52 }
 0x8b9   : > { %v9633_v29 = vsel %vm676_vm0, %v4771_v28, %v9494_v16  ;;  %4855 = vrot.lane.b32.xlu0 %v9144_v48, %s5734_s22  ;;  %v4538_v20 = vperm.slane %v4532_v34, %v10385_v22  ;;  %v4530_v12 = vperm.slane %v4522_v32, %v10385_v22  ;;  %v10413_v19 = vrot.slane %v9512_v38, 4 }
 0x8ba   : > { %v9627_v11 = vsel %vm676_vm0, %v4754_v53, %v10412_v0  ;;  %v4555_v53 = vrot.slane %v4542_v21, 4  ;;  %v4520_v35 = vsel %vm676_vm0, %v4519_v23, %v4478_v63  ;;  %v4545_v52 = vrot.slane %v9534_v24, 4  ;;  %v10435_v0 = vld [vmem:[#allocation91_spill] sm:$0xff] }
 0x8bb   : > { %v9642_v15 = vsel %vm676_vm0, %v4542_v21, %v10413_v19  ;;  %v4553_v16 = vrot.slane %v9526_v59, 4  ;;  %v9649_v26 = vsel %vm676_vm0, %v4779_v57, %v9498_v3  ;;  %v4526_v48 = vperm.slane %v4520_v35, %v10385_v22 }
 0x8bc   : > { %v4551_v31 = vrot.slane %v4538_v20, 4  ;;  %v4550_v47 = vsel %vm676_vm0, %v4530_v12, %v4549_v46  ;;  %v4547_v1 = vrot.slane %v4530_v12, 4  ;;  %v10414_v25 = vrot.slane %v9466_v60, 4 }
 0x8bd   : > { %v4104_v63 = vsel %vm676_vm0, %v4103_v33, %v9466_v60  ;;  %v4556_v43 = vsel %vm676_vm0, %v4555_v53, %v9512_v38  ;;  %v9661_v3 = vsel %vm676_vm0, %v4538_v20, %v4553_v16  ;;  %v4546_v57 = vsel %vm676_vm0, %v4526_v48, %v4545_v52 }
 0x8be   : > { %v4106_v61 = vsel %vm676_vm0, %v4090_v42, %v10414_v25  ;;  %v4543_v46 = vrot.slane %v4526_v48, 4  ;;  %v4552_v56 = vsel %vm676_vm0, %v4551_v31, %v9526_v59  ;;  %v4548_v42 = vsel %vm676_vm0, %v4547_v1, %v9538_v30  ;;  %4865 = vrot.lane.b32.xlu2 %v4104_v63, %s5734_s22 }
 0x8bf   : > { %4869 = vrot.lane.b32.xlu1 %v4106_v61, %s5734_s22  ;;  %v4101_v60 = vrot.slane %v9483_v49, 4  ;;  %v4085_v59 = vrot.slane %v9542_v5, 4  ;;  %v4070_v49 = vperm.slane %v9322_v14, %v10385_v22 }
 0x8c0   : > { %v4544_v38 = vsel %vm676_vm0, %v4543_v46, %v9534_v24 }
 0x8c1   : > { %v4102_v33 = vsel %vm676_vm0, %v9530_v7, %v4101_v60  ;;  %v4852_v28 = vpop.permute.xlu1 %4851  ;;  %v4086_v30 = vsel %vm676_vm0, %v9502_v18, %v4085_v59  ;;  %v4109_v24 = vrot.slane %v4070_v49, 4 }
 0x8c2   : > { %4861 = vrot.lane.b32.xlu0 %v4102_v33, %s5734_s22  ;;  %5041 = vst.msk [vmem:[%s9547_s21 + $0x10] sm:$0xff] %vm10415_vm2, %v4852_v28  ;;  %v4094_v7 = vperm.slane %v4086_v30, %v10385_v22  ;;  %v10416_v22 = vld [vmem:[#allocation83_spill] sm:$0xff] }
 0x8c4   : > { %v4107_v21 = vrot.slane %v4094_v7, 4  ;;  %v4110_v18 = vsel %vm676_vm0, %v4094_v7, %v4109_v24 }
 0x8c6   : > { %4871 = vrot.lane.b32.xlu2 %v9129_v13, %s5734_s22  ;;  %v10417_v13 = vld [vmem:[#allocation94_spill] sm:$0xff] }
 0x8c7   : > { %4875 = vrot.lane.b32.xlu1 %v9107_v4, %s5734_s22  ;;  %v4108_v4 = vsel %vm676_vm0, %v4107_v21, %v4070_v49  ;;  %vm10421_vm0 = vmmov %vm10415_vm2 }
 0x8c8   : > { %vm10423_vm6 = vmmov %vm10421_vm0 }
 0x8c9   : > { %vm10426_vm7 = vmmov %vm10421_vm0 }
 0x8ca   : > { %4867 = vrot.lane.b32.xlu0 %v9149_v10, %s5734_s22  ;;  %v10418_v10 = vld [vmem:[#allocation92_spill] sm:$0xff]  ;;  %vm10428_vm10 = vmmov %vm10421_vm0 }
 0x8cb   : > { %vm10429_vm11 = vmmov %vm10421_vm0 }
 0x8cc   : > { %vm10430_vm12 = vmmov %vm10421_vm0 }
 0x8cd   : > { %vm10433_vm3 = vmmov %vm10421_vm0 }
 0x8ce   : > { %4877 = vrot.lane.b32.xlu2 %v4110_v18, %s5734_s22  ;;  %vm10434_vm4 = vmmov %vm10421_vm0 }
 0x8cf   : > { %4881 = vrot.lane.b32.xlu1 %v9459_v62, %s5734_s22  ;;  %v10431_v62 = vld [vmem:[#allocation43_spill] sm:$0xff]  ;;  %vm10436_vm5 = vmmov %vm10421_vm0 }
 0x8d0   : > { %vm10437_vm8 = vmmov %vm10421_vm0 }
 0x8d1   : > { %vm10438_vm9 = vmmov %vm10421_vm0 }
 0x8d2   : > { %4873 = vrot.lane.b32.xlu0 %v4108_v4, %s5734_s22  ;;  %vm10439_vm1 = vmmov %vm10421_vm0 }
 0x8d3   : > { %vm10442_vm13 = vmmov %vm10421_vm0 }
 0x8d4   : > { %vm10443_vm14 = vmmov %vm10421_vm0 }
 0x8d5   : > { %vm10445_vm15 = vmmov %vm10421_vm0 }
 0x8d6   : > { %4883 = vrot.lane.b32.xlu2 %v9203_v9, %s5734_s22  ;;  %v10422_v9 = vld [vmem:[#allocation85_spill] sm:$0xff]  ;;  %vm10446_vm2 = vmmov %vm10421_vm0 }
 0x8d7   : > { %4887 = vrot.lane.b32.xlu1 %v9198_v27, %s5734_s22 }
 0x8da   : > { %4879 = vrot.lane.b32.xlu0 %v9216_v37, %s5734_s22  ;;  %v10425_v37 = vld [vmem:[#allocation29_spill] sm:$0xff] }
 0x8de   : > { %4889 = vrot.lane.b32.xlu2 %v9469_v54, %s5734_s22 }
 0x8df   : > { %4893 = vrot.lane.b32.xlu1 %v9449_v50, %s5734_s22 }
 0x8e2   : > { %4885 = vrot.lane.b32.xlu0 %v9443_v2, %s5734_s22 }
 0x8e6   : > { %4895 = vrot.lane.b32.xlu2 %v9208_v45, %s5734_s22 }
 0x8e7   : > { %4899 = vrot.lane.b32.xlu1 %v9187_v39, %s5734_s22  ;;  %v10419_v39 = vld [vmem:[#allocation75_spill] sm:$0xff] }
 0x8ea   : > { %4891 = vrot.lane.b32.xlu0 %v9192_v6, %s5734_s22  ;;  %v10420_v6 = vld [vmem:[#allocation98_spill] sm:$0xff] }
 0x8ee   : > { %4901 = vrot.lane.b32.xlu2 %v9434_v58, %s5734_s22  ;;  %v10427_v58 = vld [vmem:[#allocation26_spill] sm:$0xff] }
 0x8ef   : > { %4905 = vrot.lane.b32.xlu1 %v9452_v36, %s5734_s22 }
 0x8f2   : > { %4897 = vrot.lane.b32.xlu0 %v9462_v40, %s5734_s22  ;;  %v10432_v40 = vld [vmem:[#allocation44_spill] sm:$0xff] }
 0x8f6   : > { %4907 = vrot.lane.b32.xlu2 %v10416_v22, %s5734_s22 }
 0x8f7   : > { %4911 = vrot.lane.b32.xlu1 %v9212_v17, %s5734_s22  ;;  %v10424_v17 = vld [vmem:[#allocation22_spill] sm:$0xff] }
 0x8fa   : > { %4903 = vrot.lane.b32.xlu0 %v10417_v13, %s5734_s22 }
 0x8fe   : > { %4913 = vrot.lane.b32.xlu2 %v4544_v38, %s5734_s22 }
 0x8ff   : > { %4917 = vrot.lane.b32.xlu1 %v4546_v57, %s5734_s22 }
 0x902   : > { %4909 = vrot.lane.b32.xlu0 %v10418_v10, %s5734_s22 }
 0x906   : > { %4919 = vrot.lane.b32.xlu2 %v10420_v6, %s5734_s22 }
 0x907   : > { %4923 = vrot.lane.b32.xlu1 %v10419_v39, %s5734_s22 }
 0x908   : > { %v4854_v27 = vpop.permute.xlu2 %4853 }
 0x909   : > { %5042 = vst.msk [vmem:[%s9547_s21 + $0x18] sm:$0xff] %vm10421_vm0, %v4854_v27 }
 0x90a   : > { %4915 = vrot.lane.b32.xlu0 %v10422_v9, %s5734_s22 }
 0x90e   : > { %4925 = vrot.lane.b32.xlu2 %v4550_v47, %s5734_s22 }
 0x90f   : > { %4929 = vrot.lane.b32.xlu1 %v4552_v56, %s5734_s22 }
 0x910   : > { %v4860_v45 = vpop.permute.xlu2 %4859 }
 0x911   : > { %5045 = vst.msk [vmem:[%s9547_s21 + $0x30] sm:$0xff] %vm10423_vm6, %v4860_v45  ;;  %vm10447_vm6 = vmmov %vm10421_vm0 }
 0x912   : > { %4921 = vrot.lane.b32.xlu0 %v4548_v42, %s5734_s22 }
 0x916   : > { %4931 = vrot.lane.b32.xlu2 %v10425_v37, %s5734_s22 }
 0x917   : > { %4935 = vrot.lane.b32.xlu1 %v10424_v17, %s5734_s22 }
 0x918   : > { %v4866_v14 = vpop.permute.xlu2 %4865 }
 0x919   : > { %5048 = vst.msk [vmem:[%s9547_s21 + $0x48] sm:$0xff] %vm10426_vm7, %v4866_v14  ;;  %vm10450_vm7 = vmmov %vm10421_vm0 }
 0x91a   : > { %4927 = vrot.lane.b32.xlu0 %v10427_v58, %s5734_s22 }
 0x91e   : > { %4937 = vrot.lane.b32.xlu2 %v4556_v43, %s5734_s22 }
 0x91f   : > { %4941 = vrot.lane.b32.xlu1 %v9642_v15, %s5734_s22  ;;  %v4858_v2 = vpop.permute.xlu1 %4857 }
 0x920   : > { %v4872_v50 = vpop.permute.xlu2 %4871  ;;  %5044 = vst.msk [vmem:[%s9547_s21 + $0x28] sm:$0xff] %vm10428_vm10, %v4858_v2  ;;  %vm10451_vm10 = vmmov %vm10421_vm0 }
 0x921   : > { %5051 = vst.msk [vmem:[%s9547_s21 + $0x60] sm:$0xff] %vm10429_vm11, %v4872_v50  ;;  %vm10453_vm11 = vmmov %vm10421_vm0 }
 0x922   : > { %4933 = vrot.lane.b32.xlu0 %v9661_v3, %s5734_s22 }
 0x923   : > { %v4850_v36 = vpop.permute.xlu0 %4849 }
 0x924   : > { %5040 = vst.msk [vmem:[%s9547_s21 + $0x8] sm:$0xff] %vm10430_vm12, %v4850_v36  ;;  %vm10454_vm12 = vmmov %vm10421_vm0 }
 0x926   : > { %4943 = vrot.lane.b32.xlu2 %v10432_v40, %s5734_s22 }
 0x927   : > { %4947 = vrot.lane.b32.xlu1 %v10431_v62, %s5734_s22  ;;  %v4864_v54 = vpop.permute.xlu1 %4863 }
 0x928   : > { %v4878_v5 = vpop.permute.xlu2 %4877  ;;  %5047 = vst.msk [vmem:[%s9547_s21 + $0x40] sm:$0xff] %vm10433_vm3, %v4864_v54  ;;  %vm10455_vm3 = vmmov %vm10421_vm0 }
 0x929   : > { %5054 = vst.msk [vmem:[%s9547_s21 + $0x78] sm:$0xff] %vm10434_vm4, %v4878_v5  ;;  %vm10456_vm4 = vmmov %vm10421_vm0 }
 0x92a   : > { %4939 = vrot.lane.b32.xlu0 %v10435_v0, %s5734_s22 }
 0x92b   : > { %v4856_v23 = vpop.permute.xlu0 %4855 }
 0x92c   : > { %5043 = vst.msk [vmem:[%s9547_s21 + $0x20] sm:$0xff] %vm10436_vm5, %v4856_v23  ;;  %vm10457_vm5 = vmmov %vm10421_vm0 }
 0x92e   : > { %4949 = vrot.lane.b32.xlu2 %v9600_v55, %s5734_s22  ;;  %v10441_v55 = vld [vmem:[#allocation37_spill] sm:$0xff] }
 0x92f   : > { %4953 = vrot.lane.b32.xlu1 %v9633_v29, %s5734_s22  ;;  %v10440_v29 = vld [vmem:[#allocation54_spill] sm:$0xff] }
 0x930   : > { %v4884_v32 = vpop.permute.xlu2 %4883 }
 0x931   : > { %v4870_v34 = vpop.permute.xlu1 %4869  ;;  %5057 = vst.msk [vmem:[%s9547_s21 + $0x90] sm:$0xff] %vm10438_vm9, %v4884_v32  ;;  %vm10459_vm9 = vmmov %vm10421_vm0 }
 0x932   : > { %5050 = vst.msk [vmem:[%s9547_s21 + $0x58] sm:$0xff] %vm10437_vm8, %v4870_v34  ;;  %4945 = vrot.lane.b32.xlu0 %v9618_v51, %s5734_s22  ;;  %v10444_v51 = vld [vmem:[#allocation64_spill] sm:$0xff]  ;;  %vm10458_vm8 = vmmov %vm10421_vm0 }
 0x934   : > { %v4862_v20 = vpop.permute.xlu0 %4861 }
 0x935   : > { %5046 = vst.msk [vmem:[%s9547_s21 + $0x38] sm:$0xff] %vm10439_vm1, %v4862_v20  ;;  %vm10460_vm1 = vmmov %vm10421_vm0 }
 0x936   : > { %4955 = vrot.lane.b32.xlu2 %v10441_v55, %s5734_s22 }
 0x937   : > { %4959 = vrot.lane.b32.xlu1 %v10440_v29, %s5734_s22 }
 0x938   : > { %v4890_v19 = vpop.permute.xlu2 %4889 }
 0x939   : > { %v4876_v12 = vpop.permute.xlu1 %4875  ;;  %5060 = vst.msk [vmem:[%s9547_s21 + $0xa8] sm:$0xff] %vm10443_vm14, %v4890_v19  ;;  %vm10462_vm14 = vmmov %vm10421_vm0 }
 0x93a   : > { %5053 = vst.msk [vmem:[%s9547_s21 + $0x70] sm:$0xff] %vm10442_vm13, %v4876_v12  ;;  %4951 = vrot.lane.b32.xlu0 %v10444_v51, %s5734_s22  ;;  %vm10461_vm13 = vmmov %vm10421_vm0 }
 0x93c   : > { %v4868_v15 = vpop.permute.xlu0 %4867 }
 0x93d   : > { %5049 = vst.msk [vmem:[%s9547_s21 + $0x50] sm:$0xff] %vm10445_vm15, %v4868_v15  ;;  %vm10463_vm15 = vmmov %vm10421_vm0 }
 0x93e   : > { %4961 = vrot.lane.b32.xlu2 %v9622_v8, %s5734_s22  ;;  %v10449_v8 = vld [vmem:[#allocation77_spill] sm:$0xff] }
 0x93f   : > { %4965 = vrot.lane.b32.xlu1 %v9593_v44, %s5734_s22  ;;  %v10448_v44 = vld [vmem:[#allocation73_spill] sm:$0xff] }
 0x940   : > { %v4896_v35 = vpop.permute.xlu2 %4895 }
 0x941   : > { %v4882_v53 = vpop.permute.xlu1 %4881  ;;  %5063 = vst.msk [vmem:[%s9547_s21 + $0xc0] sm:$0xff] %vm10421_vm0, %v4896_v35 }
 0x942   : > { %5056 = vst.msk [vmem:[%s9547_s21 + $0x88] sm:$0xff] %vm10446_vm2, %v4882_v53  ;;  %4957 = vrot.lane.b32.xlu0 %v9627_v11, %s5734_s22  ;;  %v10452_v11 = vld [vmem:[#allocation62_spill] sm:$0xff]  ;;  %vm10464_vm2 = vmmov %vm10421_vm0 }
 0x944   : > { %v4874_v52 = vpop.permute.xlu0 %4873 }
 0x945   : > { %5052 = vst.msk [vmem:[%s9547_s21 + $0x68] sm:$0xff] %vm10447_vm6, %v4874_v52  ;;  %vm10465_vm6 = vmmov %vm10421_vm0 }
 0x946   : > { %4967 = vrot.lane.b32.xlu2 %v10449_v8, %s5734_s22 }
 0x947   : > { %4971 = vrot.lane.b32.xlu1 %v10448_v44, %s5734_s22 }
 0x948   : > { %v4902_v48 = vpop.permute.xlu2 %4901 }
 0x949   : > { %v4888_v16 = vpop.permute.xlu1 %4887  ;;  %5066 = vst.msk [vmem:[%s9547_s21 + $0xd8] sm:$0xff] %vm10451_vm10, %v4902_v48  ;;  %vm10467_vm10 = vmmov %vm10421_vm0 }
 0x94a   : > { %5059 = vst.msk [vmem:[%s9547_s21 + $0xa0] sm:$0xff] %vm10450_vm7, %v4888_v16  ;;  %4963 = vrot.lane.b32.xlu0 %v10452_v11, %s5734_s22  ;;  %vm10466_vm7 = vmmov %vm10421_vm0 }
 0x94c   : > { %v4880_v31 = vpop.permute.xlu0 %4879 }
 0x94d   : > { %5055 = vst.msk [vmem:[%s9547_s21 + $0x80] sm:$0xff] %vm10453_vm11, %v4880_v31  ;;  %vm10468_vm11 = vmmov %vm10421_vm0 }
 0x94e   : > { %4973 = vrot.lane.b32.xlu2 %v9609_v41, %s5734_s22 }
 0x950   : > { %v4908_v1 = vpop.permute.xlu2 %4907 }
 0x951   : > { %v4894_v47 = vpop.permute.xlu1 %4893  ;;  %5069 = vst.msk [vmem:[%s9547_s21 + $0xf0] sm:$0xff] %vm10455_vm3, %v4908_v1  ;;  %vm10470_vm3 = vmmov %vm10421_vm0 }
 0x952   : > { %5062 = vst.msk [vmem:[%s9547_s21 + $0xb8] sm:$0xff] %vm10454_vm12, %v4894_v47  ;;  %4969 = vrot.lane.b32.xlu0 %v9649_v26, %s5734_s22  ;;  %vm10469_vm12 = vmmov %vm10421_vm0 }
 0x954   : > { %v4886_v25 = vpop.permute.xlu0 %4885 }
 0x955   : > { %5058 = vst.msk [vmem:[%s9547_s21 + $0x98] sm:$0xff] %vm10456_vm4, %v4886_v25  ;;  %vm10471_vm4 = vmmov %vm10421_vm0 }
 0x958   : > { %v4914_v63 = vpop.permute.xlu2 %4913 }
 0x959   : > { %v4900_v61 = vpop.permute.xlu1 %4899  ;;  %5072 = vst.msk [vmem:[%s9547_s21 + $0x108] sm:$0xff] %vm10458_vm8, %v4914_v63  ;;  %vm10473_vm8 = vmmov %vm10421_vm0 }
 0x95a   : > { %5065 = vst.msk [vmem:[%s9547_s21 + $0xd0] sm:$0xff] %vm10457_vm5, %v4900_v61  ;;  %vm10472_vm5 = vmmov %vm10421_vm0 }
 0x95c   : > { %v4892_v41 = vpop.permute.xlu0 %4891 }
 0x95d   : > { %5061 = vst.msk [vmem:[%s9547_s21 + $0xb0] sm:$0xff] %vm10459_vm9, %v4892_v41  ;;  %vm10474_vm9 = vmmov %vm10421_vm0 }
 0x960   : > { %v4920_v3 = vpop.permute.xlu2 %4919 }
 0x961   : > { %v4906_v43 = vpop.permute.xlu1 %4905  ;;  %5075 = vst.msk [vmem:[%s9547_s21 + $0x120] sm:$0xff] %vm10461_vm13, %v4920_v3  ;;  %vm10476_vm13 = vmmov %vm10421_vm0 }
 0x962   : > { %5068 = vst.msk [vmem:[%s9547_s21 + $0xe8] sm:$0xff] %vm10460_vm1, %v4906_v43  ;;  %vm10475_vm1 = vmmov %vm10421_vm0 }
 0x964   : > { %v4898_v26 = vpop.permute.xlu0 %4897 }
 0x965   : > { %5064 = vst.msk [vmem:[%s9547_s21 + $0xc8] sm:$0xff] %vm10462_vm14, %v4898_v26  ;;  %vm10477_vm14 = vmmov %vm10421_vm0 }
 0x968   : > { %v4926_v46 = vpop.permute.xlu2 %4925 }
 0x969   : > { %v4912_v57 = vpop.permute.xlu1 %4911  ;;  %5078 = vst.msk [vmem:[%s9547_s21 + $0x138] sm:$0xff] %vm10464_vm2, %v4926_v46  ;;  %vm10479_vm2 = vmmov %vm10421_vm0 }
 0x96a   : > { %5071 = vst.msk [vmem:[%s9547_s21 + $0x100] sm:$0xff] %vm10463_vm15, %v4912_v57  ;;  %vm10478_vm15 = vmmov %vm10421_vm0 }
 0x96c   : > { %v4904_v56 = vpop.permute.xlu0 %4903 }
 0x96d   : > { %5067 = vst.msk [vmem:[%s9547_s21 + $0xe0] sm:$0xff] %vm10421_vm0, %v4904_v56 }
 0x970   : > { %v4932_v60 = vpop.permute.xlu2 %4931 }
 0x971   : > { %v4918_v42 = vpop.permute.xlu1 %4917  ;;  %5081 = vst.msk [vmem:[%s9547_s21 + $0x150] sm:$0xff] %vm10466_vm7, %v4932_v60  ;;  %vm10481_vm7 = vmmov %vm10421_vm0 }
 0x972   : > { %5074 = vst.msk [vmem:[%s9547_s21 + $0x118] sm:$0xff] %vm10465_vm6, %v4918_v42  ;;  %vm10480_vm6 = vmmov %vm10421_vm0 }
 0x974   : > { %v4910_v38 = vpop.permute.xlu0 %4909 }
 0x975   : > { %5070 = vst.msk [vmem:[%s9547_s21 + $0xf8] sm:$0xff] %vm10467_vm10, %v4910_v38  ;;  %vm10482_vm10 = vmmov %vm10421_vm0 }
 0x978   : > { %v4938_v28 = vpop.permute.xlu2 %4937 }
 0x979   : > { %v4924_v33 = vpop.permute.xlu1 %4923  ;;  %5084 = vst.msk [vmem:[%s9547_s21 + $0x168] sm:$0xff] %vm10469_vm12, %v4938_v28  ;;  %vm10484_vm12 = vmmov %vm10421_vm0 }
 0x97a   : > { %5077 = vst.msk [vmem:[%s9547_s21 + $0x130] sm:$0xff] %vm10468_vm11, %v4924_v33  ;;  %vm10483_vm11 = vmmov %vm10421_vm0 }
 0x97c   : > { %v4916_v59 = vpop.permute.xlu0 %4915 }
 0x97d   : > { %5073 = vst.msk [vmem:[%s9547_s21 + $0x110] sm:$0xff] %vm10470_vm3, %v4916_v59  ;;  %vm10485_vm3 = vmmov %vm10421_vm0 }
 0x980   : > { %v4944_v49 = vpop.permute.xlu2 %4943 }
 0x981   : > { %v4930_v30 = vpop.permute.xlu1 %4929  ;;  %5087 = vst.msk [vmem:[%s9547_s21 + $0x180] sm:$0xff] %vm10472_vm5, %v4944_v49  ;;  %vm10487_vm5 = vmmov %vm10421_vm0 }
 0x982   : > { %5080 = vst.msk [vmem:[%s9547_s21 + $0x148] sm:$0xff] %vm10471_vm4, %v4930_v30  ;;  %vm10486_vm4 = vmmov %vm10421_vm0 }
 0x984   : > { %v4922_v7 = vpop.permute.xlu0 %4921 }
 0x985   : > { %5076 = vst.msk [vmem:[%s9547_s21 + $0x128] sm:$0xff] %vm10473_vm8, %v4922_v7  ;;  %vm10488_vm8 = vmmov %vm10421_vm0 }
 0x988   : > { %v4950_v21 = vpop.permute.xlu2 %4949 }
 0x989   : > { %v4936_v24 = vpop.permute.xlu1 %4935  ;;  %5090 = vst.msk [vmem:[%s9547_s21 + $0x198] sm:$0xff] %vm10475_vm1, %v4950_v21  ;;  %vm10490_vm1 = vmmov %vm10421_vm0 }
 0x98a   : > { %5083 = vst.msk [vmem:[%s9547_s21 + $0x160] sm:$0xff] %vm10474_vm9, %v4936_v24  ;;  %vm10489_vm9 = vmmov %vm10421_vm0 }
 0x98c   : > { %v4928_v18 = vpop.permute.xlu0 %4927 }
 0x98d   : > { %5079 = vst.msk [vmem:[%s9547_s21 + $0x140] sm:$0xff] %vm10476_vm13, %v4928_v18  ;;  %vm10491_vm13 = vmmov %vm10421_vm0 }
 0x990   : > { %v4956_v22 = vpop.permute.xlu2 %4955 }
 0x991   : > { %v4942_v4 = vpop.permute.xlu1 %4941  ;;  %5093 = vst.msk [vmem:[%s9547_s21 + $0x1b0] sm:$0xff] %vm10478_vm15, %v4956_v22 }
 0x992   : > { %5086 = vst.msk [vmem:[%s9547_s21 + $0x178] sm:$0xff] %vm10477_vm14, %v4942_v4  ;;  %vm10492_vm14 = vmmov %vm10421_vm0 }
 0x994   : > { %v4934_v13 = vpop.permute.xlu0 %4933 }
 0x995   : > { %5082 = vst.msk [vmem:[%s9547_s21 + $0x158] sm:$0xff] %vm10479_vm2, %v4934_v13 }
 0x998   : > { %v4962_v39 = vpop.permute.xlu2 %4961 }
 0x999   : > { %v4948_v10 = vpop.permute.xlu1 %4947  ;;  %5096 = vst.msk [vmem:[%s9547_s21 + $0x1c8] sm:$0xff] %vm10480_vm6, %v4962_v39 }
 0x99a   : > { %5089 = vst.msk [vmem:[%s9547_s21 + $0x190] sm:$0xff] %vm10421_vm0, %v4948_v10 }
 0x99c   : > { %v4940_v6 = vpop.permute.xlu0 %4939 }
 0x99d   : > { %5085 = vst.msk [vmem:[%s9547_s21 + $0x170] sm:$0xff] %vm10481_vm7, %v4940_v6 }
 0x9a0   : > { %v4968_v9 = vpop.permute.xlu2 %4967 }
 0x9a1   : > { %v4954_v27 = vpop.permute.xlu1 %4953  ;;  %5099 = vst.msk [vmem:[%s9547_s21 + $0x1e0] sm:$0xff] %vm10483_vm11, %v4968_v9 }
 0x9a2   : > { %5092 = vst.msk [vmem:[%s9547_s21 + $0x1a8] sm:$0xff] %vm10482_vm10, %v4954_v27 }
 0x9a4   : > { %v4946_v45 = vpop.permute.xlu0 %4945 }
 0x9a5   : > { %5088 = vst.msk [vmem:[%s9547_s21 + $0x188] sm:$0xff] %vm10484_vm12, %v4946_v45 }
 0x9a8   : > { %v4974_v37 = vpop.permute.xlu2 %4973 }
 0x9a9   : > { %v4960_v17 = vpop.permute.xlu1 %4959  ;;  %5102 = vst.msk [vmem:[%s9547_s21 + $0x1f8] sm:$0xff] %vm10486_vm4, %v4974_v37 }
 0x9aa   : > { %5095 = vst.msk [vmem:[%s9547_s21 + $0x1c0] sm:$0xff] %vm10485_vm3, %v4960_v17 }
 0x9ac   : > { %v4952_v14 = vpop.permute.xlu0 %4951 }
 0x9ad   : > { %5091 = vst.msk [vmem:[%s9547_s21 + $0x1a0] sm:$0xff] %vm10487_vm5, %v4952_v14 }
 0x9b1   : > { %v4966_v58 = vpop.permute.xlu1 %4965 }
 0x9b2   : > { %5098 = vst.msk [vmem:[%s9547_s21 + $0x1d8] sm:$0xff] %vm10488_vm8, %v4966_v58 }
 0x9b4   : > { %v4958_v2 = vpop.permute.xlu0 %4957 }
 0x9b5   : > { %5094 = vst.msk [vmem:[%s9547_s21 + $0x1b8] sm:$0xff] %vm10489_vm9, %v4958_v2 }
 0x9b9   : > { %v4972_v50 = vpop.permute.xlu1 %4971 }
 0x9ba   : > { %5101 = vst.msk [vmem:[%s9547_s21 + $0x1f0] sm:$0xff] %vm10490_vm1, %v4972_v50 }
 0x9bc   : > { %v4964_v36 = vpop.permute.xlu0 %4963 }
 0x9bd   : > { %5097 = vst.msk [vmem:[%s9547_s21 + $0x1d0] sm:$0xff] %vm10491_vm13, %v4964_v36 }
 0x9c4   : > { %v4970_v62 = vpop.permute.xlu0 %4969 }
 0x9c5   : > { %5100 = vst.msk [vmem:[%s9547_s21 + $0x1e8] sm:$0xff] %vm10492_vm14, %v4970_v62 }
 0x9c6 PF: > { %s17_s28 = sadd.s32 1, %s5711_s28   ;;  %s10493_s24 = smov %s5699_s25 }
 0x9c7   : > { %p14_p10 = scmp.ge.s32.totalorder %s17_s28, 4   ;;  %s10494_s25 = smov %s5830_s10 }
 0x9c8   : > { %s10495_s26 = smov %s5707_s27  ;;  %s10496_s27 = smov %s10498_s29 }
 0x9c9   :  { %16 = sbr.rel (!%p14_p10) target bundleno = 3 (0x3), region = 177 }

</bundles_post_ra>
